<compile_context>
chip_gen: v6e
topology: v6e:2x2x1
jax: 0.10.0
libtpu: 0.0.40
codegen_flags: <defaults>
</compile_context>

<pallas_src>
import numpy as np
import jax
import jax.numpy as jnp
from jax import lax
from jax.experimental import pallas as pl
from jax.experimental.pallas import tpu as pltpu

NUM_CLASSES = 10
H_IN = W_IN = 28
C1_OUT = 5
C2_OUT = 50
KSIZE = 5
STRIDE = 2
H1 = W1 = 12                      # (28 - 5) // 2 + 1
H2 = W2 = 4                       # (12 - 5) // 2 + 1
IN_FLAT = H_IN * W_IN             # 784
F1 = C1_OUT * H1 * W1             # 720
F2 = C2_OUT * H2 * W2             # 800  (matches PyTorch x.view(-1, 50*4*4))
F1_PAD = 768                      # 720 padded to a multiple of 128
F2_PAD = 896                      # 800 padded to a multiple of 128
OUT_PAD = 128                     # lane-dense output width (classes in [:10])

TB_MAX = 512                      # images per grid step


def _forward_kernel(x_ref, w1_ref, b1_ref, w2_ref, b2_ref, wfc_ref, bfc_ref,
                    out_ref):
    # x_ref:   (TB, 784)      bf16 flattened images
    # w1_ref:  (784, 768)     bf16 expanded conv1 weights (zero pad cols)
    # b1_ref:  (1, 768)       f32 conv1 bias broadcast over positions (pad=0)
    # w2_ref:  (768, 896)     bf16 expanded conv2 weights (zero pad rows/cols)
    # b2_ref:  (1, 896)       f32 conv2 bias broadcast over positions (pad=0)
    # wfc_ref: (896, 128)     bf16 classifier weight (transposed, zero padded)
    # bfc_ref: (1, 128)       f32 classifier bias (zero padded)
    # out_ref: (TB, 128)      f32 output slab (classes in lanes [:10])
    x = x_ref[...]                                          # bf16

    # conv1 as one MXU matmul (bf16 x bf16 -> f32 accumulate), batch in M.
    h1 = jnp.dot(x, w1_ref[...], preferred_element_type=jnp.float32)
    h1 = h1 + b1_ref[...]
    h1 = h1 * h1                                            # x = x * x (f32)

    # conv2 as one MXU matmul, batch in M.
    h2 = jnp.dot(h1.astype(jnp.bfloat16), w2_ref[...],
                 preferred_element_type=jnp.float32)
    h2 = h2 + b2_ref[...]
    h2 = h2 * h2                                            # x = x * x (f32)

    # classifier
    y = jnp.dot(h2.astype(jnp.bfloat16), wfc_ref[...],
                preferred_element_type=jnp.float32)
    y = y + bfc_ref[...]

    # 1 + x + 0.5 * x**2   (always >= 0.5 on the real lanes -> row sum > 0)
    y = 1.0 + y + 0.5 * y * y

    # Zero the pad lanes (>= NUM_CLASSES) so they contribute nothing to the
    # row sum and are stored as exact zeros.
    col = lax.broadcasted_iota(jnp.int32, y.shape, 1)
    y = jnp.where(col < NUM_CLASSES, y, 0.0)

    s = jnp.sum(y, axis=1, keepdims=True)
    out_ref[...] = (y * pl.reciprocal(s, approx=False)).astype(out_ref.dtype)


def _expand_conv1(w_conv1):
    """(5,1,5,5) -> (784, 768) block-sparse matrix: flat image -> conv1 feats.

    Feature order (c1, oh, ow) matches NCHW flatten: col = c1*144 + oh*12 + ow.
    Columns [720:768] stay exactly zero (padding).
    """
    c1, oh, ow, kh, kw = np.meshgrid(
        np.arange(C1_OUT), np.arange(H1), np.arange(W1),
        np.arange(KSIZE), np.arange(KSIZE), indexing="ij")
    rows = (oh * STRIDE + kh) * W_IN + (ow * STRIDE + kw)
    cols = c1 * (H1 * W1) + oh * W1 + ow
    vals = w_conv1[c1, 0, kh, kw]
    big = jnp.zeros((IN_FLAT, F1_PAD), jnp.float32)
    return big.at[rows.ravel(), cols.ravel()].set(jnp.ravel(vals))


def _expand_conv2(w_conv2):
    """(50,5,5,5) -> (768, 896) block-sparse matrix: conv1^2 feats -> conv2 feats.

    Row order matches conv1 feature order; col = c2*16 + oh*4 + ow, which is
    exactly PyTorch's x.view(-1, 50*4*4) flatten order.  Rows [720:768] and
    columns [800:896] stay exactly zero (padding).
    """
    c2, c1, oh, ow, kh, kw = np.meshgrid(
        np.arange(C2_OUT), np.arange(C1_OUT), np.arange(H2), np.arange(W2),
        np.arange(KSIZE), np.arange(KSIZE), indexing="ij")
    rows = c1 * (H1 * W1) + (oh * STRIDE + kh) * W1 + (ow * STRIDE + kw)
    cols = c2 * (H2 * W2) + oh * W2 + ow
    vals = w_conv2[c2, c1, kh, kw]
    big = jnp.zeros((F1_PAD, F2_PAD), jnp.float32)
    return big.at[rows.ravel(), cols.ravel()].set(jnp.ravel(vals))


def _round_up(n, m):
    return ((n + m - 1) // m) * m


def net_mnist_forward(x, w_conv1, b_conv1, w_conv2, b_conv2, w_fc, b_fc):
    """x: (B, 1, 28, 28) float32 NCHW. Returns (B, 10) float32."""
    B = x.shape[0]
    x_flat = x.astype(jnp.float32).reshape(B, IN_FLAT).astype(jnp.bfloat16)

    # Weight preprocessing (done once, in the wrapper).  Matmul operands are
    # bf16; biases stay f32 (added to the f32 accumulators in-kernel).
    w1_big = _expand_conv1(w_conv1.astype(jnp.float32)).astype(jnp.bfloat16)
    b1_big = jnp.zeros((1, F1_PAD), jnp.float32).at[0, :F1].set(
        jnp.repeat(b_conv1.astype(jnp.float32), H1 * W1))
    w2_big = _expand_conv2(w_conv2.astype(jnp.float32)).astype(jnp.bfloat16)
    b2_big = jnp.zeros((1, F2_PAD), jnp.float32).at[0, :F2].set(
        jnp.repeat(b_conv2.astype(jnp.float32), H2 * W2))
    wfc_big = jnp.zeros((F2_PAD, OUT_PAD), jnp.float32).at[:F2, :NUM_CLASSES].set(
        w_fc.astype(jnp.float32).T).astype(jnp.bfloat16)
    bfc_big = jnp.zeros((1, OUT_PAD), jnp.float32).at[0, :NUM_CLASSES].set(
        b_fc.astype(jnp.float32))

    # Pick a batch tile (multiple of 8 sublanes) and pad the batch to it.
    tb = min(TB_MAX, _round_up(B, 8))
    # Make sure the grid has >= 2 steps when the batch is big enough, so both
    # TensorCores on v7x get work from the "parallel" batch axis.
    if B > 8 and _round_up(B, tb) // tb < 2:
        tb = max(8, _round_up((tb + 1) // 2, 8))
    b_pad = _round_up(B, tb)
    if b_pad != B:
        x_flat = jnp.pad(x_flat, ((0, b_pad - B), (0, 0)))
    grid = (b_pad // tb,)

    out = pl.pallas_call(
        _forward_kernel,
        out_shape=jax.ShapeDtypeStruct((b_pad, OUT_PAD), jnp.float32),
        grid_spec=pltpu.PrefetchScalarGridSpec(
            num_scalar_prefetch=0,
            grid=grid,
            in_specs=[
                pl.BlockSpec((tb, IN_FLAT), lambda i: (i, 0)),
                pl.BlockSpec((IN_FLAT, F1_PAD), lambda i: (0, 0)),
                pl.BlockSpec((1, F1_PAD), lambda i: (0, 0)),
                pl.BlockSpec((F1_PAD, F2_PAD), lambda i: (0, 0)),
                pl.BlockSpec((1, F2_PAD), lambda i: (0, 0)),
                pl.BlockSpec((F2_PAD, OUT_PAD), lambda i: (0, 0)),
                pl.BlockSpec((1, OUT_PAD), lambda i: (0, 0)),
            ],
            out_specs=pl.BlockSpec((tb, OUT_PAD), lambda i: (i, 0)),
        ),
        compiler_params=pltpu.CompilerParams(
            dimension_semantics=("parallel",),
            vmem_limit_bytes=32 << 20,
        ),
    )(x_flat, w1_big, b1_big, w2_big, b2_big, wfc_big, bfc_big)
    return out[:B, :NUM_CLASSES]


def _reference_forward(x, w_conv1, b_conv1, w_conv2, b_conv2, w_fc, b_fc):
    """Plain-JAX (f32) replica of the PyTorch NetMNIST forward (NCHW / OIHW)."""
    B = x.shape[0]
    y = lax.conv_general_dilated(
        x, w_conv1, window_strides=(STRIDE, STRIDE), padding="VALID",
        dimension_numbers=("NCHW", "OIHW", "NCHW"))
    y = y + b_conv1.reshape(1, C1_OUT, 1, 1)
    y = y * y
    y = lax.conv_general_dilated(
        y, w_conv2, window_strides=(STRIDE, STRIDE), padding="VALID",
        dimension_numbers=("NCHW", "OIHW", "NCHW"))
    y = y + b_conv2.reshape(1, C2_OUT, 1, 1)
    y = y * y
    y = y.reshape(B, F2)
    y = y @ w_fc.T + b_fc
    y = 1.0 + y + 0.5 * y ** 2
    return y / jnp.sum(y, axis=1, keepdims=True)


if __name__ == "__main__":
    key = jax.random.PRNGKey(0)
    kx, kw1, kb1, kw2, kb2, kwf, kbf = jax.random.split(key, 7)

    B = 2
    x = jax.random.normal(kx, (B, 1, H_IN, W_IN), dtype=jnp.float32)

    # deterministic synthetic parameters (same shapes as the nn.Module)
    w_conv1 = 0.1 * jax.random.normal(kw1, (C1_OUT, 1, KSIZE, KSIZE), jnp.float32)
    b_conv1 = 0.1 * jax.random.normal(kb1, (C1_OUT,), jnp.float32)
    w_conv2 = 0.05 * jax.random.normal(kw2, (C2_OUT, C1_OUT, KSIZE, KSIZE), jnp.float32)
    b_conv2 = 0.05 * jax.random.normal(kb2, (C2_OUT,), jnp.float32)
    w_fc = 0.05 * jax.random.normal(kwf, (NUM_CLASSES, F2), jnp.float32)
    b_fc = 0.05 * jax.random.normal(kbf, (NUM_CLASSES,), jnp.float32)

    out = net_mnist_forward(x, w_conv1, b_conv1, w_conv2, b_conv2, w_fc, b_fc)
    out = jax.block_until_ready(out)

    ref = _reference_forward(x, w_conv1, b_conv1, w_conv2, b_conv2, w_fc, b_fc)
    assert out.shape == (B, NUM_CLASSES)
    # bf16 matmul inputs (with f32 accumulation) plus the two squaring stages
    # give ~1e-3 absolute error on the normalized outputs; tolerance loosened
    # accordingly (the f32 reference path is exact).
    assert jnp.allclose(out, ref, atol=2e-2, rtol=2e-2), (out, ref)
    # rows still sum to ~1
    assert jnp.allclose(jnp.sum(out, axis=1), 1.0, atol=1e-3)

    print("KERNEL_OK")
</pallas_src>

<mosaic_0001>
module attributes {stable_mosaic.version = 11 : i64} {
  func.func @_forward_kernel(%arg0: i32, %arg1: memref<8x784xbf16, #tpu.memory_space<vmem>>, %arg2: memref<784x768xbf16, #tpu.memory_space<vmem>>, %arg3: memref<1x768xf32, #tpu.memory_space<vmem>>, %arg4: memref<768x896xbf16, #tpu.memory_space<vmem>>, %arg5: memref<1x896xf32, #tpu.memory_space<vmem>>, %arg6: memref<896x128xbf16, #tpu.memory_space<vmem>>, %arg7: memref<1x128xf32, #tpu.memory_space<vmem>>, %arg8: memref<8x128xf32, #tpu.memory_space<vmem>>) attributes {dimension_semantics = [#tpu.dimension_semantics<parallel>], iteration_bounds = array<i64: 1>, scalar_prefetch = 0 : i64, scratch_operands = 0 : i64, tpu.core_type = #tpu.core_type<tc>, window_params = [{transform_indices = @transform_0, window_bounds = array<i64: 8, 784>}, {pipeline_mode = #tpu.pipeline_mode<synchronous>, transform_indices = @transform_1, window_bounds = array<i64: 784, 768>}, {pipeline_mode = #tpu.pipeline_mode<synchronous>, transform_indices = @transform_2, window_bounds = array<i64: 1, 768>}, {pipeline_mode = #tpu.pipeline_mode<synchronous>, transform_indices = @transform_3, window_bounds = array<i64: 768, 896>}, {pipeline_mode = #tpu.pipeline_mode<synchronous>, transform_indices = @transform_4, window_bounds = array<i64: 1, 896>}, {pipeline_mode = #tpu.pipeline_mode<synchronous>, transform_indices = @transform_5, window_bounds = array<i64: 896, 128>}, {pipeline_mode = #tpu.pipeline_mode<synchronous>, transform_indices = @transform_6, window_bounds = array<i64: 1, 128>}, {transform_indices = @transform_7, window_bounds = array<i64: 8, 128>}]} {
    %c0 = arith.constant 0 : index
    %c0_0 = arith.constant 0 : index
    %0 = vector.load %arg1[%c0, %c0_0] : memref<8x784xbf16, #tpu.memory_space<vmem>>, vector<8x784xbf16>
    %c0_1 = arith.constant 0 : index
    %c0_2 = arith.constant 0 : index
    %1 = vector.load %arg2[%c0_1, %c0_2] : memref<784x768xbf16, #tpu.memory_space<vmem>>, vector<784x768xbf16>
    %cst = arith.constant dense<0.000000e+00> : vector<8x768xf32>
    %2 = tpu.matmul %0, %1, %cst {dimension_numbers = #tpu.dot_dimension_numbers<[1], [0], [0], [1], [0, 0, 1, 1], [], []>} : vector<8x784xbf16>, vector<784x768xbf16>, vector<8x768xf32> -> vector<8x768xf32>
    %c0_3 = arith.constant 0 : index
    %c0_4 = arith.constant 0 : index
    %3 = vector.load %arg3[%c0_3, %c0_4] : memref<1x768xf32, #tpu.memory_space<vmem>>, vector<1x768xf32>
    %4 = vector.broadcast %3 : vector<1x768xf32> to vector<8x768xf32>
    %5 = arith.addf %2, %4 : vector<8x768xf32>
    %6 = arith.mulf %5, %5 : vector<8x768xf32>
    %7 = arith.truncf %6 : vector<8x768xf32> to vector<8x768xbf16>
    %c0_5 = arith.constant 0 : index
    %c0_6 = arith.constant 0 : index
    %8 = vector.load %arg4[%c0_5, %c0_6] : memref<768x896xbf16, #tpu.memory_space<vmem>>, vector<768x896xbf16>
    %cst_7 = arith.constant dense<0.000000e+00> : vector<8x896xf32>
    %9 = tpu.matmul %7, %8, %cst_7 {dimension_numbers = #tpu.dot_dimension_numbers<[1], [0], [0], [1], [0, 0, 1, 1], [], []>} : vector<8x768xbf16>, vector<768x896xbf16>, vector<8x896xf32> -> vector<8x896xf32>
    %c0_8 = arith.constant 0 : index
    %c0_9 = arith.constant 0 : index
    %10 = vector.load %arg5[%c0_8, %c0_9] : memref<1x896xf32, #tpu.memory_space<vmem>>, vector<1x896xf32>
    %11 = vector.broadcast %10 : vector<1x896xf32> to vector<8x896xf32>
    %12 = arith.addf %9, %11 : vector<8x896xf32>
    %13 = arith.mulf %12, %12 : vector<8x896xf32>
    %14 = arith.truncf %13 : vector<8x896xf32> to vector<8x896xbf16>
    %c0_10 = arith.constant 0 : index
    %c0_11 = arith.constant 0 : index
    %15 = vector.load %arg6[%c0_10, %c0_11] : memref<896x128xbf16, #tpu.memory_space<vmem>>, vector<896x128xbf16>
    %cst_12 = arith.constant dense<0.000000e+00> : vector<8x128xf32>
    %16 = tpu.matmul %14, %15, %cst_12 {dimension_numbers = #tpu.dot_dimension_numbers<[1], [0], [0], [1], [0, 0, 1, 1], [], []>} : vector<8x896xbf16>, vector<896x128xbf16>, vector<8x128xf32> -> vector<8x128xf32>
    %c0_13 = arith.constant 0 : index
    %c0_14 = arith.constant 0 : index
    %17 = vector.load %arg7[%c0_13, %c0_14] : memref<1x128xf32, #tpu.memory_space<vmem>>, vector<1x128xf32>
    %18 = vector.broadcast %17 : vector<1x128xf32> to vector<8x128xf32>
    %19 = arith.addf %16, %18 : vector<8x128xf32>
    %cst_15 = arith.constant 1.000000e+00 : f32
    %20 = vector.broadcast %cst_15 : f32 to vector<8x128xf32>
    %21 = arith.addf %20, %19 : vector<8x128xf32>
    %cst_16 = arith.constant 5.000000e-01 : f32
    %22 = vector.broadcast %cst_16 : f32 to vector<8x128xf32>
    %23 = arith.mulf %22, %19 : vector<8x128xf32>
    %24 = arith.mulf %23, %19 : vector<8x128xf32>
    %25 = arith.addf %21, %24 : vector<8x128xf32>
    %26 = tpu.iota {dimensions = array<i32: 1>} : vector<8x128xi32>
    %c10_i32 = arith.constant 10 : i32
    %27 = vector.broadcast %c10_i32 : i32 to vector<8x128xi32>
    %28 = arith.cmpi slt, %26, %27 : vector<8x128xi32>
    %cst_17 = arith.constant 0.000000e+00 : f32
    %29 = vector.broadcast %cst_17 : f32 to vector<8x128xf32>
    %30 = arith.select %28, %25, %29 : vector<8x128xi1>, vector<8x128xf32>
    %cst_18 = arith.constant dense<0.000000e+00> : vector<8xf32>
    %31 = vector.multi_reduction <add>, %30, %cst_18 [1] : vector<8x128xf32> to vector<8xf32>
    %32 = vector.shape_cast %31 : vector<8xf32> to vector<8x1xf32>
    %33 = tpu.reciprocal %32 : vector<8x1xf32> -> vector<8x1xf32>
    %34 = vector.broadcast %33 : vector<8x1xf32> to vector<8x128xf32>
    %35 = arith.mulf %30, %34 : vector<8x128xf32>
    %c0_19 = arith.constant 0 : index
    %c0_20 = arith.constant 0 : index
    %36 = vector.load %arg8[%c0_19, %c0_20] : memref<8x128xf32, #tpu.memory_space<vmem>>, vector<8x128xf32>
    tpu.vector_store %arg8[%c0_19, %c0_20], %35 {strides = array<i32>} : memref<8x128xf32, #tpu.memory_space<vmem>>, vector<8x128xf32>,
    return
  }
  func.func @transform_0(%arg0: i32) -> (i32, i32) {
    %c0_i32 = arith.constant 0 : i32
    %c0_i32_0 = arith.constant 0 : i32
    return %arg0, %c0_i32 : i32, i32
  }
  func.func @transform_1(%arg0: i32) -> (i32, i32) {
    %c0_i32 = arith.constant 0 : i32
    %c0_i32_0 = arith.constant 0 : i32
    %c0_i32_1 = arith.constant 0 : i32
    return %c0_i32, %c0_i32_0 : i32, i32
  }
  func.func @transform_2(%arg0: i32) -> (i32, i32) {
    %c0_i32 = arith.constant 0 : i32
    %c0_i32_0 = arith.constant 0 : i32
    %c0_i32_1 = arith.constant 0 : i32
    return %c0_i32, %c0_i32_0 : i32, i32
  }
  func.func @transform_3(%arg0: i32) -> (i32, i32) {
    %c0_i32 = arith.constant 0 : i32
    %c0_i32_0 = arith.constant 0 : i32
    %c0_i32_1 = arith.constant 0 : i32
    return %c0_i32, %c0_i32_0 : i32, i32
  }
  func.func @transform_4(%arg0: i32) -> (i32, i32) {
    %c0_i32 = arith.constant 0 : i32
    %c0_i32_0 = arith.constant 0 : i32
    %c0_i32_1 = arith.constant 0 : i32
    return %c0_i32, %c0_i32_0 : i32, i32
  }
  func.func @transform_5(%arg0: i32) -> (i32, i32) {
    %c0_i32 = arith.constant 0 : i32
    %c0_i32_0 = arith.constant 0 : i32
    %c0_i32_1 = arith.constant 0 : i32
    return %c0_i32, %c0_i32_0 : i32, i32
  }
  func.func @transform_6(%arg0: i32) -> (i32, i32) {
    %c0_i32 = arith.constant 0 : i32
    %c0_i32_0 = arith.constant 0 : i32
    %c0_i32_1 = arith.constant 0 : i32
    return %c0_i32, %c0_i32_0 : i32, i32
  }
  func.func @transform_7(%arg0: i32) -> (i32, i32) {
    %c0_i32 = arith.constant 0 : i32
    %c0_i32_0 = arith.constant 0 : i32
    return %arg0, %c0_i32 : i32, i32
  }
}

</mosaic_0001>

<bundles_post_ra>
// kernel: tpu_custom_call.1
= control target key start
LH: loop header
LB: loop body
LE: loop exit
PB: predicated region body
PF: predicated region fallthrough
CT: control target
= control target key end

     0   :  { %12 = vsyncpa [#allocation3], 0  ;;  %s8052_s0 = inlined_call_operand.hbm [shape: bf16[8,784], index: 0, kind: input, shape index: {}]   ;;  %s8053_s1 = inlined_call_operand.hbm [shape: bf16[784,768], index: 1, kind: input, shape index: {}]   ;;  %s8054_s2 = inlined_call_operand.hbm [shape: f32[1,768], index: 2, kind: input, shape index: {}]   ;;  %s8055_s3 = inlined_call_operand.hbm [shape: bf16[768,896], index: 3, kind: input, shape index: {}]   ;;  %s8056_s4 = inlined_call_operand.hbm [shape: f32[1,896], index: 4, kind: input, shape index: {}]   ;;  %s8057_s5 = inlined_call_operand.hbm [shape: bf16[896,128], index: 5, kind: input, shape index: {}]   ;;  %s8058_s6 = inlined_call_operand.hbm [shape: f32[1,128], index: 6, kind: input, shape index: {}]   ;;  %s8059_s7 = inlined_call_operand.hbm [shape: f32[8,128], index: 7, kind: output, shape index: {}]  }
   0x1   :  { %13 = vsyncpa [#allocation6], 0 }
   0x2   :  { %14 = vsyncpa [#allocation9], 0 }
   0x3   :  { %15 = vsyncpa [#allocation12], 0 }
   0x4   :  { %16 = vsyncpa [#allocation4], 0  ;;  %s7778_s24 = smov [#allocation5]  }
   0x5   :  { %s32_s25 = sshll.u32 %s7778_s24, 4  ;;  %s33_s25 = int_to_ptr.vmem [resolvable:$true] %s32_s25 }
   0x6   :  { %s7616_s26 = scalar_lea.vmem %s33_s25, 37632  ;;  %p7621_p1 = scmp.lt.s32.totalorder %s33_s25, %s33_s25 }
   0x7   :  { %p7617_p0 = scmp.ne.s32.totalorder %s33_s25, %s7616_s26  ;;  %p7622_p2 = scmp.lt.s32.totalorder %s7616_s26, %s7616_s26 }
   0x9   :  { %p7623_p3 = por %p7622_p2, %p7621_p1 }
   0xb   :  { %p7624_p4 = pnand %p7623_p3, %p7617_p0 }
   0xd   :  { %7627 = shalt.err (!%p7624_p4)
}
   0xe   :  { %s7779_s27 = smov 384   ;;  %s7780_s28 = smov 24  }
   0xf   :  { %38 = dma.hbm_to_vmem [thread:$0]  %s8053_s1, 37632, %s33_s25, [#allocation6], %s7779_s27, %s7779_s27, %s7780_s28  }
  0x10   :  { %s7781_s8 = smov [#allocation8]  }
  0x11   :  { %s54_s9 = sshll.u32 %s7781_s8, 4  ;;  %s55_s9 = int_to_ptr.vmem [resolvable:$true] %s54_s9 }
  0x12   :  { %s7636_s10 = scalar_lea.vmem %s55_s9, 43008  ;;  %p7641_p6 = scmp.lt.s32.totalorder %s55_s9, %s55_s9 }
  0x13   :  { %p7637_p5 = scmp.ne.s32.totalorder %s55_s9, %s7636_s10  ;;  %p7642_p7 = scmp.lt.s32.totalorder %s7636_s10, %s7636_s10 }
  0x15   :  { %p7643_p8 = por %p7642_p7, %p7641_p6 }
  0x17   :  { %p7644_p9 = pnand %p7643_p8, %p7637_p5 }
  0x19   :  { %7647 = shalt.err (!%p7644_p9)
}
  0x1a   :  { %s7782_s11 = smov 448   ;;  %s7783_s12 = smov 28  }
  0x1b   :  { %60 = dma.hbm_to_vmem [thread:$0]  %s8055_s3, 43008, %s55_s9, [#allocation9], %s7782_s11, %s7782_s11, %s7783_s12  }
  0x1c   :  { %s7784_s15 = smov [#allocation11]  }
  0x1d   :  { %s76_s16 = sshll.u32 %s7784_s15, 4  ;;  %s77_s16 = int_to_ptr.vmem [resolvable:$true] %s76_s16 }
  0x1e   :  { %s7656_s1 = scalar_lea.vmem %s77_s16, 7168  ;;  %p7661_p11 = scmp.lt.s32.totalorder %s77_s16, %s77_s16 }
  0x1f   :  { %p7657_p10 = scmp.ne.s32.totalorder %s77_s16, %s7656_s1  ;;  %p7662_p12 = scmp.lt.s32.totalorder %s7656_s1, %s7656_s1 }
  0x21   :  { %p7663_p13 = por %p7662_p12, %p7661_p11 }
  0x23   :  { %p7664_p0 = pnand %p7663_p13, %p7657_p10 }
  0x25   :  { %7667 = shalt.err (!%p7664_p0)
}
  0x26   :  { %s7785_s17 = smov 64   ;;  %s7786_s18 = smov 4  }
  0x27   :  { %82 = dma.hbm_to_vmem [thread:$0]  %s8057_s5, 7168, %s77_s16, [#allocation12], %s7785_s17, %s7785_s17, %s7786_s18  }
  0x28   :  { %s7787_s21 = smov [#allocation2]   ;;  %s7788_s3 = smov [#allocation7]  }
  0x29   :  { %s23_s22 = sshll.u32 %s7787_s21, 4  ;;  %s45_s23 = sshll.u32 %s7788_s3, 4  ;;  %s24_s22 = int_to_ptr.vmem [resolvable:$true] %s23_s22  ;;  %s46_s23 = int_to_ptr.vmem [resolvable:$true] %s45_s23 }
  0x2a   :  { %s7676_s24 = scalar_lea.vmem %s24_s22, 448  ;;  %p7681_p2 = scmp.lt.s32.totalorder %s24_s22, %s24_s22 }
  0x2b   :  { %p7677_p1 = scmp.ne.s32.totalorder %s24_s22, %s7676_s24  ;;  %p7682_p3 = scmp.lt.s32.totalorder %s7676_s24, %s7676_s24 }
  0x2d   :  { %p7683_p4 = por %p7682_p3, %p7681_p2 }
  0x2f   :  { %p7684_p5 = pnand %p7683_p4, %p7677_p1 }
  0x31   :  { %7687 = shalt.err (!%p7684_p5)
}
  0x32   :  { %26 = dma.hbm_to_vmem [thread:$0]  %s8052_s0, 448, %s24_s22, [#allocation3]  }
  0x33   :  { %s7696_s27 = scalar_lea.vmem %s46_s23, 96  ;;  %p7701_p7 = scmp.lt.s32.totalorder %s46_s23, %s46_s23 }
  0x34   :  { %p7697_p6 = scmp.ne.s32.totalorder %s46_s23, %s7696_s27  ;;  %p7702_p8 = scmp.lt.s32.totalorder %s7696_s27, %s7696_s27 }
  0x36   :  { %p7703_p9 = por %p7702_p8, %p7701_p7 }
  0x38   :  { %p7704_p10 = pnand %p7703_p9, %p7697_p6 }
  0x3a   :  { %7707 = shalt.err (!%p7704_p10)
}
  0x3b   :  { %48 = dma.hbm_to_vmem [thread:$0]  %s8054_s2, 96, %s46_s23, [#allocation6]  }
  0x3c   :  { %s7789_s29 = smov [#allocation10]   ;;  %s7790_s8 = smov [#allocation13]  }
  0x3d   :  { %s67_s30 = sshll.u32 %s7789_s29, 4  ;;  %s89_s9 = sshll.u32 %s7790_s8, 4  ;;  %s68_s30 = int_to_ptr.vmem [resolvable:$true] %s67_s30  ;;  %s90_s9 = int_to_ptr.vmem [resolvable:$true] %s89_s9 }
  0x3e   :  { %s7716_s10 = scalar_lea.vmem %s68_s30, 112  ;;  %s7720_s0 = scalar_lea.vmem %s68_s30, 128 }
  0x3f   :  { %p7717_p11 = scmp.ne.s32.totalorder %s68_s30, %s7716_s10  ;;  %p7721_p12 = scmp.lt.s32.totalorder %s68_s30, %s68_s30 }
  0x40   :  { %p7722_p13 = scmp.lt.s32.totalorder %s7720_s0, %s7716_s10 }
  0x42   :  { %p7723_p0 = por %p7722_p13, %p7721_p12 }
  0x44   :  { %p7724_p1 = pnand %p7723_p0, %p7717_p11 }
  0x46   :  { %7727 = shalt.err (!%p7724_p1)
}
  0x47   :  { %70 = dma.hbm_to_vmem [thread:$0]  %s8056_s4, 112, %s68_s30, [#allocation9]  }
  0x48   :  { %s7736_s13 = scalar_lea.vmem %s90_s9, 16  ;;  %s7740_s2 = scalar_lea.vmem %s90_s9, 32 }
  0x49   :  { %p7737_p2 = scmp.ne.s32.totalorder %s90_s9, %s7736_s13  ;;  %p7741_p3 = scmp.lt.s32.totalorder %s90_s9, %s90_s9 }
  0x4a   :  { %p7742_p4 = scmp.lt.s32.totalorder %s7740_s2, %s7736_s13 }
  0x4c   :  { %p7743_p5 = por %p7742_p4, %p7741_p3 }
  0x4e   :  { %p7744_p6 = pnand %p7743_p5, %p7737_p2 }
  0x50   :  { %7747 = shalt.err (!%p7744_p6)
}
  0x51   :  { %92 = dma.hbm_to_vmem [thread:$0]  %s8058_s6, 16, %s90_s9, [#allocation12]  }
  0x52   :  { %7768 = dma.done.wait [#allocation3], 448  }
  0x53   :  { %7769 = vsyncadd [#allocation3], 4294966848 }
  0x54   :  { %7770 = dma.done.wait [#allocation6], 37728  }
  0x55   :  { %7771 = vsyncadd [#allocation6], 4294929568 }
  0x56   :  { %7772 = dma.done.wait [#allocation9], 43120  }
  0x57   :  { %7773 = vsyncadd [#allocation9], 4294924176 }
  0x58   :  { %7774 = dma.done.wait [#allocation12], 7184  }
  0x59   :  { %7775 = vsyncadd [#allocation12], 4294960112  ;;  %v6620_v0 = vld [vmem:[#allocation5 + $0x154] ss:$24 sps:$4 sm:$0xff]   ;;  %v6624_v2 = vld [vmem:[#allocation5 + $0x150] ss:$24 sps:$4 sm:$0xff]  }
  0x5a   :  { %v6622_v1 = vld [vmem:[#allocation5 + $0x454] ss:$24 sps:$4 sm:$0xff]   ;;  %1943 = vmatprep.subr.bf16.mxu0 %v6620_v0  ;;  %v6625_v3 = vld [vmem:[#allocation5 + $0x450] ss:$24 sps:$4 sm:$0xff]   ;;  %v6626_v4 = vld [vmem:[#allocation5 + $0x124] ss:$24 sps:$4 sm:$0xff]  }
  0x5b   :  { %1984 = vmatprep.subr.bf16.mxu1 %v6622_v1  ;;  %1944 = vmatpush1.bf16.msra.mxu0 %v6624_v2  ;;  %v6628_v5 = vld [vmem:[#allocation5 + $0x424] ss:$24 sps:$4 sm:$0xff]   ;;  %v6630_v6 = vld [vmem:[#allocation5 + $0x120] ss:$24 sps:$4 sm:$0xff]   ;;  %v6632_v8 = vld [vmem:[#allocation5 + $0xf4] ss:$24 sps:$4 sm:$0xff]  }
  0x5c   :  { %1985 = vmatpush1.bf16.msra.mxu1 %v6625_v3  ;;  %1945 = vmatprep.subr.bf16.mxu0 %v6626_v4  ;;  %v6631_v7 = vld [vmem:[#allocation5 + $0x420] ss:$24 sps:$4 sm:$0xff]   ;;  %v6634_v9 = vld [vmem:[#allocation5 + $0x3f4] ss:$24 sps:$4 sm:$0xff]   ;;  %v6636_v10 = vld [vmem:[#allocation5 + $0xf0] ss:$24 sps:$4 sm:$0xff]  }
  0x5d   :  { %1986 = vmatprep.subr.bf16.mxu1 %v6628_v5  ;;  %v6637_v11 = vld [vmem:[#allocation5 + $0x3f0] ss:$24 sps:$4 sm:$0xff]   ;;  %v6638_v12 = vld [vmem:[#allocation5 + $0xc4] ss:$24 sps:$4 sm:$0xff]   ;;  %v6642_v14 = vld [vmem:[#allocation5 + $0xc0] ss:$24 sps:$4 sm:$0xff]  }
  0x5e   :  { %v6640_v13 = vld [vmem:[#allocation5 + $0x3c4] ss:$24 sps:$4 sm:$0xff]   ;;  %v6643_v15 = vld [vmem:[#allocation5 + $0x3c0] ss:$24 sps:$4 sm:$0xff]   ;;  %v6644_v16 = vld [vmem:[#allocation5 + $0x94] ss:$24 sps:$4 sm:$0xff]  }
  0x5f   :  { %1946 = vmatpush1.bf16.msra.mxu0 %v6630_v6  ;;  %v6646_v17 = vld [vmem:[#allocation5 + $0x394] ss:$24 sps:$4 sm:$0xff]   ;;  %v6648_v18 = vld [vmem:[#allocation5 + $0x90] ss:$24 sps:$4 sm:$0xff]   ;;  %v6650_v20 = vld [vmem:[#allocation5 + $0x64] ss:$24 sps:$4 sm:$0xff]  }
  0x60   :  { %1987 = vmatpush1.bf16.msra.mxu1 %v6631_v7  ;;  %1947 = vmatprep.subr.bf16.mxu0 %v6632_v8  ;;  %v6649_v19 = vld [vmem:[#allocation5 + $0x390] ss:$24 sps:$4 sm:$0xff]   ;;  %v6652_v21 = vld [vmem:[#allocation5 + $0x364] ss:$24 sps:$4 sm:$0xff]   ;;  %v6654_v22 = vld [vmem:[#allocation5 + $0x60] ss:$24 sps:$4 sm:$0xff]  }
  0x61   :  { %1988 = vmatprep.subr.bf16.mxu1 %v6634_v9  ;;  %v6655_v23 = vld [vmem:[#allocation5 + $0x360] ss:$24 sps:$4 sm:$0xff]   ;;  %v6656_v24 = vld [vmem:[#allocation5 + $0x34] ss:$24 sps:$4 sm:$0xff]   ;;  %v6660_v26 = vld [vmem:[#allocation5 + $0x30] ss:$24 sps:$4 sm:$0xff]  }
  0x62   :  { %v6658_v25 = vld [vmem:[#allocation5 + $0x334] ss:$24 sps:$4 sm:$0xff]   ;;  %v6661_v27 = vld [vmem:[#allocation5 + $0x330] ss:$24 sps:$4 sm:$0xff]   ;;  %v6662_v28 = vld [vmem:[#allocation5 + $0x4] ss:$24 sps:$4 sm:$0xff]  }
  0x63   :  { %1948 = vmatpush1.bf16.msra.mxu0 %v6636_v10  ;;  %v6664_v29 = vld [vmem:[#allocation5 + $0x304] ss:$24 sps:$4 sm:$0xff]   ;;  %v6666_v30 = vld [vmem:[#allocation5] ss:$24 sps:$4 sm:$0xff]   ;;  %v6668_v32 = vld [vmem:[#allocation5 + $0x2d4] ss:$24 sps:$4 sm:$0xff]  }
  0x64   :  { %1989 = vmatpush1.bf16.msra.mxu1 %v6637_v11  ;;  %1949 = vmatprep.subr.bf16.mxu0 %v6638_v12  ;;  %v6667_v31 = vld [vmem:[#allocation5 + $0x300] ss:$24 sps:$4 sm:$0xff]   ;;  %v6670_v33 = vld [vmem:[#allocation5 + $0x5d4] ss:$24 sps:$4 sm:$0xff]   ;;  %v6672_v34 = vld [vmem:[#allocation5 + $0x2d0] ss:$24 sps:$4 sm:$0xff]  }
  0x65   :  { %1990 = vmatprep.subr.bf16.mxu1 %v6640_v13  ;;  %v6673_v35 = vld [vmem:[#allocation5 + $0x5d0] ss:$24 sps:$4 sm:$0xff]   ;;  %v6674_v36 = vld [vmem:[#allocation5 + $0x2a4] ss:$24 sps:$4 sm:$0xff]   ;;  %v6678_v38 = vld [vmem:[#allocation5 + $0x2a0] ss:$24 sps:$4 sm:$0xff]  }
  0x66   :  { %v6676_v37 = vld [vmem:[#allocation5 + $0x5a4] ss:$24 sps:$4 sm:$0xff]   ;;  %v6679_v39 = vld [vmem:[#allocation5 + $0x5a0] ss:$24 sps:$4 sm:$0xff]   ;;  %v6680_v40 = vld [vmem:[#allocation5 + $0x274] ss:$24 sps:$4 sm:$0xff]  }
  0x67   :  { %1950 = vmatpush1.bf16.msra.mxu0 %v6642_v14  ;;  %v6682_v41 = vld [vmem:[#allocation5 + $0x574] ss:$24 sps:$4 sm:$0xff]   ;;  %v6684_v42 = vld [vmem:[#allocation5 + $0x270] ss:$24 sps:$4 sm:$0xff]   ;;  %v6686_v44 = vld [vmem:[#allocation5 + $0x244] ss:$24 sps:$4 sm:$0xff]  }
  0x68   :  { %1991 = vmatpush1.bf16.msra.mxu1 %v6643_v15  ;;  %1951 = vmatprep.subr.bf16.mxu0 %v6644_v16  ;;  %v6685_v43 = vld [vmem:[#allocation5 + $0x570] ss:$24 sps:$4 sm:$0xff]   ;;  %v6688_v45 = vld [vmem:[#allocation5 + $0x544] ss:$24 sps:$4 sm:$0xff]   ;;  %v6690_v49 = vld [vmem:[#allocation5 + $0x240] ss:$24 sps:$4 sm:$0xff]  }
  0x69   :  { %1992 = vmatprep.subr.bf16.mxu1 %v6646_v17  ;;  %v115_v46 = vld [vmem:[#allocation2] sm:$0xff]  ;;  %v116_v48 = vld [vmem:[#allocation2 + $0x8] sm:$0xff]  ;;  %v6691_v50 = vld [vmem:[#allocation5 + $0x540] ss:$24 sps:$4 sm:$0xff]   ;;  %v7791_v13 = vmov 0   ;;  %vm1939_vm0 = vcmask 130048  }
  0x6a   :  { %v7856_v47 = vcombine.high %v115_v46, %v115_v46  ;;  %v7858_v51 = vcombine.high %v116_v48, %v116_v48  ;;  %v6692_v52 = vld [vmem:[#allocation5 + $0x214] ss:$24 sps:$4 sm:$0xff]   ;;  %v6696_v54 = vld [vmem:[#allocation5 + $0x210] ss:$24 sps:$4 sm:$0xff]   ;;  %v6698_v56 = vld [vmem:[#allocation5 + $0x1e4] ss:$24 sps:$4 sm:$0xff]   ;;  %v7862_v6 = vcombine.low %v115_v46, %v115_v46  ;;  %v7864_v7 = vcombine.low %v116_v48, %v116_v48 }
  0x6b   :  { %1952 = vmatpush1.bf16.msra.mxu0 %v6648_v18  ;;  %v6694_v53 = vld [vmem:[#allocation5 + $0x514] ss:$24 sps:$4 sm:$0xff]   ;;  %v6697_v55 = vld [vmem:[#allocation5 + $0x510] ss:$24 sps:$4 sm:$0xff]   ;;  %v6700_v57 = vld [vmem:[#allocation5 + $0x4e4] ss:$24 sps:$4 sm:$0xff]  }
  0x6c   :  { %1993 = vmatpush1.bf16.msra.mxu1 %v6649_v19  ;;  %1953 = vmatprep.subr.bf16.mxu0 %v6650_v20  ;;  %v6702_v58 = vld [vmem:[#allocation5 + $0x1e0] ss:$24 sps:$4 sm:$0xff]   ;;  %v6704_v60 = vld [vmem:[#allocation5 + $0x1b4] ss:$24 sps:$4 sm:$0xff]   ;;  %v6708_v62 = vld [vmem:[#allocation5 + $0x1b0] ss:$24 sps:$4 sm:$0xff]  }
  0x6d   :  { %1994 = vmatprep.subr.bf16.mxu1 %v6652_v21  ;;  %1975 = vmatprep.mubr.bf16.mxu0 %v7856_v47  ;;  %v6703_v59 = vld [vmem:[#allocation5 + $0x4e0] ss:$24 sps:$4 sm:$0xff]   ;;  %v6706_v61 = vld [vmem:[#allocation5 + $0x4b4] ss:$24 sps:$4 sm:$0xff]   ;;  %v6709_v63 = vld [vmem:[#allocation5 + $0x4b0] ss:$24 sps:$4 sm:$0xff]  }
  0x6e   :  { %2016 = vmatprep.mubr.bf16.mxu1 %v7858_v51  ;;  %v6710_v0 = vld [vmem:[#allocation5 + $0x184] ss:$24 sps:$4 sm:$0xff]   ;;  %v6714_v2 = vld [vmem:[#allocation5 + $0x180] ss:$24 sps:$4 sm:$0xff]   ;;  %v6722_v4 = vld [vmem:[#allocation5 + $0x754] ss:$24 sps:$4 sm:$0xff]  }
  0x6f   :  { %1954 = vmatpush1.bf16.msra.mxu0 %v6654_v22  ;;  %v6712_v1 = vld [vmem:[#allocation5 + $0x484] ss:$24 sps:$4 sm:$0xff]   ;;  %v6715_v3 = vld [vmem:[#allocation5 + $0x480] ss:$24 sps:$4 sm:$0xff]   ;;  %v6720_v8 = vld [vmem:[#allocation5 + $0x750] ss:$24 sps:$4 sm:$0xff]  }
  0x70   :  { %1995 = vmatpush1.bf16.msra.mxu1 %v6655_v23  ;;  %1955 = vmatprep.subr.bf16.mxu0 %v6656_v24  ;;  %v6725_v5 = vld [vmem:[#allocation5 + $0x904] ss:$24 sps:$4 sm:$0xff]   ;;  %v6723_v9 = vld [vmem:[#allocation5 + $0x900] ss:$24 sps:$4 sm:$0xff]   ;;  %v6734_v14 = vld [vmem:[#allocation5 + $0x6f4] ss:$24 sps:$4 sm:$0xff]  }
  0x71   :  { %1996 = vmatprep.subr.bf16.mxu1 %v6658_v25  ;;  %v6728_v10 = vld [vmem:[#allocation5 + $0x724] ss:$24 sps:$4 sm:$0xff]   ;;  %v6726_v12 = vld [vmem:[#allocation5 + $0x720] ss:$24 sps:$4 sm:$0xff]   ;;  %v6732_v16 = vld [vmem:[#allocation5 + $0x6f0] ss:$24 sps:$4 sm:$0xff]  }
  0x72   :  { %v6731_v11 = vld [vmem:[#allocation5 + $0x15c] ss:$24 sps:$4 sm:$0xff]   ;;  %v6729_v15 = vld [vmem:[#allocation5 + $0x158] ss:$24 sps:$4 sm:$0xff]   ;;  %v6738_v18 = vld [vmem:[#allocation5 + $0x12c] ss:$24 sps:$4 sm:$0xff]  }
  0x73   :  { %1956 = vmatpush1.bf16.msra.mxu0 %v6660_v26  ;;  %v7869_v17 = vld [vmem:[#allocation2 + $0x18] ss:$0 sps:$4 sm:$0xff]   ;;  %v6736_v20 = vld [vmem:[#allocation5 + $0x128] ss:$24 sps:$4 sm:$0xff]   ;;  %v6747_v23 = vld [vmem:[#allocation5 + $0x694] ss:$24 sps:$4 sm:$0xff]  }
  0x74   :  { %1997 = vmatpush1.bf16.msra.mxu1 %v6661_v27  ;;  %1957 = vmatprep.subr.bf16.mxu0 %v6662_v28  ;;  %v6741_v19 = vld [vmem:[#allocation5 + $0x6c4] ss:$24 sps:$4 sm:$0xff]   ;;  %v6739_v21 = vld [vmem:[#allocation5 + $0x6c0] ss:$24 sps:$4 sm:$0xff]   ;;  %v6745_v25 = vld [vmem:[#allocation5 + $0x690] ss:$24 sps:$4 sm:$0xff]  }
  0x75   :  { %1998 = vmatprep.subr.bf16.mxu1 %v6664_v29  ;;  %v6744_v22 = vld [vmem:[#allocation5 + $0xfc] ss:$24 sps:$4 sm:$0xff]   ;;  %v6742_v24 = vld [vmem:[#allocation5 + $0xf8] ss:$24 sps:$4 sm:$0xff]   ;;  %v6750_v26 = vld [vmem:[#allocation5 + $0xcc] ss:$24 sps:$4 sm:$0xff]  }
  0x76   :  { %v6753_v27 = vld [vmem:[#allocation5 + $0x664] ss:$24 sps:$4 sm:$0xff]   ;;  %v6748_v28 = vld [vmem:[#allocation5 + $0xc8] ss:$24 sps:$4 sm:$0xff]   ;;  %vm7793_vm1 = vmmov 0   ;;  %s7794_s4 = smov [#allocation14]  }
  0x77   :  { %1958 = vmatpush1.bf16.msra.mxu0 %v6666_v30  ;;  %v6751_v29 = vld [vmem:[#allocation5 + $0x660] ss:$24 sps:$4 sm:$0xff]   ;;  %v6756_v30 = vld [vmem:[#allocation5 + $0x9c] ss:$24 sps:$4 sm:$0xff]   ;;  %s5733_s6 = sshll.u32 %s7794_s4, 4  ;;  %s5734_s6 = int_to_ptr.vmem [resolvable:$true] %s5733_s6 }
  0x78   :  { %1999 = vmatpush1.bf16.msra.mxu1 %v6667_v31  ;;  %1959 = vmatprep.subr.bf16.mxu0 %v6668_v32  ;;  %v6759_v31 = vld [vmem:[#allocation5 + $0x634] ss:$24 sps:$4 sm:$0xff]   ;;  %v6772_v46 = vld [vmem:[#allocation5 + $0x8] ss:$24 sps:$4 sm:$0xff]   ;;  %s7748_s16 = scalar_lea.vmem %s5734_s6, 128  ;;  %p7753_p8 = scmp.lt.s32.totalorder %s5734_s6, %s5734_s6 }
  0x79   :  { %2000 = vmatprep.subr.bf16.mxu1 %v6670_v33  ;;  %v7874_v32 = vld [vmem:[#allocation2 + $0x10] sm:$0xff]  ;;  %p7749_p7 = scmp.ne.s32.totalorder %s5734_s6, %s7748_s16  ;;  %p7754_p9 = scmp.lt.s32.totalorder %s7748_s16, %s7748_s16 }
  0x7a   :  { %v7878_v33 = vcombine.high %v7874_v32, %v7874_v32  ;;  %v6775_v48 = vld [vmem:[#allocation5 + $0x8a0] ss:$24 sps:$4 sm:$0xff]  }
  0x7b   :  { %1960 = vmatpush2.bf16.msra.mxu0 %v6672_v34  ;;  %v6754_v34 = vld [vmem:[#allocation5 + $0x98] ss:$24 sps:$4 sm:$0xff]   ;;  %p7755_p10 = por %p7754_p9, %p7753_p8 }
  0x7c   :  { %2001 = vmatpush2.bf16.msra.mxu1 %v6673_v35  ;;  %1961 = vmatprep.subr.bf16.mxu0 %v6674_v36  ;;  %v6757_v35 = vld [vmem:[#allocation5 + $0x630] ss:$24 sps:$4 sm:$0xff]   ;;  %v6762_v36 = vld [vmem:[#allocation5 + $0x6c] ss:$24 sps:$4 sm:$0xff]  }
  0x7d   :  { %2002 = vmatprep.subr.bf16.mxu1 %v6676_v37  ;;  %v6765_v37 = vld [vmem:[#allocation5 + $0x604] ss:$24 sps:$4 sm:$0xff]   ;;  %p7756_p11 = pnand %p7755_p10, %p7749_p7 }
  0x7f   :  { %1962 = vmatpush2.bf16.msra.mxu0 %v6678_v38  ;;  %v6760_v38 = vld [vmem:[#allocation5 + $0x68] ss:$24 sps:$4 sm:$0xff]  }
  0x80   :  { %2003 = vmatpush2.bf16.msra.mxu1 %v6679_v39  ;;  %1963 = vmatprep.subr.bf16.mxu0 %v6680_v40  ;;  %v6763_v39 = vld [vmem:[#allocation5 + $0x600] ss:$24 sps:$4 sm:$0xff]   ;;  %v6768_v40 = vld [vmem:[#allocation5 + $0x3c] ss:$24 sps:$4 sm:$0xff]  }
  0x81   :  { %2004 = vmatprep.subr.bf16.mxu1 %v6682_v41  ;;  %v6771_v41 = vld [vmem:[#allocation5 + $0x8d4] ss:$24 sps:$4 sm:$0xff]  }
  0x83   :  { %1964 = vmatpush2.bf16.msra.mxu0 %v6684_v42  ;;  %v6766_v42 = vld [vmem:[#allocation5 + $0x38] ss:$24 sps:$4 sm:$0xff]  }
  0x84   :  { %2005 = vmatpush2.bf16.msra.mxu1 %v6685_v43  ;;  %1965 = vmatprep.subr.bf16.mxu0 %v6686_v44  ;;  %v6769_v43 = vld [vmem:[#allocation5 + $0x8d0] ss:$24 sps:$4 sm:$0xff]   ;;  %v6774_v44 = vld [vmem:[#allocation5 + $0xc] ss:$24 sps:$4 sm:$0xff]  }
  0x85   :  { %2006 = vmatprep.subr.bf16.mxu1 %v6688_v45  ;;  %v6777_v45 = vld [vmem:[#allocation5 + $0x8a4] ss:$24 sps:$4 sm:$0xff]  }
  0x87   :  { %1966 = vmatpush2.bf16.msra.mxu0 %v6690_v49  ;;  %v6780_v49 = vld [vmem:[#allocation5 + $0x2dc] ss:$24 sps:$4 sm:$0xff]  }
  0x88   :  { %2007 = vmatpush2.bf16.msra.mxu1 %v6691_v50  ;;  %1967 = vmatprep.subr.bf16.mxu0 %v6692_v52  ;;  %v6783_v50 = vld [vmem:[#allocation5 + $0x874] ss:$24 sps:$4 sm:$0xff]   ;;  %v6778_v52 = vld [vmem:[#allocation5 + $0x2d8] ss:$24 sps:$4 sm:$0xff]  }
  0x89   :  { %2008 = vmatprep.subr.bf16.mxu1 %v6694_v53  ;;  %v6781_v53 = vld [vmem:[#allocation5 + $0x870] ss:$24 sps:$4 sm:$0xff]  }
  0x8b   :  { %1968 = vmatpush2.bf16.msra.mxu0 %v6696_v54  ;;  %v6786_v54 = vld [vmem:[#allocation5 + $0x2ac] ss:$24 sps:$4 sm:$0xff]  }
  0x8c   :  { %2009 = vmatpush2.bf16.msra.mxu1 %v6697_v55  ;;  %1969 = vmatprep.subr.bf16.mxu0 %v6698_v56  ;;  %v6789_v55 = vld [vmem:[#allocation5 + $0x844] ss:$24 sps:$4 sm:$0xff]   ;;  %v6784_v56 = vld [vmem:[#allocation5 + $0x2a8] ss:$24 sps:$4 sm:$0xff]  }
  0x8d   :  { %2010 = vmatprep.subr.bf16.mxu1 %v6700_v57  ;;  %v6787_v57 = vld [vmem:[#allocation5 + $0x840] ss:$24 sps:$4 sm:$0xff]  }
  0x8f   :  { %1970 = vmatpush2.bf16.msra.mxu0 %v6702_v58  ;;  %v6792_v58 = vld [vmem:[#allocation5 + $0x27c] ss:$24 sps:$4 sm:$0xff]  }
  0x90   :  { %2011 = vmatpush2.bf16.msra.mxu1 %v6703_v59  ;;  %1971 = vmatprep.subr.bf16.mxu0 %v6704_v60  ;;  %v6795_v59 = vld [vmem:[#allocation5 + $0x814] ss:$24 sps:$4 sm:$0xff]   ;;  %v6790_v60 = vld [vmem:[#allocation5 + $0x278] ss:$24 sps:$4 sm:$0xff]  }
  0x91   :  { %2012 = vmatprep.subr.bf16.mxu1 %v6706_v61  ;;  %v6793_v61 = vld [vmem:[#allocation5 + $0x810] ss:$24 sps:$4 sm:$0xff]  }
  0x93   :  { %1972 = vmatpush2.bf16.msra.mxu0 %v6708_v62  ;;  %v6798_v62 = vld [vmem:[#allocation5 + $0x24c] ss:$24 sps:$4 sm:$0xff]  }
  0x94   :  { %2013 = vmatpush2.bf16.msra.mxu1 %v6709_v63  ;;  %1973 = vmatprep.subr.bf16.mxu0 %v6710_v0  ;;  %v6801_v63 = vld [vmem:[#allocation5 + $0x7e4] ss:$24 sps:$4 sm:$0xff]   ;;  %v6796_v0 = vld [vmem:[#allocation5 + $0x248] ss:$24 sps:$4 sm:$0xff]  }
  0x95   :  { %2014 = vmatprep.subr.bf16.mxu1 %v6712_v1  ;;  %v6799_v1 = vld [vmem:[#allocation5 + $0x7e0] ss:$24 sps:$4 sm:$0xff]  }
  0x97   :  { %1974 = vmatpush2.bf16.msra.mxu0 %v6714_v2  ;;  %v6804_v2 = vld [vmem:[#allocation5 + $0x21c] ss:$24 sps:$4 sm:$0xff]  }
  0x98   :  { %2015 = vmatpush2.bf16.msra.mxu1 %v6715_v3  ;;  %2025 = vmatprep.subr.bf16.mxu0 %v6722_v4  ;;  %v6807_v3 = vld [vmem:[#allocation5 + $0x7b4] ss:$24 sps:$4 sm:$0xff]   ;;  %v6802_v4 = vld [vmem:[#allocation5 + $0x218] ss:$24 sps:$4 sm:$0xff]  }
  0x99   :  { %2080 = vmatprep.subr.bf16.mxu1 %v6725_v5  ;;  %v6805_v5 = vld [vmem:[#allocation5 + $0x7b0] ss:$24 sps:$4 sm:$0xff]  }
  0x9a   :  { %1976 = vmatmul.mubr.bf16.vlgmr.msra.gmra.mxu0 %v7862_v6 }
  0x9b   :  { %2017 = vmatmul.mubr.bf16.vlgmr.msra.gmra.mxu1 %v7864_v7  ;;  %2026 = vmatpush1.bf16.msra.mxu0 %v6720_v8  ;;  %v6810_v8 = vld [vmem:[#allocation5 + $0x1ec] ss:$24 sps:$4 sm:$0xff]  }
  0x9c   :  { %2081 = vmatpush1.bf16.msra.mxu1 %v6723_v9  ;;  %2027 = vmatprep.subr.bf16.mxu0 %v6728_v10  ;;  %v6813_v9 = vld [vmem:[#allocation5 + $0x784] ss:$24 sps:$4 sm:$0xff]   ;;  %v6808_v10 = vld [vmem:[#allocation5 + $0x1e8] ss:$24 sps:$4 sm:$0xff]  }
  0x9d   :  { %2098 = vmatprep.mubr.bf16.mxu1 %v7791_v13  ;;  %2107 = vmatprep.subr.bf16.mxu1 %v6731_v11  ;;  %v6811_v11 = vld [vmem:[#allocation5 + $0x780] ss:$24 sps:$4 sm:$0xff]  }
  0x9e   :  { %2057 = vmatprep.mubr.bf16.mxu0 %v7878_v33 }
  0x9f   :  { %2028 = vmatpush1.bf16.msra.mxu0 %v6726_v12  ;;  %v6818_v12 = vld [vmem:[#allocation5 + $0x1bc] ss:$24 sps:$4 sm:$0xff]  }
  0xa0   :  { %2029 = vmatprep.subr.bf16.mxu0 %v6734_v14  ;;  %v6821_v14 = vld [vmem:[#allocation5 + $0x45c] ss:$24 sps:$4 sm:$0xff]  }
  0xa3   :  { %6046 = vmatmul.mubr.msk.bf16.vlgmr.msra.gmra.mxu1 %vm1939_vm0, %v7869_v17  ;;  %2030 = vmatpush1.bf16.msra.mxu0 %v6732_v16  ;;  %v6816_v16 = vld [vmem:[#allocation5 + $0x1b8] ss:$24 sps:$4 sm:$0xff]  }
  0xa4   :  { %2108 = vmatpush1.bf16.msra.mxu1 %v6729_v15  ;;  %2031 = vmatprep.subr.bf16.mxu0 %v6741_v19  ;;  %v7883_v15 = vcombine.low %v7874_v32, %v7874_v32  ;;  %v6824_v19 = vld [vmem:[#allocation5 + $0x18c] ss:$24 sps:$4 sm:$0xff]   ;;  %v6845_v32 = vld [vmem:[#allocation5 + $0x39c] ss:$24 sps:$4 sm:$0xff]  }
  0xa5   :  { %2109 = vmatprep.subr.bf16.mxu1 %v6738_v18  ;;  %2139 = vmatprep.mubr.bf16.mxu1 %v7856_v47  ;;  %v6819_v18 = vld [vmem:[#allocation5 + $0x458] ss:$24 sps:$4 sm:$0xff]  }
  0xa7   :  { %2032 = vmatpush1.bf16.msra.mxu0 %v6739_v21  ;;  %v6822_v21 = vld [vmem:[#allocation5 + $0x188] ss:$24 sps:$4 sm:$0xff]  }
  0xa8   :  { %2110 = vmatpush1.bf16.msra.mxu1 %v6736_v20  ;;  %2033 = vmatprep.subr.bf16.mxu0 %v6747_v23  ;;  %v6827_v20 = vld [vmem:[#allocation5 + $0x42c] ss:$24 sps:$4 sm:$0xff]   ;;  %v6830_v23 = vld [vmem:[#allocation5 + $0x75c] ss:$24 sps:$4 sm:$0xff]  }
  0xa9   :  { %2111 = vmatprep.subr.bf16.mxu1 %v6744_v22  ;;  %v6825_v22 = vld [vmem:[#allocation5 + $0x428] ss:$24 sps:$4 sm:$0xff]  }
  0xab   :  { %2034 = vmatpush1.bf16.msra.mxu0 %v6745_v25  ;;  %v6828_v25 = vld [vmem:[#allocation5 + $0x758] ss:$24 sps:$4 sm:$0xff]  }
  0xac   :  { %2112 = vmatpush1.bf16.msra.mxu1 %v6742_v24  ;;  %2035 = vmatprep.subr.bf16.mxu0 %v6753_v27  ;;  %v6833_v24 = vld [vmem:[#allocation5 + $0x3fc] ss:$24 sps:$4 sm:$0xff]   ;;  %v6836_v27 = vld [vmem:[#allocation5 + $0x72c] ss:$24 sps:$4 sm:$0xff]  }
  0xad   :  { %2113 = vmatprep.subr.bf16.mxu1 %v6750_v26  ;;  %v6831_v26 = vld [vmem:[#allocation5 + $0x3f8] ss:$24 sps:$4 sm:$0xff]  }
  0xaf   :  { %2036 = vmatpush1.bf16.msra.mxu0 %v6751_v29  ;;  %v6834_v29 = vld [vmem:[#allocation5 + $0x728] ss:$24 sps:$4 sm:$0xff]  }
  0xb0   :  { %2114 = vmatpush1.bf16.msra.mxu1 %v6748_v28  ;;  %2037 = vmatprep.subr.bf16.mxu0 %v6759_v31  ;;  %v6839_v28 = vld [vmem:[#allocation5 + $0x3cc] ss:$24 sps:$4 sm:$0xff]   ;;  %v6842_v31 = vld [vmem:[#allocation5 + $0x6fc] ss:$24 sps:$4 sm:$0xff]  }
  0xb1   :  { %2115 = vmatprep.subr.bf16.mxu1 %v6756_v30  ;;  %v6837_v30 = vld [vmem:[#allocation5 + $0x3c8] ss:$24 sps:$4 sm:$0xff]  }
  0xb3   :  { %2038 = vmatpush1.bf16.msra.mxu0 %v6757_v35  ;;  %v6843_v35 = vld [vmem:[#allocation5 + $0x398] ss:$24 sps:$4 sm:$0xff]  }
  0xb4   :  { %2116 = vmatpush1.bf16.msra.mxu1 %v6754_v34  ;;  %2039 = vmatprep.subr.bf16.mxu0 %v6765_v37  ;;  %v6840_v34 = vld [vmem:[#allocation5 + $0x6f8] ss:$24 sps:$4 sm:$0xff]   ;;  %v6851_v37 = vld [vmem:[#allocation5 + $0x36c] ss:$24 sps:$4 sm:$0xff]  }
  0xb5   :  { %2117 = vmatprep.subr.bf16.mxu1 %v6762_v36  ;;  %v6848_v36 = vld [vmem:[#allocation5 + $0x6cc] ss:$24 sps:$4 sm:$0xff]  }
  0xb7   :  { %2040 = vmatpush1.bf16.msra.mxu0 %v6763_v39  ;;  %v6849_v39 = vld [vmem:[#allocation5 + $0x368] ss:$24 sps:$4 sm:$0xff]  }
  0xb8   :  { %2118 = vmatpush1.bf16.msra.mxu1 %v6760_v38  ;;  %2041 = vmatprep.subr.bf16.mxu0 %v6771_v41  ;;  %v6846_v38 = vld [vmem:[#allocation5 + $0x6c8] ss:$24 sps:$4 sm:$0xff]   ;;  %v6857_v41 = vld [vmem:[#allocation5 + $0x33c] ss:$24 sps:$4 sm:$0xff]  }
  0xb9   :  { %2119 = vmatprep.subr.bf16.mxu1 %v6768_v40  ;;  %v6854_v40 = vld [vmem:[#allocation5 + $0x69c] ss:$24 sps:$4 sm:$0xff]  }
  0xbb   :  { %2042 = vmatpush2.bf16.msra.mxu0 %v6769_v43  ;;  %v6855_v43 = vld [vmem:[#allocation5 + $0x338] ss:$24 sps:$4 sm:$0xff]  }
  0xbc   :  { %2120 = vmatpush1.bf16.msra.mxu1 %v6766_v42  ;;  %2043 = vmatprep.subr.bf16.mxu0 %v6777_v45  ;;  %v6852_v42 = vld [vmem:[#allocation5 + $0x698] ss:$24 sps:$4 sm:$0xff]   ;;  %v6863_v45 = vld [vmem:[#allocation5 + $0x30c] ss:$24 sps:$4 sm:$0xff]  }
  0xbd   :  { %2121 = vmatprep.subr.bf16.mxu1 %v6774_v44  ;;  %v6860_v44 = vld [vmem:[#allocation5 + $0x66c] ss:$24 sps:$4 sm:$0xff]  }
  0xbf   :  { %2044 = vmatpush2.bf16.msra.mxu0 %v6775_v48  ;;  %v6861_v48 = vld [vmem:[#allocation5 + $0x308] ss:$24 sps:$4 sm:$0xff]  }
  0xc0   :  { %2122 = vmatpush1.bf16.msra.mxu1 %v6772_v46  ;;  %2045 = vmatprep.subr.bf16.mxu0 %v6783_v50  ;;  %v6858_v46 = vld [vmem:[#allocation5 + $0x668] ss:$24 sps:$4 sm:$0xff]   ;;  %v6869_v50 = vld [vmem:[#allocation5 + $0x5dc] ss:$24 sps:$4 sm:$0xff]  }
  0xc1   :  { %2123 = vmatprep.subr.bf16.mxu1 %v6780_v49  ;;  %v6866_v49 = vld [vmem:[#allocation5 + $0x63c] ss:$24 sps:$4 sm:$0xff]  }
  0xc3   :  { %2046 = vmatpush2.bf16.msra.mxu0 %v6781_v53  ;;  %v6867_v53 = vld [vmem:[#allocation5 + $0x5d8] ss:$24 sps:$4 sm:$0xff]  }
  0xc4   :  { %2124 = vmatpush2.bf16.msra.mxu1 %v6778_v52  ;;  %2047 = vmatprep.subr.bf16.mxu0 %v6789_v55  ;;  %v6864_v52 = vld [vmem:[#allocation5 + $0x638] ss:$24 sps:$4 sm:$0xff]   ;;  %v6875_v55 = vld [vmem:[#allocation5 + $0x5ac] ss:$24 sps:$4 sm:$0xff]  }
  0xc5   :  { %2125 = vmatprep.subr.bf16.mxu1 %v6786_v54  ;;  %v6872_v54 = vld [vmem:[#allocation5 + $0x60c] ss:$24 sps:$4 sm:$0xff]  }
  0xc7   :  { %2048 = vmatpush2.bf16.msra.mxu0 %v6787_v57  ;;  %v6873_v57 = vld [vmem:[#allocation5 + $0x5a8] ss:$24 sps:$4 sm:$0xff]  }
  0xc8   :  { %2126 = vmatpush2.bf16.msra.mxu1 %v6784_v56  ;;  %2049 = vmatprep.subr.bf16.mxu0 %v6795_v59  ;;  %v6870_v56 = vld [vmem:[#allocation5 + $0x608] ss:$24 sps:$4 sm:$0xff]   ;;  %v6881_v59 = vld [vmem:[#allocation5 + $0x57c] ss:$24 sps:$4 sm:$0xff]  }
  0xc9   :  { %2127 = vmatprep.subr.bf16.mxu1 %v6792_v58  ;;  %v6878_v58 = vld [vmem:[#allocation5 + $0x8dc] ss:$24 sps:$4 sm:$0xff]  }
  0xcb   :  { %2050 = vmatpush2.bf16.msra.mxu0 %v6793_v61  ;;  %v6879_v61 = vld [vmem:[#allocation5 + $0x578] ss:$24 sps:$4 sm:$0xff]  }
  0xcc   :  { %2128 = vmatpush2.bf16.msra.mxu1 %v6790_v60  ;;  %2051 = vmatprep.subr.bf16.mxu0 %v6801_v63  ;;  %v6876_v60 = vld [vmem:[#allocation5 + $0x8d8] ss:$24 sps:$4 sm:$0xff]   ;;  %v6887_v63 = vld [vmem:[#allocation5 + $0x54c] ss:$24 sps:$4 sm:$0xff]  }
  0xcd   :  { %2129 = vmatprep.subr.bf16.mxu1 %v6798_v62  ;;  %v6884_v62 = vld [vmem:[#allocation5 + $0x8ac] ss:$24 sps:$4 sm:$0xff]  }
  0xcf   :  { %2052 = vmatpush2.bf16.msra.mxu0 %v6799_v1  ;;  %v6885_v1 = vld [vmem:[#allocation5 + $0x548] ss:$24 sps:$4 sm:$0xff]  }
  0xd0   :  { %2130 = vmatpush2.bf16.msra.mxu1 %v6796_v0  ;;  %2053 = vmatprep.subr.bf16.mxu0 %v6807_v3  ;;  %v6882_v0 = vld [vmem:[#allocation5 + $0x8a8] ss:$24 sps:$4 sm:$0xff]   ;;  %v6893_v3 = vld [vmem:[#allocation5 + $0x51c] ss:$24 sps:$4 sm:$0xff]  }
  0xd1   :  { %2131 = vmatprep.subr.bf16.mxu1 %v6804_v2  ;;  %v6890_v2 = vld [vmem:[#allocation5 + $0x87c] ss:$24 sps:$4 sm:$0xff]  }
  0xd3   :  { %2054 = vmatpush2.bf16.msra.mxu0 %v6805_v5  ;;  %v6891_v5 = vld [vmem:[#allocation5 + $0x518] ss:$24 sps:$4 sm:$0xff]  }
  0xd4   :  { %2132 = vmatpush2.bf16.msra.mxu1 %v6802_v4  ;;  %2055 = vmatprep.subr.bf16.mxu0 %v6813_v9  ;;  %v6888_v4 = vld [vmem:[#allocation5 + $0x878] ss:$24 sps:$4 sm:$0xff]   ;;  %v6899_v9 = vld [vmem:[#allocation5 + $0x4ec] ss:$24 sps:$4 sm:$0xff]  }
  0xd5   :  { %2133 = vmatprep.subr.bf16.mxu1 %v6810_v8  ;;  %v6896_v8 = vld [vmem:[#allocation5 + $0x84c] ss:$24 sps:$4 sm:$0xff]  }
  0xd7   :  { %2056 = vmatpush2.bf16.msra.mxu0 %v6811_v11  ;;  %v6897_v11 = vld [vmem:[#allocation5 + $0x4e8] ss:$24 sps:$4 sm:$0xff]  }
  0xd8   :  { %2134 = vmatpush2.bf16.msra.mxu1 %v6808_v10  ;;  %2148 = vmatprep.subr.bf16.mxu0 %v6821_v14  ;;  %v6894_v10 = vld [vmem:[#allocation5 + $0x848] ss:$24 sps:$4 sm:$0xff]   ;;  %v6905_v14 = vld [vmem:[#allocation5 + $0x4bc] ss:$24 sps:$4 sm:$0xff]  }
  0xd9   :  { %2135 = vmatprep.subr.bf16.mxu1 %v6818_v12  ;;  %v6902_v12 = vld [vmem:[#allocation5 + $0x81c] ss:$24 sps:$4 sm:$0xff]  }
  0xda   :  { %2058 = vmatmul.mubr.bf16.vlgmr.msra.gmra.mxu0 %v7883_v15 }
  0xdb   :  { %2149 = vmatpush1.bf16.msra.mxu0 %v6819_v18  ;;  %2180 = vmatprep.mubr.bf16.mxu0 %v7858_v51  ;;  %v6903_v18 = vld [vmem:[#allocation5 + $0x4b8] ss:$24 sps:$4 sm:$0xff]  }
  0xdc   :  { %2136 = vmatpush2.bf16.msra.mxu1 %v6816_v16  ;;  %2150 = vmatprep.subr.bf16.mxu0 %v6827_v20  ;;  %v6900_v16 = vld [vmem:[#allocation5 + $0x818] ss:$24 sps:$4 sm:$0xff]   ;;  %v6911_v20 = vld [vmem:[#allocation5 + $0x48c] ss:$24 sps:$4 sm:$0xff]  }
  0xdd   :  { %2137 = vmatprep.subr.bf16.mxu1 %v6824_v19  ;;  %v6908_v19 = vld [vmem:[#allocation5 + $0x7ec] ss:$24 sps:$4 sm:$0xff]  }
  0xdf   :  { %2151 = vmatpush1.bf16.msra.mxu0 %v6825_v22  ;;  %v6909_v22 = vld [vmem:[#allocation5 + $0x488] ss:$24 sps:$4 sm:$0xff]  }
  0xe0   :  { %2138 = vmatpush2.bf16.msra.mxu1 %v6822_v21  ;;  %2152 = vmatprep.subr.bf16.mxu0 %v6833_v24  ;;  %v6906_v21 = vld [vmem:[#allocation5 + $0x7e8] ss:$24 sps:$4 sm:$0xff]   ;;  %v6917_v24 = vld [vmem:[#allocation5 + $0x164] ss:$24 sps:$4 sm:$0xff]  }
  0xe1   :  { %2189 = vmatprep.subr.bf16.mxu1 %v6830_v23  ;;  %v6914_v23 = vld [vmem:[#allocation5 + $0x7bc] ss:$24 sps:$4 sm:$0xff]  }
  0xe3   :  { %2140 = vmatmul.mubr.bf16.vlgmr.msra.gmra.mxu1 %v7862_v6  ;;  %2153 = vmatpush1.bf16.msra.mxu0 %v6831_v26  ;;  %v6915_v26 = vld [vmem:[#allocation5 + $0x160] ss:$24 sps:$4 sm:$0xff]  }
  0xe4   :  { %2190 = vmatpush1.bf16.msra.mxu1 %v6828_v25  ;;  %2154 = vmatprep.subr.bf16.mxu0 %v6839_v28  ;;  %v6912_v25 = vld [vmem:[#allocation5 + $0x7b8] ss:$24 sps:$4 sm:$0xff]   ;;  %v6923_v28 = vld [vmem:[#allocation5 + $0x134] ss:$24 sps:$4 sm:$0xff]  }
  0xe5   :  { %2191 = vmatprep.subr.bf16.mxu1 %v6836_v27  ;;  %2221 = vmatprep.mubr.bf16.mxu1 %v7878_v33  ;;  %v6920_v27 = vld [vmem:[#allocation5 + $0x78c] ss:$24 sps:$4 sm:$0xff]  }
  0xe7   :  { %2155 = vmatpush1.bf16.msra.mxu0 %v6837_v30  ;;  %v6921_v30 = vld [vmem:[#allocation5 + $0x130] ss:$24 sps:$4 sm:$0xff]  }
  0xe8   :  { %2192 = vmatpush1.bf16.msra.mxu1 %v6834_v29  ;;  %2156 = vmatprep.subr.bf16.mxu0 %v6845_v32  ;;  %v6918_v29 = vld [vmem:[#allocation5 + $0x788] ss:$24 sps:$4 sm:$0xff]   ;;  %v6929_v32 = vld [vmem:[#allocation5 + $0x90c] ss:$24 sps:$4 sm:$0xff]  }
  0xe9   :  { %2193 = vmatprep.subr.bf16.mxu1 %v6842_v31  ;;  %v6926_v31 = vld [vmem:[#allocation5 + $0x104] ss:$24 sps:$4 sm:$0xff]  }
  0xeb   :  { %2157 = vmatpush1.bf16.msra.mxu0 %v6843_v35  ;;  %v6927_v35 = vld [vmem:[#allocation5 + $0x908] ss:$24 sps:$4 sm:$0xff]  }
  0xec   :  { %2194 = vmatpush1.bf16.msra.mxu1 %v6840_v34  ;;  %2158 = vmatprep.subr.bf16.mxu0 %v6851_v37  ;;  %v6924_v34 = vld [vmem:[#allocation5 + $0x100] ss:$24 sps:$4 sm:$0xff]   ;;  %v6935_v37 = vld [vmem:[#allocation5 + $0x464] ss:$24 sps:$4 sm:$0xff]  }
  0xed   :  { %2195 = vmatprep.subr.bf16.mxu1 %v6848_v36  ;;  %v6932_v36 = vld [vmem:[#allocation5 + $0xd4] ss:$24 sps:$4 sm:$0xff]  }
  0xef   :  { %2159 = vmatpush1.bf16.msra.mxu0 %v6849_v39  ;;  %v6938_v39 = vld [vmem:[#allocation5 + $0xa4] ss:$24 sps:$4 sm:$0xff]  }
  0xf0   :  { %2196 = vmatpush1.bf16.msra.mxu1 %v6846_v38  ;;  %2160 = vmatprep.subr.bf16.mxu0 %v6857_v41  ;;  %v6930_v38 = vld [vmem:[#allocation5 + $0xd0] ss:$24 sps:$4 sm:$0xff]   ;;  %v6941_v41 = vld [vmem:[#allocation5 + $0x434] ss:$24 sps:$4 sm:$0xff]  }
  0xf1   :  { %2197 = vmatprep.subr.bf16.mxu1 %v6854_v40  ;;  %v6936_v40 = vld [vmem:[#allocation5 + $0xa0] ss:$24 sps:$4 sm:$0xff]  }
  0xf3   :  { %2161 = vmatpush1.bf16.msra.mxu0 %v6855_v43  ;;  %v6939_v43 = vld [vmem:[#allocation5 + $0x430] ss:$24 sps:$4 sm:$0xff]  }
  0xf4   :  { %2198 = vmatpush1.bf16.msra.mxu1 %v6852_v42  ;;  %2162 = vmatprep.subr.bf16.mxu0 %v6863_v45  ;;  %v6944_v42 = vld [vmem:[#allocation5 + $0x74] ss:$24 sps:$4 sm:$0xff]   ;;  %v6947_v45 = vld [vmem:[#allocation5 + $0x404] ss:$24 sps:$4 sm:$0xff]  }
  0xf5   :  { %2199 = vmatprep.subr.bf16.mxu1 %v6860_v44  ;;  %v6942_v44 = vld [vmem:[#allocation5 + $0x70] ss:$24 sps:$4 sm:$0xff]  }
  0xf7   :  { %2163 = vmatpush1.bf16.msra.mxu0 %v6861_v48  ;;  %v6945_v48 = vld [vmem:[#allocation5 + $0x400] ss:$24 sps:$4 sm:$0xff]  }
  0xf8   :  { %2200 = vmatpush1.bf16.msra.mxu1 %v6858_v46  ;;  %2164 = vmatprep.subr.bf16.mxu0 %v6869_v50  ;;  %v6950_v46 = vld [vmem:[#allocation5 + $0x44] ss:$24 sps:$4 sm:$0xff]   ;;  %v6953_v50 = vld [vmem:[#allocation5 + $0x3d4] ss:$24 sps:$4 sm:$0xff]  }
  0xf9   :  { %2201 = vmatprep.subr.bf16.mxu1 %v6866_v49  ;;  %v6948_v49 = vld [vmem:[#allocation5 + $0x40] ss:$24 sps:$4 sm:$0xff]  }
  0xfb   :  { %2165 = vmatpush2.bf16.msra.mxu0 %v6867_v53  ;;  %v6954_v53 = vld [vmem:[#allocation5 + $0x10] ss:$24 sps:$4 sm:$0xff]  }
  0xfc   :  { %2202 = vmatpush1.bf16.msra.mxu1 %v6864_v52  ;;  %2166 = vmatprep.subr.bf16.mxu0 %v6875_v55  ;;  %v6956_v52 = vld [vmem:[#allocation5 + $0x14] ss:$24 sps:$4 sm:$0xff]   ;;  %v6962_v55 = vld [vmem:[#allocation5 + $0x2e4] ss:$24 sps:$4 sm:$0xff]  }
  0xfd   :  { %2203 = vmatprep.subr.bf16.mxu1 %v6872_v54  ;;  %v6959_v54 = vld [vmem:[#allocation5 + $0x3a4] ss:$24 sps:$4 sm:$0xff]  }
  0xff   :  { %2167 = vmatpush2.bf16.msra.mxu0 %v6873_v57  ;;  %v6965_v57 = vld [vmem:[#allocation5 + $0x374] ss:$24 sps:$4 sm:$0xff]  }
 0x100   :  { %2204 = vmatpush1.bf16.msra.mxu1 %v6870_v56  ;;  %2168 = vmatprep.subr.bf16.mxu0 %v6881_v59  ;;  %v6957_v56 = vld [vmem:[#allocation5 + $0x3a0] ss:$24 sps:$4 sm:$0xff]   ;;  %v6963_v59 = vld [vmem:[#allocation5 + $0x370] ss:$24 sps:$4 sm:$0xff]  }
 0x101   :  { %2205 = vmatprep.subr.bf16.mxu1 %v6878_v58  ;;  %v6968_v58 = vld [vmem:[#allocation5 + $0x2b4] ss:$24 sps:$4 sm:$0xff]  }
 0x103   :  { %2169 = vmatpush2.bf16.msra.mxu0 %v6879_v61  ;;  %v6971_v61 = vld [vmem:[#allocation5 + $0x344] ss:$24 sps:$4 sm:$0xff]  }
 0x104   :  { %2206 = vmatpush2.bf16.msra.mxu1 %v6876_v60  ;;  %2170 = vmatprep.subr.bf16.mxu0 %v6887_v63  ;;  %v6966_v60 = vld [vmem:[#allocation5 + $0x2b0] ss:$24 sps:$4 sm:$0xff]   ;;  %v6969_v63 = vld [vmem:[#allocation5 + $0x340] ss:$24 sps:$4 sm:$0xff]  }
 0x105   :  { %2207 = vmatprep.subr.bf16.mxu1 %v6884_v62  ;;  %v6974_v62 = vld [vmem:[#allocation5 + $0x284] ss:$24 sps:$4 sm:$0xff]  }
 0x107   :  { %2171 = vmatpush2.bf16.msra.mxu0 %v6885_v1  ;;  %v6977_v1 = vld [vmem:[#allocation5 + $0x314] ss:$24 sps:$4 sm:$0xff]  }
 0x108   :  { %2208 = vmatpush2.bf16.msra.mxu1 %v6882_v0  ;;  %2172 = vmatprep.subr.bf16.mxu0 %v6893_v3  ;;  %v6972_v0 = vld [vmem:[#allocation5 + $0x280] ss:$24 sps:$4 sm:$0xff]   ;;  %v6975_v3 = vld [vmem:[#allocation5 + $0x310] ss:$24 sps:$4 sm:$0xff]  }
 0x109   :  { %2209 = vmatprep.subr.bf16.mxu1 %v6890_v2  ;;  %v6980_v2 = vld [vmem:[#allocation5 + $0x254] ss:$24 sps:$4 sm:$0xff]  }
 0x10b   :  { %2173 = vmatpush2.bf16.msra.mxu0 %v6891_v5  ;;  %v6983_v5 = vld [vmem:[#allocation5 + $0x5e4] ss:$24 sps:$4 sm:$0xff]  }
 0x10c   :  { %2210 = vmatpush2.bf16.msra.mxu1 %v6888_v4  ;;  %2174 = vmatprep.subr.bf16.mxu0 %v6899_v9  ;;  %v6978_v4 = vld [vmem:[#allocation5 + $0x250] ss:$24 sps:$4 sm:$0xff]   ;;  %v6981_v9 = vld [vmem:[#allocation5 + $0x5e0] ss:$24 sps:$4 sm:$0xff]  }
 0x10d   :  { %2211 = vmatprep.subr.bf16.mxu1 %v6896_v8  ;;  %v6986_v8 = vld [vmem:[#allocation5 + $0x224] ss:$24 sps:$4 sm:$0xff]  }
 0x10f   :  { %2175 = vmatpush2.bf16.msra.mxu0 %v6897_v11  ;;  %v6989_v11 = vld [vmem:[#allocation5 + $0x5b4] ss:$24 sps:$4 sm:$0xff]  }
 0x110   :  { %2212 = vmatpush2.bf16.msra.mxu1 %v6894_v10  ;;  %2176 = vmatprep.subr.bf16.mxu0 %v6905_v14  ;;  %v6984_v10 = vld [vmem:[#allocation5 + $0x220] ss:$24 sps:$4 sm:$0xff]   ;;  %v6987_v14 = vld [vmem:[#allocation5 + $0x5b0] ss:$24 sps:$4 sm:$0xff]  }
 0x111   :  { %2213 = vmatprep.subr.bf16.mxu1 %v6902_v12  ;;  %v6992_v12 = vld [vmem:[#allocation5 + $0x1f4] ss:$24 sps:$4 sm:$0xff]  }
 0x113   :  { %2177 = vmatpush2.bf16.msra.mxu0 %v6903_v18  ;;  %v6995_v18 = vld [vmem:[#allocation5 + $0x584] ss:$24 sps:$4 sm:$0xff]  }
 0x114   :  { %2214 = vmatpush2.bf16.msra.mxu1 %v6900_v16  ;;  %2178 = vmatprep.subr.bf16.mxu0 %v6911_v20  ;;  %v6990_v16 = vld [vmem:[#allocation5 + $0x1f0] ss:$24 sps:$4 sm:$0xff]   ;;  %v415_v20 = vlaneseq }
 0x115   :  { %2215 = vmatprep.subr.bf16.mxu1 %v6908_v19  ;;  %v6998_v19 = vld [vmem:[#allocation5 + $0x1c4] ss:$24 sps:$4 sm:$0xff]  }
 0x117   :  { %2179 = vmatpush2.bf16.msra.mxu0 %v6909_v22  ;;  %v6996_v22 = vld [vmem:[#allocation5 + $0x1c0] ss:$24 sps:$4 sm:$0xff]  }
 0x118   :  { %2216 = vmatpush2.bf16.msra.mxu1 %v6906_v21  ;;  %2271 = vmatprep.subr.bf16.mxu0 %v6917_v24  ;;  %v6993_v21 = vld [vmem:[#allocation5 + $0x580] ss:$24 sps:$4 sm:$0xff]   ;;  %v7004_v24 = vld [vmem:[#allocation5 + $0x194] ss:$24 sps:$4 sm:$0xff]  }
 0x119   :  { %2217 = vmatprep.subr.bf16.mxu1 %v6914_v23  ;;  %v7001_v23 = vld [vmem:[#allocation5 + $0x554] ss:$24 sps:$4 sm:$0xff]  }
 0x11a   :  { %2181 = vmatmul.mubr.bf16.vlgmr.msra.gmra.mxu0 %v7864_v7 }
 0x11b   :  { %2272 = vmatpush1.bf16.msra.mxu0 %v6915_v26  ;;  %2303 = vmatprep.mubr.bf16.mxu0 %v7856_v47  ;;  %v6933_v47 = vld [vmem:[#allocation5 + $0x460] ss:$24 sps:$4 sm:$0xff]   ;;  %v6999_v26 = vld [vmem:[#allocation5 + $0x550] ss:$24 sps:$4 sm:$0xff]  }
 0x11c   :  { %2218 = vmatpush2.bf16.msra.mxu1 %v6912_v25  ;;  %2273 = vmatprep.subr.bf16.mxu0 %v6923_v28  ;;  %v7897_v25 = vshrl.u32 %v415_v20, 7  ;;  %v7007_v28 = vld [vmem:[#allocation5 + $0x524] ss:$24 sps:$4 sm:$0xff]  }
 0x11d   :  { %2219 = vmatprep.subr.bf16.mxu1 %v6920_v27  ;;  %v7002_v27 = vld [vmem:[#allocation5 + $0x190] ss:$24 sps:$4 sm:$0xff]  }
 0x11f   :  { %2274 = vmatpush1.bf16.msra.mxu0 %v6921_v30  ;;  %v7010_v30 = vld [vmem:[#allocation5 + $0x764] ss:$24 sps:$4 sm:$0xff]  }
 0x120   :  { %2220 = vmatpush2.bf16.msra.mxu1 %v6918_v29  ;;  %2275 = vmatprep.subr.bf16.mxu0 %v6926_v31  ;;  %v7899_v29 = vld [vmem:[#allocation7] sm:$0x3f]  ;;  %v417_v31 = vsub.s32 0, %v7897_v25 }
 0x121   :  { %2244 = vmatprep.subr.bf16.mxu1 %v6929_v32  ;;  %v7005_v32 = vld [vmem:[#allocation5 + $0x520] ss:$24 sps:$4 sm:$0xff]  }
 0x123   :  { %2222 = vmatmul.mubr.bf16.vlgmr.msra.gmra.mxu1 %v7883_v15  ;;  %2276 = vmatpush1.bf16.msra.mxu0 %v6924_v34  ;;  %v7008_v34 = vld [vmem:[#allocation5 + $0x760] ss:$24 sps:$4 sm:$0xff]  }
 0x124   :  { %2245 = vmatpush1.bf16.msra.mxu1 %v6927_v35  ;;  %2277 = vmatprep.subr.bf16.mxu0 %v6932_v36  ;;  %v7013_v35 = vld [vmem:[#allocation5 + $0x4f4] ss:$24 sps:$4 sm:$0xff]  }
 0x125   :  { %2262 = vmatprep.mubr.bf16.mxu1 %v7791_v13  ;;  %2312 = vmatprep.subr.bf16.mxu1 %v6935_v37  ;;  %v7016_v36 = vld [vmem:[#allocation5 + $0x734] ss:$24 sps:$4 sm:$0xff]   ;;  %v418_v37 = vrot.slane %v7899_v29, %v417_v31 }
 0x127   :  { %2278 = vmatpush1.bf16.msra.mxu0 %v6930_v38  ;;  %v7011_v38 = vld [vmem:[#allocation5 + $0x4f0] ss:$24 sps:$4 sm:$0xff]  }
 0x128   :  { %2279 = vmatprep.subr.bf16.mxu0 %v6938_v39  ;;  %v7014_v39 = vld [vmem:[#allocation5 + $0x730] ss:$24 sps:$4 sm:$0xff]  }
 0x12b   :  { %6047 = vmatmul.mubr.msk.bf16.vlgmr.msra.gmra.mxu1 %vm1939_vm0, %v7869_v17  ;;  %2280 = vmatpush1.bf16.msra.mxu0 %v6936_v40  ;;  %v6951_v17 = vld [vmem:[#allocation5 + $0x3d0] ss:$24 sps:$4 sm:$0xff]  }
 0x12c   :  { %2313 = vmatpush1.bf16.msra.mxu1 %v6933_v47  ;;  %2281 = vmatprep.subr.bf16.mxu0 %v6944_v42  ;;  %v7019_v42 = vld [vmem:[#allocation5 + $0x4c4] ss:$24 sps:$4 sm:$0xff]  }
 0x12d   :  { %2314 = vmatprep.subr.bf16.mxu1 %v6941_v41  ;;  %2344 = vmatprep.mubr.bf16.mxu1 %v7858_v51  ;;  %v6960_v51 = vld [vmem:[#allocation5 + $0x2e0] ss:$24 sps:$4 sm:$0xff]  }
 0x12f   :  { %2282 = vmatpush1.bf16.msra.mxu0 %v6942_v44 }
 0x130   :  { %2315 = vmatpush1.bf16.msra.mxu1 %v6939_v43  ;;  %2283 = vmatprep.subr.bf16.mxu0 %v6950_v46  ;;  %v7022_v43 = vld [vmem:[#allocation5 + $0x704] ss:$24 sps:$4 sm:$0xff]  }
 0x131   :  { %2316 = vmatprep.subr.bf16.mxu1 %v6947_v45 }
 0x133   :  { %2284 = vmatpush1.bf16.msra.mxu0 %v6948_v49  ;;  %v7020_v49 = vld [vmem:[#allocation5 + $0x700] ss:$24 sps:$4 sm:$0xff]  }
 0x134   :  { %2317 = vmatpush1.bf16.msra.mxu1 %v6945_v48  ;;  %2285 = vmatprep.subr.bf16.mxu0 %v6956_v52  ;;  %v7017_v48 = vld [vmem:[#allocation5 + $0x4c0] ss:$24 sps:$4 sm:$0xff]   ;;  %v7028_v52 = vld [vmem:[#allocation5 + $0x6d4] ss:$24 sps:$4 sm:$0xff]  }
 0x135   :  { %2318 = vmatprep.subr.bf16.mxu1 %v6953_v50 }
 0x137   :  { %2286 = vmatpush1.bf16.msra.mxu0 %v6954_v53 }
 0x138   :  { %2319 = vmatpush1.bf16.msra.mxu1 %v6951_v17  ;;  %2287 = vmatprep.subr.bf16.mxu0 %v6962_v55  ;;  %v7023_v55 = vld [vmem:[#allocation5 + $0x490] ss:$24 sps:$4 sm:$0xff]  }
 0x139   :  { %2320 = vmatprep.subr.bf16.mxu1 %v6959_v54 }
 0x13b   :  { %2288 = vmatpush2.bf16.msra.mxu0 %v6960_v51 }
 0x13c   :  { %2321 = vmatpush1.bf16.msra.mxu1 %v6957_v56  ;;  %2289 = vmatprep.subr.bf16.mxu0 %v6968_v58  ;;  %v7026_v56 = vld [vmem:[#allocation5 + $0x6d0] ss:$24 sps:$4 sm:$0xff]   ;;  %v7034_v58 = vld [vmem:[#allocation5 + $0x914] ss:$24 sps:$4 sm:$0xff]  }
 0x13d   :  { %2322 = vmatprep.subr.bf16.mxu1 %v6965_v57  ;;  %v7031_v57 = vld [vmem:[#allocation5 + $0x6a4] ss:$24 sps:$4 sm:$0xff]  }
 0x13f   :  { %2290 = vmatpush2.bf16.msra.mxu0 %v6966_v60  ;;  %v7032_v60 = vld [vmem:[#allocation5 + $0x910] ss:$24 sps:$4 sm:$0xff]  }
 0x140   :  { %2323 = vmatpush1.bf16.msra.mxu1 %v6963_v59  ;;  %2291 = vmatprep.subr.bf16.mxu0 %v6974_v62  ;;  %v7029_v59 = vld [vmem:[#allocation5 + $0x6a0] ss:$24 sps:$4 sm:$0xff]  }
 0x141   :  { %2324 = vmatprep.subr.bf16.mxu1 %v6971_v61  ;;  %v7037_v61 = vld [vmem:[#allocation5 + $0x674] ss:$24 sps:$4 sm:$0xff]  }
 0x143   :  { %2292 = vmatpush2.bf16.msra.mxu0 %v6972_v0 }
 0x144   :  { %2325 = vmatpush1.bf16.msra.mxu1 %v6969_v63  ;;  %2293 = vmatprep.subr.bf16.mxu0 %v6980_v2  ;;  %v7040_v63 = vld [vmem:[#allocation8 + $0x18c] ss:$28 sps:$4 sm:$0xff]  }
 0x145   :  { %2326 = vmatprep.subr.bf16.mxu1 %v6977_v1  ;;  %v7035_v1 = vld [vmem:[#allocation5 + $0x670] ss:$24 sps:$4 sm:$0xff]   ;;  %v7043_v2 = vld [vmem:[#allocation5 + $0x644] ss:$24 sps:$4 sm:$0xff]  }
 0x147   :  { %2294 = vmatpush2.bf16.msra.mxu0 %v6978_v4  ;;  %v7041_v4 = vld [vmem:[#allocation5 + $0x640] ss:$24 sps:$4 sm:$0xff]  }
 0x148   :  { %2327 = vmatpush1.bf16.msra.mxu1 %v6975_v3  ;;  %2295 = vmatprep.subr.bf16.mxu0 %v6986_v8  ;;  %v7038_v3 = vld [vmem:[#allocation8 + $0x188] ss:$28 sps:$4 sm:$0xff]   ;;  %v7049_v8 = vld [vmem:[#allocation5 + $0x614] ss:$24 sps:$4 sm:$0xff]  }
 0x149   :  { %2328 = vmatprep.subr.bf16.mxu1 %v6983_v5  ;;  %v7046_v5 = vld [vmem:[#allocation8 + $0x154] ss:$28 sps:$4 sm:$0xff]  }
 0x14b   :  { %2296 = vmatpush2.bf16.msra.mxu0 %v6984_v10  ;;  %v7047_v10 = vld [vmem:[#allocation5 + $0x610] ss:$24 sps:$4 sm:$0xff]  }
 0x14c   :  { %2329 = vmatpush2.bf16.msra.mxu1 %v6981_v9  ;;  %2297 = vmatprep.subr.bf16.mxu0 %v6992_v12  ;;  %v7044_v9 = vld [vmem:[#allocation8 + $0x150] ss:$28 sps:$4 sm:$0xff]  }
 0x14d   :  { %2330 = vmatprep.subr.bf16.mxu1 %v6989_v11  ;;  %v7606_v11 = vld [vmem:[#allocation2 + $0x18] ss:$0 sps:$4 sm:$0xff]  }
 0x14e   :  { %v7055_v12 = vld [vmem:[#allocation5 + $0x8e4] ss:$24 sps:$4 sm:$0xff]  }
 0x14f   :  { %2298 = vmatpush2.bf16.msra.mxu0 %v6990_v16  ;;  %v7058_v16 = vld [vmem:[#allocation8 + $0xe4] ss:$28 sps:$4 sm:$0xff]  }
 0x150   :  { %2331 = vmatpush2.bf16.msra.mxu1 %v6987_v14  ;;  %2299 = vmatprep.subr.bf16.mxu0 %v6998_v19  ;;  %v7053_v14 = vld [vmem:[#allocation5 + $0x8e0] ss:$24 sps:$4 sm:$0xff]  }
 0x151   :  { %2332 = vmatprep.subr.bf16.mxu1 %v6995_v18  ;;  %v7061_v18 = vld [vmem:[#allocation5 + $0x8b4] ss:$24 sps:$4 sm:$0xff]  }
 0x152   :  { %v7056_v19 = vld [vmem:[#allocation8 + $0xe0] ss:$28 sps:$4 sm:$0xff]  }
 0x153   :  { %2300 = vmatpush2.bf16.msra.mxu0 %v6996_v22  ;;  %v7064_v22 = vld [vmem:[#allocation8 + $0xac] ss:$28 sps:$4 sm:$0xff]  }
 0x154   :  { %2333 = vmatpush2.bf16.msra.mxu1 %v6993_v21  ;;  %2301 = vmatprep.subr.bf16.mxu0 %v7004_v24  ;;  %v7059_v21 = vld [vmem:[#allocation5 + $0x8b0] ss:$24 sps:$4 sm:$0xff]   ;;  %v7062_v24 = vld [vmem:[#allocation8 + $0xa8] ss:$28 sps:$4 sm:$0xff]  }
 0x155   :  { %2334 = vmatprep.subr.bf16.mxu1 %v7001_v23  ;;  %v7067_v23 = vld [vmem:[#allocation5 + $0x884] ss:$24 sps:$4 sm:$0xff]  }
 0x157   :  { %2302 = vmatpush2.bf16.msra.mxu0 %v7002_v27  ;;  %v7070_v27 = vld [vmem:[#allocation8 + $0x74] ss:$28 sps:$4 sm:$0xff]  }
 0x158   :  { %2335 = vmatpush2.bf16.msra.mxu1 %v6999_v26  ;;  %2353 = vmatprep.subr.bf16.mxu0 %v7010_v30  ;;  %v7065_v26 = vld [vmem:[#allocation5 + $0x880] ss:$24 sps:$4 sm:$0xff]  }
 0x159   :  { %2336 = vmatprep.subr.bf16.mxu1 %v7007_v28  ;;  %v7073_v28 = vld [vmem:[#allocation5 + $0x854] ss:$24 sps:$4 sm:$0xff]   ;;  %v7068_v30 = vld [vmem:[#allocation8 + $0x70] ss:$28 sps:$4 sm:$0xff]  }
 0x15a   :  { %v1977_v47 = vpop.f32.mrf.mxu0  ;;  %2304 = vmatmul.mubr.bf16.vlgmr.msra.gmra.mxu0 %v7862_v6  ;;  %v7025_v6 = vld [vmem:[#allocation5 + $0x494] ss:$24 sps:$4 sm:$0xff]  }
 0x15b   :  { %v2018_v40 = vpop.f32.mrf.mxu1  ;;  %v1978_v41 = vadd.f32 %v1977_v47, %v418_v37  ;;  %2354 = vmatpush1.bf16.msra.mxu0 %v7008_v34  ;;  %2385 = vmatprep.mubr.bf16.mxu0 %v7878_v33  ;;  %v7076_v34 = vld [vmem:[#allocation8 + $0x3c] ss:$28 sps:$4 sm:$0xff]   ;;  %v7077_v37 = vld [vmem:[#allocation5 + $0x820] ss:$24 sps:$4 sm:$0xff]  }
 0x15c   :  { %2337 = vmatpush2.bf16.msra.mxu1 %v7005_v32  ;;  %v7906_v44 = vpop.f32.mrf.mxu0  ;;  %2355 = vmatprep.subr.bf16.mxu0 %v7016_v36  ;;  %v7071_v32 = vld [vmem:[#allocation5 + $0x850] ss:$24 sps:$4 sm:$0xff]  }
 0x15d   :  { %2338 = vmatprep.subr.bf16.mxu1 %v7013_v35  ;;  %v7908_v45 = vpop.f32.mrf.mxu1  ;;  %v7910_v46 = vadd.f32 %v2018_v40, %v1978_v41  ;;  %v7079_v35 = vld [vmem:[#allocation5 + $0x824] ss:$24 sps:$4 sm:$0xff]   ;;  %v7074_v36 = vld [vmem:[#allocation8 + $0x38] ss:$28 sps:$4 sm:$0xff]   ;;  %v7080_v47 = vld [vmem:[#allocation8] ss:$28 sps:$4 sm:$0xff]  }
 0x15e   :  { %v1981_v50 = vpop.f32.mrf.mxu0  ;;  %v7083_v40 = vld [vmem:[#allocation5 + $0x7f0] ss:$24 sps:$4 sm:$0xff]   ;;  %v7088_v41 = vld [vmem:[#allocation8 + $0x34c] ss:$28 sps:$4 sm:$0xff]  }
 0x15f   :  { %v2022_v17 = vpop.f32.mrf.mxu1  ;;  %2356 = vmatpush1.bf16.msra.mxu0 %v7014_v39  ;;  %v7085_v39 = vld [vmem:[#allocation5 + $0x7f4] ss:$24 sps:$4 sm:$0xff]  }
 0x160   :  { %2339 = vmatpush2.bf16.msra.mxu1 %v7011_v38  ;;  %v1982_v53 = vpop.f32.mrf.mxu0  ;;  %2357 = vmatprep.subr.bf16.mxu0 %v7022_v43  ;;  %v7082_v38 = vld [vmem:[#allocation8 + $0x4] ss:$28 sps:$4 sm:$0xff]   ;;  %v7094_v50 = vld [vmem:[#allocation8 + $0x314] ss:$28 sps:$4 sm:$0xff]  }
 0x161   :  { %2340 = vmatprep.subr.bf16.mxu1 %v7019_v42  ;;  %v2023_v54 = vpop.f32.mrf.mxu1  ;;  %v7091_v42 = vld [vmem:[#allocation5 + $0x7c4] ss:$24 sps:$4 sm:$0xff]   ;;  %v7095_v17 = vld [vmem:[#allocation5 + $0x790] ss:$24 sps:$4 sm:$0xff]  }
 0x162   :  { %v7086_v43 = vld [vmem:[#allocation8 + $0x348] ss:$28 sps:$4 sm:$0xff]   ;;  %v7100_v53 = vld [vmem:[#allocation8 + $0x2dc] ss:$28 sps:$4 sm:$0xff]  }
 0x163   :  { %v7913_v51 = vpop.f32.mrf.mxu1  ;;  %2358 = vmatpush1.bf16.msra.mxu0 %v7020_v49  ;;  %v421_v49 = vsub.s32 1, %v7897_v25  ;;  %v7118_v54 = vld [vmem:[#allocation8 + $0x50c] ss:$28 sps:$4 sm:$0xff]  }
 0x164   :  { %2341 = vmatpush2.bf16.msra.mxu1 %v7017_v48  ;;  %2359 = vmatprep.subr.bf16.mxu0 %v7028_v52  ;;  %v7089_v48 = vld [vmem:[#allocation5 + $0x7c0] ss:$24 sps:$4 sm:$0xff]  }
 0x165   :  { %2342 = vmatprep.subr.bf16.mxu1 %v7025_v6  ;;  %v7915_v33 = vpop.f32.mrf.mxu1  ;;  %v7097_v6 = vld [vmem:[#allocation5 + $0x794] ss:$24 sps:$4 sm:$0xff]   ;;  %v7092_v52 = vld [vmem:[#allocation8 + $0x310] ss:$28 sps:$4 sm:$0xff]  }
 0x167   :  { %v2104_v62 = vpop.f32.mrf.mxu1  ;;  %2360 = vmatpush1.bf16.msra.mxu0 %v7026_v56  ;;  %v7098_v56 = vld [vmem:[#allocation8 + $0x2d8] ss:$28 sps:$4 sm:$0xff]  }
 0x168   :  { %2343 = vmatpush2.bf16.msra.mxu1 %v7023_v55  ;;  %2361 = vmatprep.subr.bf16.mxu0 %v7031_v57  ;;  %v422_v55 = vrot.slane %v7899_v29, %v421_v49  ;;  %v7116_v57 = vld [vmem:[#allocation8 + $0x508] ss:$28 sps:$4 sm:$0xff]  }
 0x169   :  { %2408 = vmatprep.subr.bf16.mxu1 %v7034_v58  ;;  %v2105_v0 = vpop.f32.mrf.mxu1  ;;  %v7103_v58 = vld [vmem:[#allocation8 + $0x2a4] ss:$28 sps:$4 sm:$0xff]  }
 0x16b   :  { %2345 = vmatmul.mubr.bf16.vlgmr.msra.gmra.mxu1 %v7864_v7  ;;  %2362 = vmatpush1.bf16.msra.mxu0 %v7029_v59  ;;  %v7052_v7 = vld [vmem:[#allocation8 + $0x11c] ss:$28 sps:$4 sm:$0xff]   ;;  %v7121_v59 = vld [vmem:[#allocation8 + $0x4d4] ss:$28 sps:$4 sm:$0xff]  }
 0x16c   :  { %2409 = vmatpush1.bf16.msra.mxu1 %v7032_v60  ;;  %2363 = vmatprep.subr.bf16.mxu0 %v7037_v61  ;;  %v1980_v60 = vadd.f32 %v7906_v44, %v422_v55  ;;  %v7101_v61 = vld [vmem:[#allocation8 + $0x2a0] ss:$28 sps:$4 sm:$0xff]   ;;  %v7227_v55 = vld [vmem:[#allocation8 + $0x7a8] ss:$28 sps:$4 sm:$0xff]  }
 0x16d   :  { %2426 = vmatprep.mubr.bf16.mxu1 %v7791_v13  ;;  %4596 = vmatprep.subr.bf16.mxu1 %v7040_v63  ;;  %v7050_v13 = vld [vmem:[#allocation8 + $0x118] ss:$28 sps:$4 sm:$0xff]   ;;  %v7106_v63 = vld [vmem:[#allocation8 + $0x26c] ss:$28 sps:$4 sm:$0xff]  }
 0x16e   :  { %v2021_v29 = vadd.f32 %v7908_v45, %v1980_v60  ;;  %v7154_v60 = vld [vmem:[#allocation8 + $0x5ec] ss:$28 sps:$4 sm:$0xff]  }
 0x16f   :  { %2364 = vmatpush1.bf16.msra.mxu0 %v7035_v1  ;;  %v7119_v1 = vld [vmem:[#allocation8 + $0x4d0] ss:$28 sps:$4 sm:$0xff]  }
 0x170   :  { %2365 = vmatprep.subr.bf16.mxu0 %v7043_v2  ;;  %v7124_v2 = vld [vmem:[#allocation8 + $0x49c] ss:$28 sps:$4 sm:$0xff]  }
 0x173   :  { %6048 = vmatmul.mubr.msk.bf16.vlgmr.msra.gmra.mxu1 %vm1939_vm0, %v7606_v11  ;;  %2366 = vmatpush1.bf16.msra.mxu0 %v7041_v4 }
 0x174   :  { %4597 = vmatpush1.bf16.msra.mxu1 %v7038_v3  ;;  %2367 = vmatprep.subr.bf16.mxu0 %v7049_v8 }
 0x175   :  { %4598 = vmatprep.subr.bf16.mxu1 %v7046_v5  ;;  %v7104_v5 = vld [vmem:[#allocation8 + $0x268] ss:$28 sps:$4 sm:$0xff]  }
 0x177   :  { %2368 = vmatpush1.bf16.msra.mxu0 %v7047_v10  ;;  %v7122_v10 = vld [vmem:[#allocation8 + $0x498] ss:$28 sps:$4 sm:$0xff]  }
 0x178   :  { %4599 = vmatpush1.bf16.msra.mxu1 %v7044_v9  ;;  %2369 = vmatprep.subr.bf16.mxu0 %v7055_v12  ;;  %v7109_v9 = vld [vmem:[#allocation8 + $0x234] ss:$28 sps:$4 sm:$0xff]   ;;  %v7125_v12 = vld [vmem:[#allocation8 + $0x460] ss:$28 sps:$4 sm:$0xff]  }
 0x179   :  { %4600 = vmatprep.subr.bf16.mxu1 %v7052_v7  ;;  %v7107_v7 = vld [vmem:[#allocation8 + $0x230] ss:$28 sps:$4 sm:$0xff]  }
 0x17b   :  { %2370 = vmatpush2.bf16.msra.mxu0 %v7053_v14  ;;  %v7130_v14 = vld [vmem:[#allocation8 + $0x42c] ss:$28 sps:$4 sm:$0xff]  }
 0x17c   :  { %4601 = vmatpush1.bf16.msra.mxu1 %v7050_v13  ;;  %2371 = vmatprep.subr.bf16.mxu0 %v7061_v18  ;;  %v7112_v13 = vld [vmem:[#allocation8 + $0x1fc] ss:$28 sps:$4 sm:$0xff]  }
 0x17d   :  { %4602 = vmatprep.subr.bf16.mxu1 %v7058_v16 }
 0x17f   :  { %2372 = vmatpush2.bf16.msra.mxu0 %v7059_v21  ;;  %v7115_v21 = vld [vmem:[#allocation8 + $0x1c4] ss:$28 sps:$4 sm:$0xff]  }
 0x180   :  { %4603 = vmatpush1.bf16.msra.mxu1 %v7056_v19  ;;  %2373 = vmatprep.subr.bf16.mxu0 %v7067_v23  ;;  %v7128_v19 = vld [vmem:[#allocation8 + $0x428] ss:$28 sps:$4 sm:$0xff]  }
 0x181   :  { %4604 = vmatprep.subr.bf16.mxu1 %v7064_v22  ;;  %v7133_v22 = vld [vmem:[#allocation8 + $0x3f4] ss:$28 sps:$4 sm:$0xff]  }
 0x183   :  { %2374 = vmatpush2.bf16.msra.mxu0 %v7065_v26  ;;  %v7113_v26 = vld [vmem:[#allocation8 + $0x1c0] ss:$28 sps:$4 sm:$0xff]  }
 0x184   :  { %4605 = vmatpush1.bf16.msra.mxu1 %v7062_v24  ;;  %2375 = vmatprep.subr.bf16.mxu0 %v7073_v28  ;;  %v7136_v28 = vld [vmem:[#allocation8 + $0x3bc] ss:$28 sps:$4 sm:$0xff]  }
 0x185   :  { %4606 = vmatprep.subr.bf16.mxu1 %v7070_v27  ;;  %v7131_v27 = vld [vmem:[#allocation8 + $0x3f0] ss:$28 sps:$4 sm:$0xff]  }
 0x187   :  { %2376 = vmatpush2.bf16.msra.mxu0 %v7071_v32  ;;  %v7205_v32 = vld [vmem:[#allocation8 + $0x88c] ss:$28 sps:$4 sm:$0xff]  }
 0x188   :  { %4607 = vmatpush1.bf16.msra.mxu1 %v7068_v30  ;;  %2377 = vmatprep.subr.bf16.mxu0 %v7079_v35  ;;  %v7203_v35 = vld [vmem:[#allocation8 + $0x888] ss:$28 sps:$4 sm:$0xff]  }
 0x189   :  { %4608 = vmatprep.subr.bf16.mxu1 %v7076_v34  ;;  %v7134_v34 = vld [vmem:[#allocation8 + $0x3b8] ss:$28 sps:$4 sm:$0xff]  }
 0x18b   :  { %2378 = vmatpush2.bf16.msra.mxu0 %v7077_v37  ;;  %v7211_v37 = vld [vmem:[#allocation8 + $0x854] ss:$28 sps:$4 sm:$0xff]  }
 0x18c   :  { %4609 = vmatpush1.bf16.msra.mxu1 %v7074_v36  ;;  %2379 = vmatprep.subr.bf16.mxu0 %v7085_v39  ;;  %v7139_v36 = vld [vmem:[#allocation8 + $0x384] ss:$28 sps:$4 sm:$0xff]  }
 0x18d   :  { %4610 = vmatprep.subr.bf16.mxu1 %v7082_v38  ;;  %v7137_v39 = vld [vmem:[#allocation8 + $0x380] ss:$28 sps:$4 sm:$0xff]  }
 0x18f   :  { %2380 = vmatpush2.bf16.msra.mxu0 %v7083_v40  ;;  %v7209_v40 = vld [vmem:[#allocation8 + $0x850] ss:$28 sps:$4 sm:$0xff]  }
 0x190   :  { %4611 = vmatpush1.bf16.msra.mxu1 %v7080_v47  ;;  %2381 = vmatprep.subr.bf16.mxu0 %v7091_v42  ;;  %v7142_v47 = vld [vmem:[#allocation8 + $0x6cc] ss:$28 sps:$4 sm:$0xff]  }
 0x191   :  { %4612 = vmatprep.subr.bf16.mxu1 %v7088_v41  ;;  %v7217_v41 = vld [vmem:[#allocation8 + $0x81c] ss:$28 sps:$4 sm:$0xff]   ;;  %v7140_v42 = vld [vmem:[#allocation8 + $0x6c8] ss:$28 sps:$4 sm:$0xff]  }
 0x193   :  { %2382 = vmatpush2.bf16.msra.mxu0 %v7089_v48  ;;  %v7145_v48 = vld [vmem:[#allocation8 + $0x694] ss:$28 sps:$4 sm:$0xff]  }
 0x194   :  { %4613 = vmatpush2.bf16.msra.mxu1 %v7086_v43  ;;  %2383 = vmatprep.subr.bf16.mxu0 %v7097_v6  ;;  %v7215_v43 = vld [vmem:[#allocation8 + $0x818] ss:$28 sps:$4 sm:$0xff]   ;;  %v7143_v6 = vld [vmem:[#allocation8 + $0x690] ss:$28 sps:$4 sm:$0xff]  }
 0x195   :  { %4614 = vmatprep.subr.bf16.mxu1 %v7094_v50  ;;  %v7223_v50 = vld [vmem:[#allocation8 + $0x7e4] ss:$28 sps:$4 sm:$0xff]  }
 0x197   :  { %2384 = vmatpush2.bf16.msra.mxu0 %v7095_v17  ;;  %v7148_v17 = vld [vmem:[#allocation8 + $0x65c] ss:$28 sps:$4 sm:$0xff]  }
 0x198   :  { %4615 = vmatpush2.bf16.msra.mxu1 %v7092_v52  ;;  %4637 = vmatprep.subr.bf16.mxu0 %v7118_v54  ;;  %v7221_v52 = vld [vmem:[#allocation8 + $0x7e0] ss:$28 sps:$4 sm:$0xff]   ;;  %v7146_v54 = vld [vmem:[#allocation8 + $0x658] ss:$28 sps:$4 sm:$0xff]  }
 0x199   :  { %4616 = vmatprep.subr.bf16.mxu1 %v7100_v53  ;;  %v7229_v53 = vld [vmem:[#allocation8 + $0x7ac] ss:$28 sps:$4 sm:$0xff]  }
 0x19a   :  { %v2059_v62 = vpop.f32.mrf.mxu0  ;;  %2386 = vmatmul.mubr.bf16.vlgmr.msra.gmra.mxu0 %v7883_v15  ;;  %v7127_v15 = vld [vmem:[#allocation8 + $0x464] ss:$28 sps:$4 sm:$0xff]  }
 0x19b   :  { %v2060_v0 = vadd.f32 %v2059_v62, %v7910_v46  ;;  %4638 = vmatpush1.bf16.msra.mxu0 %v7116_v57  ;;  %v7235_v57 = vld [vmem:[#allocation8 + $0x774] ss:$28 sps:$4 sm:$0xff]   ;;  %v7152_v62 = vld [vmem:[#allocation8 + $0x5e8] ss:$28 sps:$4 sm:$0xff]  }
 0x19c   :  { %4617 = vmatpush2.bf16.msra.mxu1 %v7098_v56  ;;  %v2061_v3 = vpop.f32.mrf.mxu0  ;;  %4639 = vmatprep.subr.bf16.mxu0 %v7121_v59  ;;  %v7151_v56 = vld [vmem:[#allocation8 + $0x624] ss:$28 sps:$4 sm:$0xff]   ;;  %v7233_v59 = vld [vmem:[#allocation8 + $0x770] ss:$28 sps:$4 sm:$0xff]  }
 0x19d   :  { %4618 = vmatprep.subr.bf16.mxu1 %v7103_v58  ;;  %v2101_v44 = vadd.f32 %v7913_v51, %v2060_v0  ;;  %v2062_v4 = vadd.f32 %v2061_v3, %v2021_v29  ;;  %v7149_v58 = vld [vmem:[#allocation8 + $0x620] ss:$28 sps:$4 sm:$0xff]   ;;  %v7157_v29 = vld [vmem:[#allocation8 + $0x5b4] ss:$28 sps:$4 sm:$0xff]  }
 0x19e   :  { %v2063_v8 = vpop.f32.mrf.mxu0  ;;  %v7247_v0 = vld [vmem:[#allocation8 + $0x704] ss:$28 sps:$4 sm:$0xff]   ;;  %v7160_v3 = vld [vmem:[#allocation8 + $0x57c] ss:$28 sps:$4 sm:$0xff]  }
 0x19f   :  { %v2103_v11 = vadd.f32 %v7915_v33, %v2062_v4  ;;  %4640 = vmatpush1.bf16.msra.mxu0 %v7119_v1  ;;  %v7110_v33 = vld [vmem:[#allocation8 + $0x1f8] ss:$28 sps:$4 sm:$0xff]   ;;  %v2435_v30 = vmul.f32 %v2101_v44, %v2101_v44  ;;  %v7155_v1 = vld [vmem:[#allocation8 + $0x5b0] ss:$28 sps:$4 sm:$0xff]   ;;  %v7163_v8 = vld [vmem:[#allocation8 + $0x544] ss:$28 sps:$4 sm:$0xff]  }
 0x1a0   :  { %4619 = vmatpush2.bf16.msra.mxu1 %v7101_v61  ;;  %v2064_v45 = vpop.f32.mrf.mxu0  ;;  %4641 = vmatprep.subr.bf16.mxu0 %v7124_v2  ;;  %v7241_v61 = vld [vmem:[#allocation8 + $0x73c] ss:$28 sps:$4 sm:$0xff]   ;;  %v7253_v44 = vld [vmem:[#allocation8 + $0xa4c] ss:$28 sps:$4 sm:$0xff]  }
 0x1a1   :  { %4620 = vmatprep.subr.bf16.mxu1 %v7106_v63  ;;  %v2436_v46 = vmul.f32 %v2103_v11, %v2103_v11  ;;  %v7937_v38 = vpack.c.bf16 %v2435_v30, %v2435_v30  ;;  %v7239_v63 = vld [vmem:[#allocation8 + $0x738] ss:$28 sps:$4 sm:$0xff]   ;;  %v7245_v2 = vld [vmem:[#allocation8 + $0x700] ss:$28 sps:$4 sm:$0xff]  }
 0x1a2   :  { %v7158_v4 = vld [vmem:[#allocation8 + $0x578] ss:$28 sps:$4 sm:$0xff]  }
 0x1a3   :  { %v7930_v16 = vpop.f32.mrf.mxu1  ;;  %v7932_v51 = vpack.c.bf16 %v2436_v46, %v2436_v46  ;;  %4642 = vmatpush1.bf16.msra.mxu0 %v7122_v10  ;;  %v7161_v10 = vld [vmem:[#allocation8 + $0x540] ss:$28 sps:$4 sm:$0xff]   ;;  %v7166_v11 = vld [vmem:[#allocation8 + $0x194] ss:$28 sps:$4 sm:$0xff]  }
 0x1a4   :  { %4621 = vmatpush2.bf16.msra.mxu1 %v7104_v5  ;;  %4643 = vmatprep.subr.bf16.mxu0 %v7127_v15  ;;  %v7251_v5 = vld [vmem:[#allocation8 + $0xa48] ss:$28 sps:$4 sm:$0xff]   ;;  %v7257_v15 = vld [vmem:[#allocation8 + $0xa10] ss:$28 sps:$4 sm:$0xff]   ;;  %v7265_v45 = vld [vmem:[#allocation8 + $0x9dc] ss:$28 sps:$4 sm:$0xff]  }
 0x1a5   :  { %4622 = vmatprep.subr.bf16.mxu1 %v7109_v9  ;;  %v7934_v18 = vpop.f32.mrf.mxu1  ;;  %4628 = vmatprep.mubr.bf16.mxu1 %v7932_v51  ;;  %v7259_v9 = vld [vmem:[#allocation8 + $0xa14] ss:$28 sps:$4 sm:$0xff]  }
 0x1a6   :  { %v7263_v46 = vld [vmem:[#allocation8 + $0x9d8] ss:$28 sps:$4 sm:$0xff]  }
 0x1a7   :  { %v2145_v23 = vpop.f32.mrf.mxu1  ;;  %4644 = vmatpush1.bf16.msra.mxu0 %v7125_v12  ;;  %v425_v12 = vsub.s32 2, %v7897_v25 }
 0x1a8   :  { %4623 = vmatpush2.bf16.msra.mxu1 %v7107_v7  ;;  %4645 = vmatprep.subr.bf16.mxu0 %v7130_v14  ;;  %v7271_v7 = vld [vmem:[#allocation8 + $0x9a4] ss:$28 sps:$4 sm:$0xff]  }
 0x1a9   :  { %4624 = vmatprep.subr.bf16.mxu1 %v7112_v13  ;;  %v2146_v24 = vpop.f32.mrf.mxu1  ;;  %v7269_v14 = vld [vmem:[#allocation8 + $0x9a0] ss:$28 sps:$4 sm:$0xff]   ;;  %v7275_v23 = vld [vmem:[#allocation8 + $0x968] ss:$28 sps:$4 sm:$0xff]  }
 0x1ab   :  { %4646 = vmatpush1.bf16.msra.mxu0 %v7128_v19  ;;  %v7277_v19 = vld [vmem:[#allocation8 + $0x96c] ss:$28 sps:$4 sm:$0xff]  }
 0x1ac   :  { %4625 = vmatpush2.bf16.msra.mxu1 %v7110_v33  ;;  %4647 = vmatprep.subr.bf16.mxu0 %v7133_v22  ;;  %v429_v22 = vsub.s32 3, %v7897_v25 }
 0x1ad   :  { %4626 = vmatprep.subr.bf16.mxu1 %v7115_v21 }
 0x1af   :  { %4648 = vmatpush1.bf16.msra.mxu0 %v7131_v27  ;;  %v7942_v27 = vld [vmem:[#allocation7] sm:$0x3f] }
 0x1b0   :  { %4627 = vmatpush2.bf16.msra.mxu1 %v7113_v26  ;;  %4649 = vmatprep.subr.bf16.mxu0 %v7136_v28  ;;  %v7283_v26 = vld [vmem:[#allocation8 + $0x934] ss:$28 sps:$4 sm:$0xff]   ;;  %v426_v28 = vrot.slane %v7942_v27, %v425_v12 }
 0x1b1   :  { %4678 = vmatprep.subr.bf16.mxu1 %v7205_v32  ;;  %v430_v32 = vrot.slane %v7942_v27, %v429_v22 }
 0x1b3   :  { %4629 = vmatmul.mubr.bf16.vlgmr.msra.gmra.mxu1 %v7937_v38  ;;  %4650 = vmatpush1.bf16.msra.mxu0 %v7134_v34  ;;  %v7281_v34 = vld [vmem:[#allocation8 + $0x930] ss:$28 sps:$4 sm:$0xff]  }
 0x1b4   :  { %4679 = vmatpush1.bf16.msra.mxu1 %v7203_v35  ;;  %4651 = vmatprep.subr.bf16.mxu0 %v7139_v36  ;;  %v7289_v35 = vld [vmem:[#allocation8 + $0x8fc] ss:$28 sps:$4 sm:$0xff]  }
 0x1b5   :  { %4680 = vmatprep.subr.bf16.mxu1 %v7211_v37  ;;  %v2142_v37 = vadd.f32 %v7930_v16, %v426_v28 }
 0x1b7   :  { %4652 = vmatpush1.bf16.msra.mxu0 %v7137_v39 }
 0x1b8   :  { %4681 = vmatpush1.bf16.msra.mxu1 %v7209_v40  ;;  %4653 = vmatprep.subr.bf16.mxu0 %v7142_v47  ;;  %v2144_v47 = vadd.f32 %v7934_v18, %v430_v32  ;;  %v7208_v32 = vld [vmem:[#allocation8 + $0x23c] ss:$28 sps:$4 sm:$0xff]  }
 0x1b9   :  { %4682 = vmatprep.subr.bf16.mxu1 %v7217_v41  ;;  %v7287_v41 = vld [vmem:[#allocation8 + $0x8f8] ss:$28 sps:$4 sm:$0xff]  }
 0x1bb   :  { %4654 = vmatpush2.bf16.msra.mxu0 %v7140_v42  ;;  %v7295_v42 = vld [vmem:[#allocation8 + $0x8c4] ss:$28 sps:$4 sm:$0xff]  }
 0x1bc   :  { %4683 = vmatpush1.bf16.msra.mxu1 %v7215_v43  ;;  %4655 = vmatprep.subr.bf16.mxu0 %v7145_v48 }
 0x1bd   :  { %4684 = vmatprep.subr.bf16.mxu1 %v7223_v50 }
 0x1bf   :  { %4656 = vmatpush2.bf16.msra.mxu0 %v7143_v6 }
 0x1c0   :  { %4685 = vmatpush1.bf16.msra.mxu1 %v7221_v52  ;;  %4657 = vmatprep.subr.bf16.mxu0 %v7148_v17 }
 0x1c1   :  { %4686 = vmatprep.subr.bf16.mxu1 %v7229_v53  ;;  %v7293_v53 = vld [vmem:[#allocation8 + $0x8c0] ss:$28 sps:$4 sm:$0xff]  }
 0x1c3   :  { %4658 = vmatpush2.bf16.msra.mxu0 %v7146_v54  ;;  %v7301_v54 = vld [vmem:[#allocation8 + $0x514] ss:$28 sps:$4 sm:$0xff]  }
 0x1c4   :  { %4687 = vmatpush1.bf16.msra.mxu1 %v7227_v55  ;;  %4659 = vmatprep.subr.bf16.mxu0 %v7151_v56 }
 0x1c5   :  { %4688 = vmatprep.subr.bf16.mxu1 %v7235_v57 }
 0x1c7   :  { %4660 = vmatpush2.bf16.msra.mxu0 %v7149_v58  ;;  %v7164_v58 = vld [vmem:[#allocation8 + $0x190] ss:$28 sps:$4 sm:$0xff]  }
 0x1c8   :  { %4689 = vmatpush1.bf16.msra.mxu1 %v7233_v59  ;;  %4661 = vmatprep.subr.bf16.mxu0 %v7154_v60 }
 0x1c9   :  { %4690 = vmatprep.subr.bf16.mxu1 %v7241_v61 }
 0x1cb   :  { %4662 = vmatpush2.bf16.msra.mxu0 %v7152_v62  ;;  %v7169_v62 = vld [vmem:[#allocation8 + $0x15c] ss:$28 sps:$4 sm:$0xff]  }
 0x1cc   :  { %4691 = vmatpush1.bf16.msra.mxu1 %v7239_v63  ;;  %4663 = vmatprep.subr.bf16.mxu0 %v7157_v29  ;;  %v7167_v63 = vld [vmem:[#allocation8 + $0x158] ss:$28 sps:$4 sm:$0xff]   ;;  %v7172_v29 = vld [vmem:[#allocation8 + $0x124] ss:$28 sps:$4 sm:$0xff]  }
 0x1cd   :  { %4692 = vmatprep.subr.bf16.mxu1 %v7247_v0  ;;  %v7170_v0 = vld [vmem:[#allocation8 + $0x120] ss:$28 sps:$4 sm:$0xff]  }
 0x1cf   :  { %4664 = vmatpush2.bf16.msra.mxu0 %v7155_v1  ;;  %v7175_v1 = vld [vmem:[#allocation8 + $0xec] ss:$28 sps:$4 sm:$0xff]  }
 0x1d0   :  { %4693 = vmatpush1.bf16.msra.mxu1 %v7245_v2  ;;  %4665 = vmatprep.subr.bf16.mxu0 %v7160_v3  ;;  %v7173_v2 = vld [vmem:[#allocation8 + $0xe8] ss:$28 sps:$4 sm:$0xff]   ;;  %v7178_v3 = vld [vmem:[#allocation8 + $0xb4] ss:$28 sps:$4 sm:$0xff]  }
 0x1d1   :  { %4694 = vmatprep.subr.bf16.mxu1 %v7253_v44  ;;  %v7176_v44 = vld [vmem:[#allocation8 + $0xb0] ss:$28 sps:$4 sm:$0xff]  }
 0x1d3   :  { %4666 = vmatpush2.bf16.msra.mxu0 %v7158_v4  ;;  %v7181_v4 = vld [vmem:[#allocation8 + $0x7c] ss:$28 sps:$4 sm:$0xff]  }
 0x1d4   :  { %4695 = vmatpush2.bf16.msra.mxu1 %v7251_v5  ;;  %4667 = vmatprep.subr.bf16.mxu0 %v7163_v8  ;;  %v7179_v5 = vld [vmem:[#allocation8 + $0x78] ss:$28 sps:$4 sm:$0xff]   ;;  %v7184_v8 = vld [vmem:[#allocation8 + $0x44] ss:$28 sps:$4 sm:$0xff]  }
 0x1d5   :  { %4696 = vmatprep.subr.bf16.mxu1 %v7259_v9  ;;  %v7182_v9 = vld [vmem:[#allocation8 + $0x40] ss:$28 sps:$4 sm:$0xff]  }
 0x1d7   :  { %4668 = vmatpush2.bf16.msra.mxu0 %v7161_v10  ;;  %v7187_v10 = vld [vmem:[#allocation8 + $0xc] ss:$28 sps:$4 sm:$0xff]  }
 0x1d8   :  { %4697 = vmatpush2.bf16.msra.mxu1 %v7257_v15  ;;  %4719 = vmatprep.subr.bf16.mxu0 %v7166_v11  ;;  %v7185_v15 = vld [vmem:[#allocation8 + $0x8] ss:$28 sps:$4 sm:$0xff]   ;;  %v7190_v11 = vld [vmem:[#allocation8 + $0x354] ss:$28 sps:$4 sm:$0xff]  }
 0x1d9   :  { %4698 = vmatprep.subr.bf16.mxu1 %v7265_v45  ;;  %v7188_v45 = vld [vmem:[#allocation8 + $0x350] ss:$28 sps:$4 sm:$0xff]  }
 0x1da   :  { %v2182_v13 = vpop.f32.mrf.mxu0 }
 0x1db   :  { %v2183_v40 = vadd.f32 %v2182_v13, %v2142_v37  ;;  %v7196_v13 = vld [vmem:[#allocation8 + $0x2e4] ss:$28 sps:$4 sm:$0xff]  }
 0x1dc   :  { %4699 = vmatpush2.bf16.msra.mxu1 %v7263_v46  ;;  %v2184_v33 = vpop.f32.mrf.mxu0  ;;  %v7193_v46 = vld [vmem:[#allocation8 + $0x31c] ss:$28 sps:$4 sm:$0xff]  }
 0x1dd   :  { %4700 = vmatprep.subr.bf16.mxu1 %v7271_v7  ;;  %v2185_v48 = vadd.f32 %v2184_v33, %v2144_v47  ;;  %v7191_v7 = vld [vmem:[#allocation8 + $0x318] ss:$28 sps:$4 sm:$0xff]  }
 0x1de   :  { %v2186_v21 = vpop.f32.mrf.mxu0 }
 0x1e0   :  { %4701 = vmatpush2.bf16.msra.mxu1 %v7269_v14  ;;  %v2187_v24 = vpop.f32.mrf.mxu0  ;;  %v7194_v14 = vld [vmem:[#allocation8 + $0x2e0] ss:$28 sps:$4 sm:$0xff]  }
 0x1e1   :  { %4702 = vmatprep.subr.bf16.mxu1 %v7277_v19  ;;  %v7199_v19 = vld [vmem:[#allocation8 + $0x2ac] ss:$28 sps:$4 sm:$0xff]  }
 0x1e3   :  { %v2223_v30 = vpop.f32.mrf.mxu1 }
 0x1e4   :  { %4703 = vmatpush2.bf16.msra.mxu1 %v7275_v23  ;;  %v2224_v50 = vadd.f32 %v2223_v30, %v2183_v40  ;;  %v7197_v23 = vld [vmem:[#allocation8 + $0x2a8] ss:$28 sps:$4 sm:$0xff]   ;;  %v7200_v30 = vld [vmem:[#allocation8 + $0x270] ss:$28 sps:$4 sm:$0xff]  }
 0x1e5   :  { %v2225_v36 = vpop.f32.mrf.mxu1  ;;  %4704 = vmatprep.subr.bf16.mxu1 %v7283_v26  ;;  %v7202_v26 = vld [vmem:[#allocation8 + $0x274] ss:$28 sps:$4 sm:$0xff]   ;;  %v7218_v40 = vld [vmem:[#allocation8 + $0x1c8] ss:$28 sps:$4 sm:$0xff]  }
 0x1e6   :  { %v2226_v52 = vadd.f32 %v2225_v36, %v2185_v48  ;;  %v7212_v36 = vld [vmem:[#allocation8 + $0x200] ss:$28 sps:$4 sm:$0xff]   ;;  %v7224_v48 = vld [vmem:[#allocation8 + $0x890] ss:$28 sps:$4 sm:$0xff]  }
 0x1e7   :  { %v2227_v39 = vpop.f32.mrf.mxu1 }
 0x1e8   :  { %4705 = vmatpush2.bf16.msra.mxu1 %v7281_v34  ;;  %v7206_v34 = vld [vmem:[#allocation8 + $0x238] ss:$28 sps:$4 sm:$0xff]   ;;  %v7220_v39 = vld [vmem:[#allocation8 + $0x1cc] ss:$28 sps:$4 sm:$0xff]  }
 0x1e9   :  { %v2228_v43 = vpop.f32.mrf.mxu1  ;;  %4706 = vmatprep.subr.bf16.mxu1 %v7289_v35  ;;  %v7214_v35 = vld [vmem:[#allocation8 + $0x204] ss:$28 sps:$4 sm:$0xff]  }
 0x1eb   :  { %v2264_v6 = vpop.f32.mrf.mxu1 }
 0x1ec   :  { %v2265_v17 = vadd.f32 %v2264_v6, %v2224_v50  ;;  %4707 = vmatpush2.bf16.msra.mxu1 %v7287_v41  ;;  %v7226_v41 = vld [vmem:[#allocation8 + $0x894] ss:$28 sps:$4 sm:$0xff]   ;;  %v7232_v50 = vld [vmem:[#allocation8 + $0x85c] ss:$28 sps:$4 sm:$0xff]  }
 0x1ed   :  { %v2266_v55 = vpop.f32.mrf.mxu1  ;;  %4708 = vmatprep.subr.bf16.mxu1 %v7295_v42 }
 0x1ee   :  { %v2267_v16 = vadd.f32 %v2266_v55, %v2226_v52  ;;  %v2437_v56 = vmul.f32 %v2265_v17, %v2265_v17  ;;  %v7230_v17 = vld [vmem:[#allocation8 + $0x858] ss:$28 sps:$4 sm:$0xff]  }
 0x1ef   :  { %v2268_v57 = vpop.f32.mrf.mxu1 }
 0x1f0   :  { %v2438_v18 = vmul.f32 %v2267_v16, %v2267_v16  ;;  %4709 = vmatpush2.bf16.msra.mxu1 %v7293_v53  ;;  %v7954_v61 = vpack.c.bf16 %v2437_v56, %v2437_v56  ;;  %v7238_v53 = vld [vmem:[#allocation8 + $0x824] ss:$28 sps:$4 sm:$0xff]   ;;  %v7244_v56 = vld [vmem:[#allocation8 + $0x7ec] ss:$28 sps:$4 sm:$0xff]  }
 0x1f1   :  { %v2269_v59 = vpop.f32.mrf.mxu1  ;;  %4760 = vmatprep.subr.bf16.mxu1 %v7301_v54  ;;  %v7236_v16 = vld [vmem:[#allocation8 + $0x820] ss:$28 sps:$4 sm:$0xff]   ;;  %v7242_v57 = vld [vmem:[#allocation8 + $0x7e8] ss:$28 sps:$4 sm:$0xff]  }
 0x1f2   :  { %v7952_v60 = vpack.c.bf16 %v2438_v18, %v2438_v18  ;;  %v7250_v18 = vld [vmem:[#allocation8 + $0x7b4] ss:$28 sps:$4 sm:$0xff]   ;;  %v7256_v59 = vld [vmem:[#allocation8 + $0x77c] ss:$28 sps:$4 sm:$0xff]  }
 0x1f4   :  { %4669 = vmatprep.mubr.bf16.mxu0 %v7952_v60 }
 0x1f5   :  { %4670 = vmatmul.mubr.bf16.vlgmr.msra.gmra.mxu0 %v7954_v61 }
 0x1f6   :  { %4720 = vmatpush1.bf16.msra.mxu0 %v7164_v58  ;;  %4751 = vmatprep.mubr.bf16.mxu0 %v7932_v51  ;;  %v7248_v58 = vld [vmem:[#allocation8 + $0x7b0] ss:$28 sps:$4 sm:$0xff]  }
 0x1f7   :  { %4721 = vmatprep.subr.bf16.mxu0 %v7169_v62  ;;  %v7254_v62 = vld [vmem:[#allocation8 + $0x778] ss:$28 sps:$4 sm:$0xff]  }
 0x1fa   :  { %4722 = vmatpush1.bf16.msra.mxu0 %v7167_v63  ;;  %v7262_v63 = vld [vmem:[#allocation8 + $0x744] ss:$28 sps:$4 sm:$0xff]  }
 0x1fb   :  { %4723 = vmatprep.subr.bf16.mxu0 %v7172_v29  ;;  %v7260_v29 = vld [vmem:[#allocation8 + $0x740] ss:$28 sps:$4 sm:$0xff]  }
 0x1fe   :  { %4724 = vmatpush1.bf16.msra.mxu0 %v7170_v0  ;;  %v7268_v0 = vld [vmem:[#allocation8 + $0x70c] ss:$28 sps:$4 sm:$0xff]  }
 0x1ff   :  { %4725 = vmatprep.subr.bf16.mxu0 %v7175_v1  ;;  %v7266_v1 = vld [vmem:[#allocation8 + $0x708] ss:$28 sps:$4 sm:$0xff]  }
 0x202   :  { %4726 = vmatpush1.bf16.msra.mxu0 %v7173_v2  ;;  %v7274_v2 = vld [vmem:[#allocation8 + $0xa54] ss:$28 sps:$4 sm:$0xff]  }
 0x203   :  { %4727 = vmatprep.subr.bf16.mxu0 %v7178_v3  ;;  %v433_v3 = vsub.s32 4, %v7897_v25 }
 0x206   :  { %4728 = vmatpush1.bf16.msra.mxu0 %v7176_v44  ;;  %v437_v44 = vsub.s32 5, %v7897_v25 }
 0x207   :  { %4729 = vmatprep.subr.bf16.mxu0 %v7181_v4  ;;  %v7272_v4 = vld [vmem:[#allocation8 + $0xa50] ss:$28 sps:$4 sm:$0xff]  }
 0x20a   :  { %4730 = vmatpush1.bf16.msra.mxu0 %v7179_v5  ;;  %v7280_v5 = vld [vmem:[#allocation8 + $0xa1c] ss:$28 sps:$4 sm:$0xff]  }
 0x20b   :  { %4731 = vmatprep.subr.bf16.mxu0 %v7184_v8  ;;  %v434_v8 = vrot.slane %v7942_v27, %v433_v3 }
 0x20e   :  { %4732 = vmatpush1.bf16.msra.mxu0 %v7182_v9  ;;  %v438_v9 = vrot.slane %v7942_v27, %v437_v44 }
 0x20f   :  { %4733 = vmatprep.subr.bf16.mxu0 %v7187_v10  ;;  %v7278_v10 = vld [vmem:[#allocation8 + $0xa18] ss:$28 sps:$4 sm:$0xff]  }
 0x212   :  { %4734 = vmatpush1.bf16.msra.mxu0 %v7185_v15  ;;  %v7286_v15 = vld [vmem:[#allocation8 + $0x9e4] ss:$28 sps:$4 sm:$0xff]  }
 0x213   :  { %4735 = vmatprep.subr.bf16.mxu0 %v7190_v11 }
 0x216   :  { %4736 = vmatpush2.bf16.msra.mxu0 %v7188_v45 }
 0x217   :  { %4737 = vmatprep.subr.bf16.mxu0 %v7193_v46 }
 0x21a   :  { %4738 = vmatpush2.bf16.msra.mxu0 %v7191_v7  ;;  %v7959_v33 = vpop.f32.mrf.mxu0  ;;  %v7284_v7 = vld [vmem:[#allocation8 + $0x9e0] ss:$28 sps:$4 sm:$0xff]  }
 0x21b   :  { %4739 = vmatprep.subr.bf16.mxu0 %v7196_v13  ;;  %v2306_v11 = vadd.f32 %v7959_v33, %v434_v8  ;;  %v7332_v8 = vld [vmem:[#allocation8 + $0x4a8] ss:$28 sps:$4 sm:$0xff]  }
 0x21c   :  { %v7961_v21 = vpop.f32.mrf.mxu0 }
 0x21d   :  { %v2308_v45 = vadd.f32 %v7961_v21, %v438_v9  ;;  %v7340_v9 = vld [vmem:[#allocation8 + $0x474] ss:$28 sps:$4 sm:$0xff]  }
 0x21e   :  { %4740 = vmatpush2.bf16.msra.mxu0 %v7194_v14  ;;  %v2309_v24 = vpop.f32.mrf.mxu0  ;;  %v7292_v14 = vld [vmem:[#allocation8 + $0x9ac] ss:$28 sps:$4 sm:$0xff]  }
 0x21f   :  { %4741 = vmatprep.subr.bf16.mxu0 %v7199_v19 }
 0x220   :  { %v2310_v28 = vpop.f32.mrf.mxu0 }
 0x221   :  { %v7290_v28 = vld [vmem:[#allocation8 + $0x9a8] ss:$28 sps:$4 sm:$0xff]  }
 0x222   :  { %4742 = vmatpush2.bf16.msra.mxu0 %v7197_v23 }
 0x223   :  { %4743 = vmatprep.subr.bf16.mxu0 %v7202_v26 }
 0x226   :  { %4744 = vmatpush2.bf16.msra.mxu0 %v7200_v30 }
 0x227   :  { %4745 = vmatprep.subr.bf16.mxu0 %v7208_v32  ;;  %v7298_v32 = vld [vmem:[#allocation8 + $0x974] ss:$28 sps:$4 sm:$0xff]  }
 0x22a   :  { %4746 = vmatpush2.bf16.msra.mxu0 %v7206_v34 }
 0x22b   :  { %v2346_v37 = vpop.f32.mrf.mxu1  ;;  %4747 = vmatprep.subr.bf16.mxu0 %v7214_v35 }
 0x22c   :  { %v2347_v46 = vadd.f32 %v2346_v37, %v2306_v11  ;;  %v7338_v11 = vld [vmem:[#allocation8 + $0x470] ss:$28 sps:$4 sm:$0xff]  }
 0x22d   :  { %v7963_v47 = vpop.f32.mrf.mxu1 }
 0x22e   :  { %4748 = vmatpush2.bf16.msra.mxu0 %v7212_v36  ;;  %v2349_v19 = vadd.f32 %v7963_v47, %v2308_v45  ;;  %v7296_v36 = vld [vmem:[#allocation8 + $0x970] ss:$28 sps:$4 sm:$0xff]   ;;  %v7304_v47 = vld [vmem:[#allocation8 + $0x93c] ss:$28 sps:$4 sm:$0xff]  }
 0x22f   :  { %4749 = vmatprep.subr.bf16.mxu0 %v7220_v39  ;;  %v2350_v42 = vpop.f32.mrf.mxu1  ;;  %v7299_v39 = vld [vmem:[#allocation8 + $0x510] ss:$28 sps:$4 sm:$0xff]   ;;  %v7346_v45 = vld [vmem:[#allocation8 + $0x43c] ss:$28 sps:$4 sm:$0xff]  }
 0x230   :  { %v7302_v42 = vld [vmem:[#allocation8 + $0x938] ss:$28 sps:$4 sm:$0xff]  }
 0x231   :  { %v2351_v43 = vpop.f32.mrf.mxu1 }
 0x232   :  { %4750 = vmatpush2.bf16.msra.mxu0 %v7218_v40  ;;  %v7310_v43 = vld [vmem:[#allocation8 + $0x904] ss:$28 sps:$4 sm:$0xff]  }
 0x233   :  { %4801 = vmatprep.subr.bf16.mxu0 %v7226_v41  ;;  %v2428_v6 = vpop.f32.mrf.mxu1  ;;  %v7307_v41 = vld [vmem:[#allocation8 + $0x4dc] ss:$28 sps:$4 sm:$0xff]  }
 0x235   :  { %4752 = vmatmul.mubr.bf16.vlgmr.msra.gmra.mxu0 %v7937_v38  ;;  %v2430_v52 = vpop.f32.mrf.mxu1 }
 0x236   :  { %4802 = vmatpush1.bf16.msra.mxu0 %v7224_v48  ;;  %v7305_v48 = vld [vmem:[#allocation8 + $0x4d8] ss:$28 sps:$4 sm:$0xff]  }
 0x237   :  { %4803 = vmatprep.subr.bf16.mxu0 %v7232_v50  ;;  %v2432_v54 = vpop.f32.mrf.mxu1  ;;  %v7313_v50 = vld [vmem:[#allocation8 + $0x4a4] ss:$28 sps:$4 sm:$0xff]  }
 0x238   :  { %v7314_v54 = vld [vmem:[#allocation8 + $0x8c8] ss:$28 sps:$4 sm:$0xff]  }
 0x239   :  { %v2433_v55 = vpop.f32.mrf.mxu1 }
 0x23a   :  { %4804 = vmatpush1.bf16.msra.mxu0 %v7230_v17  ;;  %v7311_v17 = vld [vmem:[#allocation8 + $0x4a0] ss:$28 sps:$4 sm:$0xff]  }
 0x23b   :  { %4805 = vmatprep.subr.bf16.mxu0 %v7238_v53  ;;  %v7319_v53 = vld [vmem:[#allocation8 + $0x46c] ss:$28 sps:$4 sm:$0xff]   ;;  %v7322_v55 = vld [vmem:[#allocation8 + $0x51c] ss:$28 sps:$4 sm:$0xff]  }
 0x23e   :  { %4806 = vmatpush1.bf16.msra.mxu0 %v7236_v16  ;;  %v7317_v16 = vld [vmem:[#allocation8 + $0x468] ss:$28 sps:$4 sm:$0xff]  }
 0x23f   :  { %4807 = vmatprep.subr.bf16.mxu0 %v7244_v56  ;;  %v7325_v56 = vld [vmem:[#allocation8 + $0x434] ss:$28 sps:$4 sm:$0xff]  }
 0x242   :  { %4808 = vmatpush1.bf16.msra.mxu0 %v7242_v57  ;;  %v7320_v57 = vld [vmem:[#allocation8 + $0x518] ss:$28 sps:$4 sm:$0xff]  }
 0x243   :  { %4809 = vmatprep.subr.bf16.mxu0 %v7250_v18 }
 0x246   :  { %4810 = vmatpush1.bf16.msra.mxu0 %v7248_v58  ;;  %v7328_v58 = vld [vmem:[#allocation8 + $0x4e4] ss:$28 sps:$4 sm:$0xff]  }
 0x247   :  { %4811 = vmatprep.subr.bf16.mxu0 %v7256_v59  ;;  %v7323_v59 = vld [vmem:[#allocation8 + $0x430] ss:$28 sps:$4 sm:$0xff]  }
 0x24a   :  { %4812 = vmatpush1.bf16.msra.mxu0 %v7254_v62 }
 0x24b   :  { %4813 = vmatprep.subr.bf16.mxu0 %v7262_v63  ;;  %v7331_v63 = vld [vmem:[#allocation8 + $0x3fc] ss:$28 sps:$4 sm:$0xff]  }
 0x24e   :  { %4814 = vmatpush1.bf16.msra.mxu0 %v7260_v29  ;;  %v7326_v29 = vld [vmem:[#allocation8 + $0x4e0] ss:$28 sps:$4 sm:$0xff]  }
 0x24f   :  { %4815 = vmatprep.subr.bf16.mxu0 %v7268_v0 }
 0x252   :  { %4816 = vmatpush1.bf16.msra.mxu0 %v7266_v1  ;;  %v7334_v1 = vld [vmem:[#allocation8 + $0x4ac] ss:$28 sps:$4 sm:$0xff]  }
 0x253   :  { %4817 = vmatprep.subr.bf16.mxu0 %v7274_v2  ;;  %v7329_v2 = vld [vmem:[#allocation8 + $0x3f8] ss:$28 sps:$4 sm:$0xff]  }
 0x256   :  { %4818 = vmatpush2.bf16.msra.mxu0 %v7272_v4 }
 0x257   :  { %4819 = vmatprep.subr.bf16.mxu0 %v7280_v5  ;;  %v7337_v5 = vld [vmem:[#allocation8 + $0x3c4] ss:$28 sps:$4 sm:$0xff]  }
 0x25a   :  { %4820 = vmatpush2.bf16.msra.mxu0 %v7278_v10  ;;  %v2387_v13 = vpop.f32.mrf.mxu0  ;;  %v7335_v10 = vld [vmem:[#allocation8 + $0x3c0] ss:$28 sps:$4 sm:$0xff]  }
 0x25b   :  { %4821 = vmatprep.subr.bf16.mxu0 %v7286_v15  ;;  %v2388_v23 = vadd.f32 %v2387_v13, %v2347_v46  ;;  %v7343_v15 = vld [vmem:[#allocation8 + $0x38c] ss:$28 sps:$4 sm:$0xff]   ;;  %v7344_v13 = vld [vmem:[#allocation8 + $0x438] ss:$28 sps:$4 sm:$0xff]  }
 0x25c   :  { %v2389_v24 = vpop.f32.mrf.mxu0  ;;  %v7341_v46 = vld [vmem:[#allocation8 + $0x388] ss:$28 sps:$4 sm:$0xff]  }
 0x25d   :  { %v2429_v26 = vadd.f32 %v2428_v6, %v2388_v23  ;;  %v2390_v27 = vadd.f32 %v2389_v24, %v2349_v19  ;;  %v7308_v6 = vld [vmem:[#allocation8 + $0x900] ss:$28 sps:$4 sm:$0xff]   ;;  %v7347_v19 = vld [vmem:[#allocation8 + $0x6d0] ss:$28 sps:$4 sm:$0xff]  }
 0x25e   :  { %4822 = vmatpush2.bf16.msra.mxu0 %v7284_v7  ;;  %v2391_v30 = vpop.f32.mrf.mxu0  ;;  %v7349_v7 = vld [vmem:[#allocation8 + $0x6d4] ss:$28 sps:$4 sm:$0xff]   ;;  %v7355_v23 = vld [vmem:[#allocation8 + $0x69c] ss:$28 sps:$4 sm:$0xff]  }
 0x25f   :  { %4823 = vmatprep.subr.bf16.mxu0 %v7292_v14  ;;  %v2431_v33 = vadd.f32 %v2430_v52, %v2390_v27  ;;  %v2439_v34 = vmul.f32 %v2429_v26, %v2429_v26  ;;  %v7316_v52 = vld [vmem:[#allocation8 + $0x8cc] ss:$28 sps:$4 sm:$0xff]   ;;  %v7352_v14 = vld [vmem:[#allocation8 + $0x404] ss:$28 sps:$4 sm:$0xff]   ;;  %v7353_v27 = vld [vmem:[#allocation8 + $0x698] ss:$28 sps:$4 sm:$0xff]  }
 0x260   :  { %v2392_v21 = vpop.f32.mrf.mxu0  ;;  %v7350_v24 = vld [vmem:[#allocation8 + $0x400] ss:$28 sps:$4 sm:$0xff]   ;;  %v7358_v26 = vld [vmem:[#allocation8 + $0x3cc] ss:$28 sps:$4 sm:$0xff]  }
 0x261   :  { %v2440_v35 = vmul.f32 %v2431_v33, %v2431_v33  ;;  %v7979_v40 = vpack.c.bf16 %v2439_v34, %v2439_v34  ;;  %v7356_v30 = vld [vmem:[#allocation8 + $0x3c8] ss:$28 sps:$4 sm:$0xff]   ;;  %v7359_v33 = vld [vmem:[#allocation8 + $0x660] ss:$28 sps:$4 sm:$0xff]   ;;  %v7362_v21 = vld [vmem:[#allocation8 + $0x390] ss:$28 sps:$4 sm:$0xff]  }
 0x262   :  { %4824 = vmatpush2.bf16.msra.mxu0 %v7290_v28  ;;  %v7361_v28 = vld [vmem:[#allocation8 + $0x664] ss:$28 sps:$4 sm:$0xff]   ;;  %v7367_v34 = vld [vmem:[#allocation8 + $0x62c] ss:$28 sps:$4 sm:$0xff]  }
 0x263   :  { %4825 = vmatprep.subr.bf16.mxu0 %v7298_v32  ;;  %v7977_v37 = vpack.c.bf16 %v2440_v35, %v2440_v35  ;;  %v7364_v32 = vld [vmem:[#allocation8 + $0x394] ss:$28 sps:$4 sm:$0xff]   ;;  %v7370_v35 = vld [vmem:[#allocation8 + $0x6dc] ss:$28 sps:$4 sm:$0xff]  }
 0x265   :  { %4710 = vmatprep.mubr.bf16.mxu1 %v7977_v37  ;;  %4833 = vmatprep.mubr.bf16.mxu0 %v7977_v37 }
 0x266   :  { %4826 = vmatpush2.bf16.msra.mxu0 %v7296_v36  ;;  %4711 = vmatmul.mubr.bf16.vlgmr.msra.gmra.mxu1 %v7979_v40  ;;  %v7365_v36 = vld [vmem:[#allocation8 + $0x628] ss:$28 sps:$4 sm:$0xff]  }
 0x267   :  { %4761 = vmatpush1.bf16.msra.mxu1 %v7299_v39  ;;  %4827 = vmatprep.subr.bf16.mxu0 %v7304_v47  ;;  %v7373_v39 = vld [vmem:[#allocation8 + $0x5f4] ss:$28 sps:$4 sm:$0xff]  }
 0x268   :  { %4792 = vmatprep.mubr.bf16.mxu1 %v7952_v60  ;;  %4762 = vmatprep.subr.bf16.mxu1 %v7307_v41  ;;  %v7368_v47 = vld [vmem:[#allocation8 + $0x6d8] ss:$28 sps:$4 sm:$0xff]   ;;  %v7376_v41 = vld [vmem:[#allocation8 + $0x6a4] ss:$28 sps:$4 sm:$0xff]  }
 0x26a   :  { %4828 = vmatpush2.bf16.msra.mxu0 %v7302_v42  ;;  %v7371_v42 = vld [vmem:[#allocation8 + $0x5f0] ss:$28 sps:$4 sm:$0xff]  }
 0x26b   :  { %4829 = vmatprep.subr.bf16.mxu0 %v7310_v43  ;;  %4763 = vmatpush1.bf16.msra.mxu1 %v7305_v48  ;;  %v7379_v43 = vld [vmem:[#allocation8 + $0x5bc] ss:$28 sps:$4 sm:$0xff]  }
 0x26c   :  { %4764 = vmatprep.subr.bf16.mxu1 %v7313_v50  ;;  %v7374_v48 = vld [vmem:[#allocation8 + $0x6a0] ss:$28 sps:$4 sm:$0xff]   ;;  %v7382_v50 = vld [vmem:[#allocation8 + $0x66c] ss:$28 sps:$4 sm:$0xff]  }
 0x26e   :  { %4830 = vmatpush2.bf16.msra.mxu0 %v7308_v6  ;;  %v7377_v6 = vld [vmem:[#allocation8 + $0x5b8] ss:$28 sps:$4 sm:$0xff]  }
 0x26f   :  { %4831 = vmatprep.subr.bf16.mxu0 %v7316_v52  ;;  %4765 = vmatpush1.bf16.msra.mxu1 %v7311_v17  ;;  %v7385_v52 = vld [vmem:[#allocation8 + $0x584] ss:$28 sps:$4 sm:$0xff]  }
 0x270   :  { %4766 = vmatprep.subr.bf16.mxu1 %v7319_v53  ;;  %v7380_v17 = vld [vmem:[#allocation8 + $0x668] ss:$28 sps:$4 sm:$0xff]   ;;  %v7388_v53 = vld [vmem:[#allocation8 + $0x634] ss:$28 sps:$4 sm:$0xff]  }
 0x272   :  { %4832 = vmatpush2.bf16.msra.mxu0 %v7314_v54  ;;  %v7383_v54 = vld [vmem:[#allocation8 + $0x580] ss:$28 sps:$4 sm:$0xff]  }
 0x273   :  { %v7985_v18 = vpop.f32.mrf.mxu1  ;;  %4883 = vmatprep.subr.bf16.mxu0 %v7322_v55  ;;  %4767 = vmatpush1.bf16.msra.mxu1 %v7317_v16  ;;  %v7391_v55 = vld [vmem:[#allocation8 + $0x54c] ss:$28 sps:$4 sm:$0xff]  }
 0x274   :  { %4768 = vmatprep.subr.bf16.mxu1 %v7325_v56  ;;  %v7386_v16 = vld [vmem:[#allocation8 + $0x630] ss:$28 sps:$4 sm:$0xff]   ;;  %v7394_v56 = vld [vmem:[#allocation8 + $0x5fc] ss:$28 sps:$4 sm:$0xff]  }
 0x275   :  { %v7987_v62 = vpop.f32.mrf.mxu1  ;;  %4834 = vmatmul.mubr.bf16.vlgmr.msra.gmra.mxu0 %v7979_v40 }
 0x276   :  { %4884 = vmatpush1.bf16.msra.mxu0 %v7320_v57  ;;  %4915 = vmatprep.mubr.bf16.mxu0 %v7952_v60  ;;  %v7389_v57 = vld [vmem:[#allocation8 + $0x548] ss:$28 sps:$4 sm:$0xff]  }
 0x277   :  { %v4634_v0 = vpop.f32.mrf.mxu1  ;;  %4885 = vmatprep.subr.bf16.mxu0 %v7328_v58  ;;  %4769 = vmatpush1.bf16.msra.mxu1 %v7323_v59  ;;  %v7397_v58 = vld [vmem:[#allocation8 + $0x19c] ss:$28 sps:$4 sm:$0xff]  }
 0x278   :  { %4770 = vmatprep.subr.bf16.mxu1 %v7331_v63  ;;  %v7392_v59 = vld [vmem:[#allocation8 + $0x5f8] ss:$28 sps:$4 sm:$0xff]   ;;  %v7400_v63 = vld [vmem:[#allocation8 + $0x5c4] ss:$28 sps:$4 sm:$0xff]  }
 0x279   :  { %v4635_v4 = vpop.f32.mrf.mxu1  ;;  %v7403_v0 = vld [vmem:[#allocation8 + $0x164] ss:$28 sps:$4 sm:$0xff]  }
 0x27a   :  { %4886 = vmatpush1.bf16.msra.mxu0 %v7326_v29  ;;  %v7395_v29 = vld [vmem:[#allocation8 + $0x198] ss:$28 sps:$4 sm:$0xff]   ;;  %v7401_v4 = vld [vmem:[#allocation8 + $0x160] ss:$28 sps:$4 sm:$0xff]  }
 0x27b   :  { %4887 = vmatprep.subr.bf16.mxu0 %v7334_v1  ;;  %4771 = vmatpush1.bf16.msra.mxu1 %v7329_v2  ;;  %v7398_v1 = vld [vmem:[#allocation8 + $0x5c0] ss:$28 sps:$4 sm:$0xff]   ;;  %v7406_v2 = vld [vmem:[#allocation8 + $0x58c] ss:$28 sps:$4 sm:$0xff]  }
 0x27c   :  { %4772 = vmatprep.subr.bf16.mxu1 %v7337_v5  ;;  %v7409_v5 = vld [vmem:[#allocation8 + $0x12c] ss:$28 sps:$4 sm:$0xff]  }
 0x27e   :  { %4888 = vmatpush1.bf16.msra.mxu0 %v7332_v8  ;;  %v7404_v8 = vld [vmem:[#allocation8 + $0x588] ss:$28 sps:$4 sm:$0xff]  }
 0x27f   :  { %4889 = vmatprep.subr.bf16.mxu0 %v7340_v9  ;;  %4773 = vmatpush1.bf16.msra.mxu1 %v7335_v10  ;;  %v7412_v9 = vld [vmem:[#allocation8 + $0x554] ss:$28 sps:$4 sm:$0xff]   ;;  %v7407_v10 = vld [vmem:[#allocation8 + $0x128] ss:$28 sps:$4 sm:$0xff]  }
 0x280   :  { %4774 = vmatprep.subr.bf16.mxu1 %v7343_v15  ;;  %v7993_v15 = vld [vmem:[#allocation10] sm:$0xff] }
 0x282   :  { %4890 = vmatpush1.bf16.msra.mxu0 %v7338_v11  ;;  %v7415_v11 = vld [vmem:[#allocation8 + $0xf4] ss:$28 sps:$4 sm:$0xff]  }
 0x283   :  { %4891 = vmatprep.subr.bf16.mxu0 %v7346_v45  ;;  %4775 = vmatpush1.bf16.msra.mxu1 %v7341_v46  ;;  %v7410_v45 = vld [vmem:[#allocation8 + $0x550] ss:$28 sps:$4 sm:$0xff]   ;;  %v7416_v46 = vld [vmem:[#allocation8 + $0x360] ss:$28 sps:$4 sm:$0xff]  }
 0x284   :  { %4776 = vmatprep.subr.bf16.mxu1 %v7349_v7  ;;  %v2836_v7 = vrot.slane %v7993_v15, %v417_v31  ;;  %v7425_v31 = vld [vmem:[#allocation8 + $0x84] ss:$28 sps:$4 sm:$0xff]  }
 0x286   :  { %4892 = vmatpush1.bf16.msra.mxu0 %v7344_v13  ;;  %v7413_v13 = vld [vmem:[#allocation8 + $0xf0] ss:$28 sps:$4 sm:$0xff]  }
 0x287   :  { %4893 = vmatprep.subr.bf16.mxu0 %v7352_v14  ;;  %4777 = vmatpush2.bf16.msra.mxu1 %v7347_v19  ;;  %v7420_v14 = vld [vmem:[#allocation8 + $0xbc] ss:$28 sps:$4 sm:$0xff]   ;;  %v2840_v19 = vrot.slane %v7993_v15, %v421_v49  ;;  %v7422_v49 = vld [vmem:[#allocation8 + $0x168] ss:$28 sps:$4 sm:$0xff]  }
 0x288   :  { %4778 = vmatprep.subr.bf16.mxu1 %v7355_v23  ;;  %v7417_v23 = vld [vmem:[#allocation8 + $0x1a0] ss:$28 sps:$4 sm:$0xff]  }
 0x28a   :  { %4894 = vmatpush1.bf16.msra.mxu0 %v7350_v24  ;;  %v7421_v24 = vld [vmem:[#allocation8 + $0x328] ss:$28 sps:$4 sm:$0xff]  }
 0x28b   :  { %4895 = vmatprep.subr.bf16.mxu0 %v7358_v26  ;;  %4779 = vmatpush2.bf16.msra.mxu1 %v7353_v27  ;;  %v4631_v26 = vadd.f32 %v7985_v18, %v2836_v7  ;;  %v7418_v27 = vld [vmem:[#allocation8 + $0xb8] ss:$28 sps:$4 sm:$0xff]   ;;  %v7423_v18 = vld [vmem:[#allocation8 + $0x80] ss:$28 sps:$4 sm:$0xff]   ;;  %v7467_v7 = vld [vmem:[#allocation8 + $0x830] ss:$28 sps:$4 sm:$0xff]  }
 0x28c   :  { %4780 = vmatprep.subr.bf16.mxu1 %v7361_v28 }
 0x28e   :  { %4896 = vmatpush1.bf16.msra.mxu0 %v7356_v30  ;;  %v4633_v30 = vadd.f32 %v7987_v62, %v2840_v19  ;;  %v7431_v62 = vld [vmem:[#allocation8 + $0x2b8] ss:$28 sps:$4 sm:$0xff]  }
 0x28f   :  { %4897 = vmatprep.subr.bf16.mxu0 %v7364_v32  ;;  %4781 = vmatpush2.bf16.msra.mxu1 %v7359_v33  ;;  %v7475_v19 = vld [vmem:[#allocation8 + $0x1d4] ss:$28 sps:$4 sm:$0xff]  }
 0x290   :  { %4782 = vmatprep.subr.bf16.mxu1 %v7367_v34  ;;  %v7426_v34 = vld [vmem:[#allocation8 + $0x2f0] ss:$28 sps:$4 sm:$0xff]  }
 0x292   :  { %4898 = vmatpush1.bf16.msra.mxu0 %v7362_v21 }
 0x293   :  { %4899 = vmatprep.subr.bf16.mxu0 %v7370_v35  ;;  %4783 = vmatpush2.bf16.msra.mxu1 %v7365_v36  ;;  %v7430_v36 = vld [vmem:[#allocation8 + $0x4c] ss:$28 sps:$4 sm:$0xff]  }
 0x294   :  { %4784 = vmatprep.subr.bf16.mxu1 %v7373_v39  ;;  %v7427_v39 = vld [vmem:[#allocation8 + $0x130] ss:$28 sps:$4 sm:$0xff]  }
 0x296   :  { %4900 = vmatpush2.bf16.msra.mxu0 %v7368_v47 }
 0x297   :  { %4901 = vmatprep.subr.bf16.mxu0 %v7376_v41  ;;  %4785 = vmatpush2.bf16.msra.mxu1 %v7371_v42  ;;  %v7428_v41 = vld [vmem:[#allocation8 + $0x48] ss:$28 sps:$4 sm:$0xff]   ;;  %v7432_v42 = vld [vmem:[#allocation8 + $0xf8] ss:$28 sps:$4 sm:$0xff]  }
 0x298   :  { %4786 = vmatprep.subr.bf16.mxu1 %v7379_v43  ;;  %v7436_v43 = vld [vmem:[#allocation8 + $0x280] ss:$28 sps:$4 sm:$0xff]  }
 0x29a   :  { %4902 = vmatpush2.bf16.msra.mxu0 %v7374_v48  ;;  %v7433_v48 = vld [vmem:[#allocation8 + $0x10] ss:$28 sps:$4 sm:$0xff]  }
 0x29b   :  { %4903 = vmatprep.subr.bf16.mxu0 %v7382_v50  ;;  %4787 = vmatpush2.bf16.msra.mxu1 %v7377_v6  ;;  %v7440_v50 = vld [vmem:[#allocation8 + $0x35c] ss:$28 sps:$4 sm:$0xff]  }
 0x29c   :  { %4788 = vmatprep.subr.bf16.mxu1 %v7385_v52  ;;  %v7437_v6 = vld [vmem:[#allocation8 + $0xc0] ss:$28 sps:$4 sm:$0xff]   ;;  %v7441_v52 = vld [vmem:[#allocation8 + $0x248] ss:$28 sps:$4 sm:$0xff]  }
 0x29e   :  { %4904 = vmatpush2.bf16.msra.mxu0 %v7380_v17  ;;  %v7438_v17 = vld [vmem:[#allocation8 + $0x358] ss:$28 sps:$4 sm:$0xff]  }
 0x29f   :  { %4905 = vmatprep.subr.bf16.mxu0 %v7388_v53  ;;  %4789 = vmatpush2.bf16.msra.mxu1 %v7383_v54  ;;  %v7445_v53 = vld [vmem:[#allocation8 + $0x324] ss:$28 sps:$4 sm:$0xff]  }
 0x2a0   :  { %4790 = vmatprep.subr.bf16.mxu1 %v7391_v55  ;;  %v7442_v54 = vld [vmem:[#allocation8 + $0x88] ss:$28 sps:$4 sm:$0xff]   ;;  %v7446_v55 = vld [vmem:[#allocation8 + $0x210] ss:$28 sps:$4 sm:$0xff]  }
 0x2a2   :  { %4906 = vmatpush2.bf16.msra.mxu0 %v7386_v16  ;;  %v7443_v16 = vld [vmem:[#allocation8 + $0x320] ss:$28 sps:$4 sm:$0xff]  }
 0x2a3   :  { %4907 = vmatprep.subr.bf16.mxu0 %v7394_v56  ;;  %4791 = vmatpush2.bf16.msra.mxu1 %v7389_v57  ;;  %v7450_v56 = vld [vmem:[#allocation8 + $0x2ec] ss:$28 sps:$4 sm:$0xff]  }
 0x2a4   :  { %4842 = vmatprep.subr.bf16.mxu1 %v7397_v58  ;;  %v7447_v57 = vld [vmem:[#allocation8 + $0x50] ss:$28 sps:$4 sm:$0xff]   ;;  %v7451_v58 = vld [vmem:[#allocation8 + $0x1d8] ss:$28 sps:$4 sm:$0xff]  }
 0x2a6   :  { %4908 = vmatpush2.bf16.msra.mxu0 %v7392_v59  ;;  %4793 = vmatmul.mubr.bf16.vlgmr.msra.gmra.mxu1 %v7954_v61  ;;  %v7448_v59 = vld [vmem:[#allocation8 + $0x2e8] ss:$28 sps:$4 sm:$0xff]  }
 0x2a7   :  { %4909 = vmatprep.subr.bf16.mxu0 %v7400_v63  ;;  %4843 = vmatpush1.bf16.msra.mxu1 %v7395_v29  ;;  %v7455_v63 = vld [vmem:[#allocation8 + $0x2b4] ss:$28 sps:$4 sm:$0xff]  }
 0x2a8   :  { %4874 = vmatprep.mubr.bf16.mxu1 %v7932_v51  ;;  %4844 = vmatprep.subr.bf16.mxu1 %v7403_v0  ;;  %v7452_v29 = vld [vmem:[#allocation8 + $0x18] ss:$28 sps:$4 sm:$0xff]   ;;  %v7456_v0 = vld [vmem:[#allocation8 + $0xa60] ss:$28 sps:$4 sm:$0xff]  }
 0x2aa   :  { %4910 = vmatpush2.bf16.msra.mxu0 %v7398_v1  ;;  %v7453_v1 = vld [vmem:[#allocation8 + $0x2b0] ss:$28 sps:$4 sm:$0xff]  }
 0x2ab   :  { %4911 = vmatprep.subr.bf16.mxu0 %v7406_v2  ;;  %4845 = vmatpush1.bf16.msra.mxu1 %v7401_v4  ;;  %v7460_v2 = vld [vmem:[#allocation8 + $0x27c] ss:$28 sps:$4 sm:$0xff]  }
 0x2ac   :  { %4846 = vmatprep.subr.bf16.mxu1 %v7409_v5  ;;  %v7457_v4 = vld [vmem:[#allocation8 + $0x8a0] ss:$28 sps:$4 sm:$0xff]   ;;  %v7461_v5 = vld [vmem:[#allocation8 + $0xa28] ss:$28 sps:$4 sm:$0xff]  }
 0x2ae   :  { %4912 = vmatpush2.bf16.msra.mxu0 %v7404_v8  ;;  %v7458_v8 = vld [vmem:[#allocation8 + $0x278] ss:$28 sps:$4 sm:$0xff]  }
 0x2af   :  { %4913 = vmatprep.subr.bf16.mxu0 %v7412_v9  ;;  %4847 = vmatpush1.bf16.msra.mxu1 %v7407_v10  ;;  %v7465_v9 = vld [vmem:[#allocation8 + $0x244] ss:$28 sps:$4 sm:$0xff]  }
 0x2b0   :  { %4848 = vmatprep.subr.bf16.mxu1 %v7415_v11  ;;  %v7462_v10 = vld [vmem:[#allocation8 + $0x868] ss:$28 sps:$4 sm:$0xff]   ;;  %v7466_v11 = vld [vmem:[#allocation8 + $0x9f0] ss:$28 sps:$4 sm:$0xff]  }
 0x2b2   :  { %4914 = vmatpush2.bf16.msra.mxu0 %v7410_v45  ;;  %v7463_v45 = vld [vmem:[#allocation8 + $0x240] ss:$28 sps:$4 sm:$0xff]  }
 0x2b3   :  { %6442 = vmatprep.subr.bf16.mxu0 %v7416_v46  ;;  %4849 = vmatpush1.bf16.msra.mxu1 %v7413_v13  ;;  %v7470_v46 = vld [vmem:[#allocation8 + $0x20c] ss:$28 sps:$4 sm:$0xff]   ;;  %v7471_v13 = vld [vmem:[#allocation8 + $0x9b8] ss:$28 sps:$4 sm:$0xff]  }
 0x2b4   :  { %4850 = vmatprep.subr.bf16.mxu1 %v7420_v14  ;;  %v7468_v14 = vld [vmem:[#allocation8 + $0x208] ss:$28 sps:$4 sm:$0xff]  }
 0x2b5   :  { %4916 = vmatmul.mubr.bf16.vlgmr.msra.gmra.mxu0 %v7954_v61  ;;  %v4671_v28 = vpop.f32.mrf.mxu0 }
 0x2b6   :  { %v8004_v32 = vadd.f32 %v4671_v28, %v4631_v26  ;;  %6443 = vmatpush3.bf16.msra.mxu0 %v7417_v23  ;;  %4997 = vmatprep.mubr.bf16.mxu0 %v7932_v51  ;;  %v7435_v51 = vld [vmem:[#allocation8 + $0x14] ss:$28 sps:$4 sm:$0xff]   ;;  %v7477_v28 = vld [vmem:[#allocation8 + $0x7c0] ss:$28 sps:$4 sm:$0xff]  }
 0x2b7   :  { %v4673_v33 = vpop.f32.mrf.mxu0  ;;  %6444 = vmatprep.subr.bf16.mxu0 %v7421_v24  ;;  %4851 = vmatpush1.bf16.msra.mxu1 %v7418_v27  ;;  %v7472_v23 = vld [vmem:[#allocation8 + $0x7f8] ss:$28 sps:$4 sm:$0xff]   ;;  %v7476_v24 = vld [vmem:[#allocation8 + $0x980] ss:$28 sps:$4 sm:$0xff]   ;;  %v7473_v26 = vld [vmem:[#allocation8 + $0x1d0] ss:$28 sps:$4 sm:$0xff]  }
 0x2b8   :  { %v8007_v21 = vadd.f32 %v4673_v33, %v4633_v30  ;;  %4852 = vmatprep.subr.bf16.mxu1 %v7425_v31  ;;  %v7480_v27 = vld [vmem:[#allocation8 + $0x89c] ss:$28 sps:$4 sm:$0xff]   ;;  %v7481_v31 = vld [vmem:[#allocation8 + $0x948] ss:$28 sps:$4 sm:$0xff]  }
 0x2b9   :  { %v4675_v35 = vpop.f32.mrf.mxu0  ;;  %v7478_v30 = vld [vmem:[#allocation8 + $0x898] ss:$28 sps:$4 sm:$0xff]   ;;  %v7482_v33 = vld [vmem:[#allocation8 + $0x788] ss:$28 sps:$4 sm:$0xff]  }
 0x2ba   :  { %6445 = vmatpush3.bf16.msra.mxu0 %v7422_v49  ;;  %v7485_v49 = vld [vmem:[#allocation8 + $0x864] ss:$28 sps:$4 sm:$0xff]   ;;  %v7490_v35 = vld [vmem:[#allocation8 + $0x82c] ss:$28 sps:$4 sm:$0xff]  }
 0x2bb   :  { %v4676_v47 = vpop.f32.mrf.mxu0  ;;  %6446 = vmatprep.subr.bf16.mxu0 %v7426_v34  ;;  %4853 = vmatpush1.bf16.msra.mxu1 %v7423_v18  ;;  %v7486_v34 = vld [vmem:[#allocation8 + $0x910] ss:$28 sps:$4 sm:$0xff]   ;;  %v7483_v18 = vld [vmem:[#allocation8 + $0x860] ss:$28 sps:$4 sm:$0xff]  }
 0x2bc   :  { %4854 = vmatprep.subr.bf16.mxu1 %v7430_v36  ;;  %v7487_v36 = vld [vmem:[#allocation8 + $0x750] ss:$28 sps:$4 sm:$0xff]   ;;  %v7488_v47 = vld [vmem:[#allocation8 + $0x828] ss:$28 sps:$4 sm:$0xff]  }
 0x2be   :  { %6447 = vmatpush3.bf16.msra.mxu0 %v7427_v39  ;;  %v7491_v39 = vld [vmem:[#allocation8 + $0x8d8] ss:$28 sps:$4 sm:$0xff]  }
 0x2bf   :  { %6448 = vmatprep.subr.bf16.mxu0 %v7431_v62  ;;  %4855 = vmatpush1.bf16.msra.mxu1 %v7428_v41  ;;  %v7495_v62 = vld [vmem:[#allocation8 + $0x7f4] ss:$28 sps:$4 sm:$0xff]  }
 0x2c0   :  { %4856 = vmatprep.subr.bf16.mxu1 %v7435_v51  ;;  %v7492_v41 = vld [vmem:[#allocation8 + $0x718] ss:$28 sps:$4 sm:$0xff]   ;;  %v7493_v51 = vld [vmem:[#allocation8 + $0x7f0] ss:$28 sps:$4 sm:$0xff]  }
 0x2c2   :  { %6449 = vmatpush3.bf16.msra.mxu0 %v7432_v42  ;;  %v7498_v42 = vld [vmem:[#allocation8 + $0x7bc] ss:$28 sps:$4 sm:$0xff]  }
 0x2c3   :  { %6450 = vmatprep.subr.bf16.mxu0 %v7436_v43  ;;  %4857 = vmatpush1.bf16.msra.mxu1 %v7433_v48  ;;  %v7559_v43 = vld [vmem:[#allocation11 + $0xf0] sm:$0xff]  }
 0x2c4   :  { %4858 = vmatprep.subr.bf16.mxu1 %v7440_v50  ;;  %v7496_v48 = vld [vmem:[#allocation8 + $0x7b8] ss:$28 sps:$4 sm:$0xff]  }
 0x2c6   :  { %6451 = vmatpush3.bf16.msra.mxu0 %v7437_v6  ;;  %v7501_v6 = vld [vmem:[#allocation8 + $0x784] ss:$28 sps:$4 sm:$0xff]  }
 0x2c7   :  { %6452 = vmatprep.subr.bf16.mxu0 %v7441_v52  ;;  %4859 = vmatpush2.bf16.msra.mxu1 %v7438_v17  ;;  %v7561_v52 = vld [vmem:[#allocation11 + $0xb0] sm:$0xff]  }
 0x2c8   :  { %4860 = vmatprep.subr.bf16.mxu1 %v7445_v53  ;;  %v7563_v53 = vld [vmem:[#allocation11 + $0xe8] sm:$0xff]  }
 0x2ca   :  { %6453 = vmatpush3.bf16.msra.mxu0 %v7442_v54  ;;  %v7499_v54 = vld [vmem:[#allocation8 + $0x780] ss:$28 sps:$4 sm:$0xff]  }
 0x2cb   :  { %6454 = vmatprep.subr.bf16.mxu0 %v7446_v55  ;;  %4861 = vmatpush2.bf16.msra.mxu1 %v7443_v16  ;;  %v7504_v16 = vld [vmem:[#allocation8 + $0x74c] ss:$28 sps:$4 sm:$0xff]  }
 0x2cc   :  { %4862 = vmatprep.subr.bf16.mxu1 %v7450_v56  ;;  %v7565_v56 = vld [vmem:[#allocation11 + $0xa8] sm:$0xff]  }
 0x2ce   :  { %6455 = vmatpush3.bf16.msra.mxu0 %v7447_v57 }
 0x2cf   :  { %6456 = vmatprep.subr.bf16.mxu0 %v7451_v58  ;;  %4863 = vmatpush2.bf16.msra.mxu1 %v7448_v59  ;;  %v7567_v58 = vld [vmem:[#allocation11 + $0xe0] sm:$0xff]  }
 0x2d0   :  { %4864 = vmatprep.subr.bf16.mxu1 %v7455_v63  ;;  %v7502_v59 = vld [vmem:[#allocation8 + $0x748] ss:$28 sps:$4 sm:$0xff]   ;;  %v7507_v63 = vld [vmem:[#allocation8 + $0x714] ss:$28 sps:$4 sm:$0xff]  }
 0x2d2   :  { %6457 = vmatpush3.bf16.msra.mxu0 %v7452_v29  ;;  %v7569_v29 = vld [vmem:[#allocation11 + $0xa0] sm:$0xff]  }
 0x2d3   :  { %6486 = vmatprep.subr.bf16.mxu0 %v7456_v0  ;;  %4865 = vmatpush2.bf16.msra.mxu1 %v7453_v1  ;;  %v7571_v0 = vld [vmem:[#allocation11 + $0xd8] sm:$0xff]   ;;  %v7505_v1 = vld [vmem:[#allocation8 + $0x710] ss:$28 sps:$4 sm:$0xff]  }
 0x2d4   :  { %4866 = vmatprep.subr.bf16.mxu1 %v7460_v2  ;;  %v7510_v2 = vld [vmem:[#allocation8 + $0xa5c] ss:$28 sps:$4 sm:$0xff]  }
 0x2d5   :  { %4998 = vmatmul.mubr.bf16.vlgmr.msra.gmra.mxu0 %v7937_v38 }
 0x2d6   :  { %6487 = vmatpush3.bf16.msra.mxu0 %v7457_v4  ;;  %5077 = vmatprep.mubr.bf16.mxu0 %v7977_v37  ;;  %v7573_v4 = vld [vmem:[#allocation11 + $0x98] sm:$0xff]  }
 0x2d7   :  { %6488 = vmatprep.subr.bf16.mxu0 %v7461_v5  ;;  %4867 = vmatpush2.bf16.msra.mxu1 %v7458_v8  ;;  %v7574_v5 = vld [vmem:[#allocation11 + $0xd0] sm:$0xff]  }
 0x2d8   :  { %4868 = vmatprep.subr.bf16.mxu1 %v7465_v9  ;;  %v7508_v8 = vld [vmem:[#allocation8 + $0xa58] ss:$28 sps:$4 sm:$0xff]   ;;  %v7513_v9 = vld [vmem:[#allocation8 + $0xa24] ss:$28 sps:$4 sm:$0xff]  }
 0x2da   :  { %6489 = vmatpush3.bf16.msra.mxu0 %v7462_v10  ;;  %v7575_v10 = vld [vmem:[#allocation11 + $0x90] sm:$0xff]  }
 0x2db   :  { %6490 = vmatprep.subr.bf16.mxu0 %v7466_v11  ;;  %4869 = vmatpush2.bf16.msra.mxu1 %v7463_v45  ;;  %v7576_v11 = vld [vmem:[#allocation11 + $0xc8] sm:$0xff]   ;;  %v7511_v45 = vld [vmem:[#allocation8 + $0xa20] ss:$28 sps:$4 sm:$0xff]  }
 0x2dc   :  { %4870 = vmatprep.subr.bf16.mxu1 %v7470_v46  ;;  %v7516_v46 = vld [vmem:[#allocation8 + $0x9ec] ss:$28 sps:$4 sm:$0xff]  }
 0x2de   :  { %6491 = vmatpush3.bf16.msra.mxu0 %v7467_v7  ;;  %v7577_v7 = vld [vmem:[#allocation11 + $0x88] sm:$0xff]  }
 0x2df   :  { %6492 = vmatprep.subr.bf16.mxu0 %v7471_v13  ;;  %4871 = vmatpush2.bf16.msra.mxu1 %v7468_v14  ;;  %v7578_v13 = vld [vmem:[#allocation11 + $0xc0] sm:$0xff]  }
 0x2e0   :  { %4872 = vmatprep.subr.bf16.mxu1 %v7475_v19  ;;  %v7514_v14 = vld [vmem:[#allocation8 + $0x9e8] ss:$28 sps:$4 sm:$0xff]   ;;  %v7519_v19 = vld [vmem:[#allocation8 + $0x9b4] ss:$28 sps:$4 sm:$0xff]  }
 0x2e2   :  { %6493 = vmatpush3.bf16.msra.mxu0 %v7472_v23  ;;  %v7579_v23 = vld [vmem:[#allocation11 + $0x80] sm:$0xff]  }
 0x2e3   :  { %6494 = vmatprep.subr.bf16.mxu0 %v7476_v24  ;;  %4873 = vmatpush2.bf16.msra.mxu1 %v7473_v26  ;;  %v7517_v24 = vld [vmem:[#allocation8 + $0x9b0] ss:$28 sps:$4 sm:$0xff]   ;;  %v7522_v26 = vld [vmem:[#allocation8 + $0x97c] ss:$28 sps:$4 sm:$0xff]  }
 0x2e4   :  { %4924 = vmatprep.subr.bf16.mxu1 %v7480_v27  ;;  %v7520_v27 = vld [vmem:[#allocation8 + $0x978] ss:$28 sps:$4 sm:$0xff]  }
 0x2e6   :  { %6495 = vmatpush3.bf16.msra.mxu0 %v7477_v28  ;;  %4875 = vmatmul.mubr.bf16.vlgmr.msra.gmra.mxu1 %v7937_v38  ;;  %v7555_v38 = vld [vmem:[#allocation11 + $0xf8] sm:$0xff]  }
 0x2e7   :  { %6496 = vmatprep.subr.bf16.mxu0 %v7481_v31  ;;  %4925 = vmatpush1.bf16.msra.mxu1 %v7478_v30  ;;  %v7525_v28 = vld [vmem:[#allocation8 + $0x944] ss:$28 sps:$4 sm:$0xff]   ;;  %v7528_v30 = vld [vmem:[#allocation8 + $0x90c] ss:$28 sps:$4 sm:$0xff]  }
 0x2e8   :  { %4956 = vmatprep.mubr.bf16.mxu1 %v7977_v37  ;;  %4926 = vmatprep.subr.bf16.mxu1 %v7485_v49  ;;  %v7557_v37 = vld [vmem:[#allocation11 + $0xb8] sm:$0xff]  }
 0x2e9   :  { %v7523_v31 = vld [vmem:[#allocation8 + $0x940] ss:$28 sps:$4 sm:$0xff]   ;;  %v7526_v49 = vld [vmem:[#allocation8 + $0x908] ss:$28 sps:$4 sm:$0xff]  }
 0x2ea   :  { %6497 = vmatpush3.bf16.msra.mxu0 %v7482_v33  ;;  %v7531_v33 = vld [vmem:[#allocation8 + $0x8d4] ss:$28 sps:$4 sm:$0xff]  }
 0x2eb   :  { %6498 = vmatprep.subr.bf16.mxu0 %v7486_v34  ;;  %4927 = vmatpush1.bf16.msra.mxu1 %v7483_v18  ;;  %v7529_v34 = vld [vmem:[#allocation8 + $0x8d0] ss:$28 sps:$4 sm:$0xff]   ;;  %v7532_v18 = vld [vmem:[#allocation8 + $0x6e0] ss:$28 sps:$4 sm:$0xff]  }
 0x2ec   :  { %4928 = vmatprep.subr.bf16.mxu1 %v7490_v35  ;;  %v7533_v35 = vld [vmem:[#allocation8 + $0x520] ss:$28 sps:$4 sm:$0xff]  }
 0x2ee   :  { %6499 = vmatpush3.bf16.msra.mxu0 %v7487_v36  ;;  %v7534_v36 = vld [vmem:[#allocation8 + $0x6a8] ss:$28 sps:$4 sm:$0xff]  }
 0x2ef   :  { %6500 = vmatprep.subr.bf16.mxu0 %v7491_v39  ;;  %4929 = vmatpush1.bf16.msra.mxu1 %v7488_v47  ;;  %v7535_v47 = vld [vmem:[#allocation8 + $0x4e8] ss:$28 sps:$4 sm:$0xff]  }
 0x2f0   :  { %4930 = vmatprep.subr.bf16.mxu1 %v7495_v62 }
 0x2f2   :  { %6501 = vmatpush3.bf16.msra.mxu0 %v7492_v41  ;;  %v7536_v41 = vld [vmem:[#allocation8 + $0x670] ss:$28 sps:$4 sm:$0xff]  }
 0x2f3   :  { %6530 = vmatprep.subr.bf16.mxu0 %v7555_v38  ;;  %4931 = vmatpush1.bf16.msra.mxu1 %v7493_v51  ;;  %v7537_v51 = vld [vmem:[#allocation8 + $0x4b0] ss:$28 sps:$4 sm:$0xff]  }
 0x2f4   :  { %4932 = vmatprep.subr.bf16.mxu1 %v7498_v42 }
 0x2f5   :  { %v8013_v50 = vpop.f32.mrf.mxu0  ;;  %5078 = vmatmul.mubr.bf16.vlgmr.msra.gmra.mxu0 %v7979_v40 }
 0x2f6   :  { %6531 = vmatpush3.bf16.msra.mxu0 %v7557_v37  ;;  %v7538_v37 = vld [vmem:[#allocation8 + $0x638] ss:$28 sps:$4 sm:$0xff]  }
 0x2f7   :  { %v8016_v17 = vpop.f32.mrf.mxu0  ;;  %6532 = vmatprep.subr.bf16.mxu0 %v7559_v43  ;;  %4933 = vmatpush1.bf16.msra.mxu1 %v7496_v48  ;;  %v7539_v43 = vld [vmem:[#allocation8 + $0x478] ss:$28 sps:$4 sm:$0xff]   ;;  %v7540_v48 = vld [vmem:[#allocation8 + $0x600] ss:$28 sps:$4 sm:$0xff]  }
 0x2f8   :  { %4934 = vmatprep.subr.bf16.mxu1 %v7501_v6 }
 0x2f9   :  { %v4757_v55 = vpop.f32.mrf.mxu0 }
 0x2fa   :  { %6533 = vmatpush3.bf16.msra.mxu0 %v7561_v52  ;;  %v7544_v55 = vld [vmem:[#allocation8 + $0x590] ss:$28 sps:$4 sm:$0xff]  }
 0x2fb   :  { %v4758_v57 = vpop.f32.mrf.mxu0  ;;  %6534 = vmatprep.subr.bf16.mxu0 %v7563_v53  ;;  %4935 = vmatpush1.bf16.msra.mxu1 %v7499_v54  ;;  %v7543_v53 = vld [vmem:[#allocation8 + $0x408] ss:$28 sps:$4 sm:$0xff]  }
 0x2fc   :  { %4936 = vmatprep.subr.bf16.mxu1 %v7504_v16  ;;  %v7546_v57 = vld [vmem:[#allocation8 + $0x558] ss:$28 sps:$4 sm:$0xff]  }
 0x2fe   :  { %6535 = vmatpush3.bf16.msra.mxu0 %v7565_v56  ;;  %v7545_v56 = vld [vmem:[#allocation8 + $0x3d0] ss:$28 sps:$4 sm:$0xff]  }
 0x2ff   :  { %6536 = vmatprep.subr.bf16.mxu0 %v7567_v58  ;;  %4937 = vmatpush1.bf16.msra.mxu1 %v7502_v59  ;;  %v7547_v59 = vld [vmem:[#allocation8 + $0x398] ss:$28 sps:$4 sm:$0xff]  }
 0x300   :  { %4938 = vmatprep.subr.bf16.mxu1 %v7507_v63  ;;  %v7548_v63 = vld [vmem:[#allocation11 + $0x78] sm:$0xff]  }
 0x302   :  { %6537 = vmatpush3.bf16.msra.mxu0 %v7569_v29 }
 0x303   :  { %6538 = vmatprep.subr.bf16.mxu0 %v7571_v0  ;;  %4939 = vmatpush1.bf16.msra.mxu1 %v7505_v1  ;;  %v7549_v0 = vld [vmem:[#allocation11 + $0x38] sm:$0xff]   ;;  %v7550_v1 = vld [vmem:[#allocation11 + $0x70] sm:$0xff]  }
 0x304   :  { %4940 = vmatprep.subr.bf16.mxu1 %v7510_v2 }
 0x306   :  { %6539 = vmatpush3.bf16.msra.mxu0 %v7573_v4  ;;  %v7551_v4 = vld [vmem:[#allocation11 + $0x30] sm:$0xff]  }
 0x307   :  { %6540 = vmatprep.subr.bf16.mxu0 %v7574_v5  ;;  %4941 = vmatpush2.bf16.msra.mxu1 %v7508_v8  ;;  %v7552_v5 = vld [vmem:[#allocation11 + $0x68] sm:$0xff]  }
 0x308   :  { %4942 = vmatprep.subr.bf16.mxu1 %v7513_v9  ;;  %v7553_v8 = vld [vmem:[#allocation11 + $0x28] sm:$0xff]   ;;  %v7556_v9 = vld [vmem:[#allocation11 + $0x20] sm:$0xff]  }
 0x30a   :  { %6541 = vmatpush3.bf16.msra.mxu0 %v7575_v10  ;;  %v7558_v10 = vld [vmem:[#allocation11 + $0x58] sm:$0xff]  }
 0x30b   :  { %6542 = vmatprep.subr.bf16.mxu0 %v7576_v11  ;;  %4943 = vmatpush2.bf16.msra.mxu1 %v7511_v45  ;;  %v7560_v11 = vld [vmem:[#allocation11 + $0x18] sm:$0xff]   ;;  %v7562_v45 = vld [vmem:[#allocation11 + $0x50] sm:$0xff]  }
 0x30c   :  { %4944 = vmatprep.subr.bf16.mxu1 %v7516_v46  ;;  %v7564_v46 = vld [vmem:[#allocation11 + $0x10] sm:$0xff]  }
 0x30e   :  { %6543 = vmatpush3.bf16.msra.mxu0 %v7577_v7  ;;  %v7568_v7 = vld [vmem:[#allocation11 + $0x8] sm:$0xff]  }
 0x30f   :  { %6544 = vmatprep.subr.bf16.mxu0 %v7578_v13  ;;  %4945 = vmatpush2.bf16.msra.mxu1 %v7514_v14  ;;  %v7570_v14 = vld [vmem:[#allocation11 + $0x40] sm:$0xff]  }
 0x310   :  { %4946 = vmatprep.subr.bf16.mxu1 %v7519_v19  ;;  %v7572_v19 = vld [vmem:[#allocation11] sm:$0xff]  }
 0x312   :  { %6545 = vmatpush3.bf16.msra.mxu0 %v7579_v23 }
 0x313   :  { %4947 = vmatpush2.bf16.msra.mxu1 %v7517_v24  ;;  %v7580_v24 = vld [vmem:[#allocation11 + $0x178] sm:$0xff]  }
 0x314   :  { %4948 = vmatprep.subr.bf16.mxu1 %v7522_v26  ;;  %v2844_v26 = vrot.slane %v7993_v15, %v425_v12  ;;  %v7584_v12 = vld [vmem:[#allocation11 + $0x168] sm:$0xff]  }
 0x317   :  { %4949 = vmatpush2.bf16.msra.mxu1 %v7520_v27  ;;  %v2848_v27 = vrot.slane %v7993_v15, %v429_v22 }
 0x318   :  { %4950 = vmatprep.subr.bf16.mxu1 %v7525_v28  ;;  %v7581_v28 = vld [vmem:[#allocation11 + $0x138] sm:$0xff]  }
 0x31b   :  { %4951 = vmatpush2.bf16.msra.mxu1 %v7523_v31 }
 0x31c   :  { %4952 = vmatprep.subr.bf16.mxu1 %v7528_v30  ;;  %v4754_v30 = vadd.f32 %v8013_v50, %v2844_v26  ;;  %v2852_v26 = vrot.slane %v7993_v15, %v433_v3  ;;  %v2859_v3 = vsub.s32 6, %v7897_v25 }
 0x31f   :  { %4953 = vmatpush2.bf16.msra.mxu1 %v7526_v49 }
 0x320   :  { %4954 = vmatprep.subr.bf16.mxu1 %v7531_v33  ;;  %v4756_v33 = vadd.f32 %v8016_v17, %v2848_v27  ;;  %v2856_v27 = vrot.slane %v7993_v15, %v437_v44  ;;  %v2860_v44 = vrot.slane %v7993_v15, %v2859_v3 }
 0x323   :  { %4955 = vmatpush2.bf16.msra.mxu1 %v7529_v34 }
 0x324   :  { %6464 = vmatprep.subr.bf16.mxu1 %v7532_v18  ;;  %v7583_v18 = vld [vmem:[#allocation11 + $0x130] sm:$0xff]  }
 0x326   :  { %4957 = vmatmul.mubr.bf16.vlgmr.msra.gmra.mxu1 %v7979_v40  ;;  %v8019_v39 = vpop.f32.mrf.mxu1  ;;  %v7541_v40 = vld [vmem:[#allocation8 + $0x440] ss:$28 sps:$4 sm:$0xff]  }
 0x327   :  { %6465 = vmatpush3.bf16.msra.mxu1 %v7533_v35  ;;  %5037 = vmatprep.mubr.bf16.mxu1 %v7952_v60  ;;  %v7542_v60 = vld [vmem:[#allocation8 + $0x5c8] ss:$28 sps:$4 sm:$0xff]   ;;  %v4713_v13 = vadd.f32 %v8019_v39, %v8004_v32  ;;  %v7582_v32 = vld [vmem:[#allocation11 + $0x170] sm:$0xff]  }
 0x328   :  { %v4714_v62 = vpop.f32.mrf.mxu1  ;;  %6466 = vmatprep.subr.bf16.mxu1 %v7534_v36 }
 0x329   :  { %v4715_v58 = vadd.f32 %v4714_v62, %v8007_v21  ;;  %v7554_v21 = vld [vmem:[#allocation11 + $0x60] sm:$0xff]   ;;  %v5085_v23 = vmul.f32 %v4713_v13, %v4713_v13  ;;  %v7585_v62 = vld [vmem:[#allocation11 + $0x128] sm:$0xff]  }
 0x32a   :  { %v4716_v38 = vpop.f32.mrf.mxu1 }
 0x32b   :  { %6467 = vmatpush3.bf16.msra.mxu1 %v7535_v47  ;;  %v5086_v29 = vmul.f32 %v4715_v58, %v4715_v58  ;;  %v5092_v31 = vpack.c.bf16 %v5085_v23, %v5085_v23  ;;  %v7586_v38 = vld [vmem:[#allocation11 + $0x160] sm:$0xff]  }
 0x32c   :  { %v4717_v42 = vpop.f32.mrf.mxu1  ;;  %6468 = vmatprep.subr.bf16.mxu1 %v7536_v41 }
 0x32d   :  { %v5093_v2 = vpack.c.bf16 %v5086_v29, %v5086_v29  ;;  %v7587_v42 = vld [vmem:[#allocation11 + $0x120] sm:$0xff]  }
 0x32e   :  { %v7594_v29 = vld [vmem:[#allocation11 + $0x140] sm:$0xff]  }
 0x32f   :  { %6469 = vmatpush3.bf16.msra.mxu1 %v7537_v51 }
 0x330   :  { %6470 = vmatprep.subr.bf16.mxu1 %v7538_v37 }
 0x333   :  { %6471 = vmatpush3.bf16.msra.mxu1 %v7539_v43  ;;  %v7588_v43 = vld [vmem:[#allocation11 + $0x158] sm:$0xff]  }
 0x334   :  { %6472 = vmatprep.subr.bf16.mxu1 %v7540_v48  ;;  %v7596_v48 = vld [vmem:[#allocation11 + $0x1b8] sm:$0xff]  }
 0x335   :  { %v8022_v6 = vpop.f32.mrf.mxu0 }
 0x337   :  { %v8024_v52 = vpop.f32.mrf.mxu0  ;;  %6473 = vmatpush3.bf16.msra.mxu1 %v7541_v40  ;;  %v7792_v40 = vmov 0.0  }
 0x338   :  { %6474 = vmatprep.subr.bf16.mxu1 %v7542_v60  ;;  %6583 = vmatprep.subr.bf16.mxu0 %v7792_v40  ;;  %v7597_v60 = vld [vmem:[#allocation11 + $0x1b0] sm:$0xff]  }
 0x339   :  { %v4839_v54 = vpop.f32.mrf.mxu0 }
 0x33b   :  { %v4840_v16 = vpop.f32.mrf.mxu0  ;;  %6475 = vmatpush3.bf16.msra.mxu1 %v7543_v53  ;;  %v7590_v53 = vld [vmem:[#allocation11 + $0x150] sm:$0xff]  }
 0x33c   :  { %6476 = vmatprep.subr.bf16.mxu1 %v7544_v55  ;;  %v7591_v55 = vld [vmem:[#allocation11 + $0x110] sm:$0xff]   ;;  %v7598_v16 = vld [vmem:[#allocation11 + $0x1a8] sm:$0xff]  }
 0x33f   :  { %6477 = vmatpush3.bf16.msra.mxu1 %v7545_v56 }
 0x340   :  { %6478 = vmatprep.subr.bf16.mxu1 %v7546_v57  ;;  %v7592_v57 = vld [vmem:[#allocation11 + $0x148] sm:$0xff]  }
 0x343   :  { %6479 = vmatpush3.bf16.msra.mxu1 %v7547_v59  ;;  %v7593_v59 = vld [vmem:[#allocation11 + $0x108] sm:$0xff]  }
 0x344   :  { %6508 = vmatprep.subr.bf16.mxu1 %v7548_v63  ;;  %v7599_v63 = vld [vmem:[#allocation11 + $0x1a0] sm:$0xff]  }
 0x346   :  { %5038 = vmatmul.mubr.bf16.vlgmr.msra.gmra.mxu1 %v7954_v61  ;;  %v7566_v61 = vld [vmem:[#allocation11 + $0x48] sm:$0xff]  }
 0x347   :  { %6509 = vmatpush3.bf16.msra.mxu1 %v7549_v0  ;;  %5586 = vmatprep.mubr.bf16.mxu1 %v5093_v2  ;;  %v7595_v0 = vld [vmem:[#allocation11 + $0x100] sm:$0xff]   ;;  %v7601_v2 = vld [vmem:[#allocation11 + $0x190] sm:$0xff]  }
 0x348   :  { %6510 = vmatprep.subr.bf16.mxu1 %v7550_v1  ;;  %v7600_v1 = vld [vmem:[#allocation11 + $0x198] sm:$0xff]  }
 0x34b   :  { %6511 = vmatpush3.bf16.msra.mxu1 %v7551_v4  ;;  %v7602_v4 = vld [vmem:[#allocation11 + $0x188] sm:$0xff]  }
 0x34c   :  { %6512 = vmatprep.subr.bf16.mxu1 %v7552_v5  ;;  %v7603_v5 = vld [vmem:[#allocation11 + $0x180] sm:$0xff]  }
 0x34f   :  { %6513 = vmatpush3.bf16.msra.mxu1 %v7553_v8 }
 0x350   :  { %6514 = vmatprep.subr.bf16.mxu1 %v7554_v21 }
 0x353   :  { %6515 = vmatpush3.bf16.msra.mxu1 %v7556_v9 }
 0x354   :  { %6516 = vmatprep.subr.bf16.mxu1 %v7558_v10 }
 0x357   :  { %6517 = vmatpush3.bf16.msra.mxu1 %v7560_v11 }
 0x358   :  { %6518 = vmatprep.subr.bf16.mxu1 %v7562_v45 }
 0x35b   :  { %6519 = vmatpush3.bf16.msra.mxu1 %v7564_v46 }
 0x35c   :  { %6520 = vmatprep.subr.bf16.mxu1 %v7566_v61 }
 0x35f   :  { %6521 = vmatpush3.bf16.msra.mxu1 %v7568_v7 }
 0x360   :  { %6522 = vmatprep.subr.bf16.mxu1 %v7570_v14 }
 0x363   :  { %6523 = vmatpush3.bf16.msra.mxu1 %v7572_v19 }
 0x364   :  { %6552 = vmatprep.subr.bf16.mxu1 %v7580_v24 }
 0x366   :  { %v4794_v49 = vpop.f32.mrf.mxu1  ;;  %5587 = vmatmul.mubr.bf16.vlgmr.msra.gmra.mxu1 %v5092_v31 }
 0x367   :  { %v4795_v34 = vadd.f32 %v4794_v49, %v4754_v30  ;;  %6553 = vmatpush3.bf16.msra.mxu1 %v7581_v28 }
 0x368   :  { %v4796_v35 = vpop.f32.mrf.mxu1  ;;  %6554 = vmatprep.subr.bf16.mxu1 %v7582_v32 }
 0x369   :  { %v4836_v36 = vadd.f32 %v8022_v6, %v4795_v34  ;;  %v4797_v22 = vadd.f32 %v4796_v35, %v4756_v33  ;;  %v7589_v6 = vld [vmem:[#allocation11 + $0x118] sm:$0xff]  }
 0x36a   :  { %v4798_v39 = vpop.f32.mrf.mxu1 }
 0x36b   :  { %v4838_v47 = vadd.f32 %v8024_v52, %v4797_v22  ;;  %6555 = vmatpush3.bf16.msra.mxu1 %v7583_v18  ;;  %v5087_v41 = vmul.f32 %v4836_v36, %v4836_v36 }
 0x36c   :  { %v4799_v50 = vpop.f32.mrf.mxu1  ;;  %6556 = vmatprep.subr.bf16.mxu1 %v7584_v12 }
 0x36d   :  { %v5088_v51 = vmul.f32 %v4838_v47, %v4838_v47  ;;  %v5094_v37 = vpack.c.bf16 %v5087_v41, %v5087_v41 }
 0x36f   :  { %v5095_v17 = vpack.c.bf16 %v5088_v51, %v5088_v51  ;;  %6557 = vmatpush3.bf16.msra.mxu1 %v7585_v62 }
 0x370   :  { %6558 = vmatprep.subr.bf16.mxu1 %v7586_v38 }
 0x371   :  { %5626 = vmatprep.mubr.bf16.mxu0 %v5095_v17 }
 0x372   :  { %5627 = vmatmul.mubr.bf16.vlgmr.msra.gmra.mxu0 %v5094_v37 }
 0x373   :  { %6559 = vmatpush3.bf16.msra.mxu1 %v7587_v42  ;;  %6584 = vmatpush3.bf16.msra.mxu0 %v7596_v48 }
 0x374   :  { %6560 = vmatprep.subr.bf16.mxu1 %v7588_v43  ;;  %6585 = vmatprep.subr.bf16.mxu0 %v7792_v40 }
 0x375   :  { %v4917_v52 = vpop.f32.mrf.mxu0  ;;  %6599 = vmatprep.mubr.msk.bf16.mxu0 %vm7793_vm1, %v7792_v40 }
 0x377   :  { %v4919_v54 = vpop.f32.mrf.mxu0  ;;  %6561 = vmatpush3.bf16.msra.mxu1 %v7589_v6  ;;  %6586 = vmatpush3.bf16.msra.mxu0 %v7597_v60 }
 0x378   :  { %6562 = vmatprep.subr.bf16.mxu1 %v7590_v53  ;;  %6587 = vmatprep.subr.bf16.mxu0 %v7792_v40 }
 0x379   :  { %v4921_v56 = vpop.f32.mrf.mxu0 }
 0x37b   :  { %v4922_v58 = vpop.f32.mrf.mxu0  ;;  %6563 = vmatpush3.bf16.msra.mxu1 %v7591_v55  ;;  %6588 = vmatpush3.bf16.msra.mxu0 %v7598_v16 }
 0x37c   :  { %6564 = vmatprep.subr.bf16.mxu1 %v7592_v57  ;;  %6589 = vmatprep.subr.bf16.mxu0 %v7792_v40 }
 0x37f   :  { %6565 = vmatpush3.bf16.msra.mxu1 %v7593_v59  ;;  %6590 = vmatpush3.bf16.msra.mxu0 %v7599_v63 }
 0x380   :  { %6566 = vmatprep.subr.bf16.mxu1 %v7594_v29  ;;  %6591 = vmatprep.subr.bf16.mxu0 %v7792_v40 }
 0x383   :  { %6567 = vmatpush3.bf16.msra.mxu1 %v7595_v0  ;;  %6592 = vmatpush3.bf16.msra.mxu0 %v7600_v1 }
 0x384   :  { %6593 = vmatprep.subr.bf16.mxu0 %v7792_v40 }
 0x387   :  { %6594 = vmatpush3.bf16.msra.mxu0 %v7601_v2 }
 0x388   :  { %6595 = vmatprep.subr.bf16.mxu0 %v7792_v40 }
 0x38b   :  { %6596 = vmatpush3.bf16.msra.mxu0 %v7602_v4 }
 0x38c   :  { %6597 = vmatprep.subr.bf16.mxu0 %v7792_v40 }
 0x38f   :  { %6598 = vmatpush3.bf16.msra.mxu0 %v7603_v5 }
 0x395   :  { %v6458_v8 = vpop.f32.mrf.mxu0 }
 0x397   :  { %v6459_v21 = vpop.f32.mrf.mxu0 }
 0x398   :  { %v6460_v9 = vadd.f32 %v6459_v21, %v6458_v8  ;;  %v5719_v21 = vand.u32 127, %v415_v20 }
 0x399   :  { %v6461_v10 = vpop.f32.mrf.mxu0 }
 0x39a   :  { %v5000_v50 = vadd.f32 %v6460_v9, %v2860_v44  ;;  %vm5720_vm2 = vcmp.lt.s32.totalorder %v5719_v21, 10 }
 0x39b   :  { %v6462_v11 = vpop.f32.mrf.mxu0 }
 0x3a6   :  { %v4876_v45 = vpop.f32.mrf.mxu1 }
 0x3a7   :  { %v4877_v28 = vadd.f32 %v4876_v45, %v2852_v26 }
 0x3a8   :  { %v4878_v46 = vpop.f32.mrf.mxu1 }
 0x3a9   :  { %v4879_v31 = vadd.f32 %v4878_v46, %v2856_v27  ;;  %v4918_v32 = vadd.f32 %v4917_v52, %v4877_v28 }
 0x3aa   :  { %v4880_v61 = vpop.f32.mrf.mxu1 }
 0x3ab   :  { %v4920_v33 = vadd.f32 %v4919_v54, %v4879_v31  ;;  %v6385_v54 = vld [vmem:[#allocation13] ss:$0 sm:$0xff] }
 0x3ac   :  { %v4881_v7 = vpop.f32.mrf.mxu1 }
 0x3b5   :  { %v6502_v13 = vpop.f32.mrf.mxu0 }
 0x3b7   :  { %v6503_v14 = vpop.f32.mrf.mxu0 }
 0x3b8   :  { %v6504_v19 = vadd.f32 %v6503_v14, %v6502_v13 }
 0x3b9   :  { %v6505_v23 = vpop.f32.mrf.mxu0 }
 0x3bb   :  { %v6506_v24 = vpop.f32.mrf.mxu0 }
 0x3e6   :  { %v4958_v30 = vpop.f32.mrf.mxu1 }
 0x3e7   :  { %v4959_v49 = vadd.f32 %v4958_v30, %v4918_v32 }
 0x3e8   :  { %v4960_v34 = vpop.f32.mrf.mxu1 }
 0x3e9   :  { %v4961_v18 = vadd.f32 %v4960_v34, %v4920_v33  ;;  %v5089_v35 = vmul.f32 %v4959_v49, %v4959_v49 }
 0x3ea   :  { %v4962_v12 = vpop.f32.mrf.mxu1 }
 0x3eb   :  { %v5090_v36 = vmul.f32 %v4961_v18, %v4961_v18  ;;  %v5096_v47 = vpack.c.bf16 %v5089_v35, %v5089_v35 }
 0x3ec   :  { %v4963_v22 = vpop.f32.mrf.mxu1 }
 0x3ed   :  { %v5097_v39 = vpack.c.bf16 %v5090_v36, %v5090_v36 }
 0x3ef   :  { %5666 = vmatprep.mubr.bf16.mxu1 %v5097_v39 }
 0x3f0   :  { %5667 = vmatmul.mubr.bf16.vlgmr.msra.gmra.mxu1 %v5096_v47 }
 0x406   :  { %v6480_v62 = vpop.f32.mrf.mxu1 }
 0x408   :  { %v6481_v41 = vpop.f32.mrf.mxu1 }
 0x409   :  { %v6482_v38 = vadd.f32 %v6481_v41, %v6480_v62 }
 0x40a   :  { %v6483_v51 = vpop.f32.mrf.mxu1 }
 0x40b   :  { %v5040_v17 = vadd.f32 %v6482_v38, %v5000_v50 }
 0x40c   :  { %v6484_v42 = vpop.f32.mrf.mxu1 }
 0x40d   :  { %v5080_v37 = vadd.f32 %v6504_v19, %v5040_v17 }
 0x40f   :  { %v5091_v43 = vmul.f32 %v5080_v37, %v5080_v37 }
 0x411   :  { %v5098_v48 = vpack.c.bf16 %v5091_v43, %v5091_v43 }
 0x413   :  { %6600 = vmatmul.mubr.bf16.vlgmr.msra.gmra.mxu0 %v5098_v48 }
 0x426   :  { %v6524_v40 = vpop.f32.mrf.mxu1 }
 0x428   :  { %v6525_v6 = vpop.f32.mrf.mxu1 }
 0x429   :  { %v6526_v60 = vadd.f32 %v6525_v6, %v6524_v40 }
 0x42a   :  { %v6527_v52 = vpop.f32.mrf.mxu1 }
 0x42b   :  { %v5589_v15 = vadd.f32 %v6526_v60, %v6385_v54 }
 0x42c   :  { %v6528_v53 = vpop.f32.mrf.mxu1 }
 0x432   :  { %v6546_v25 = vpop.f32.mrf.mxu0 }
 0x434   :  { %v6547_v55 = vpop.f32.mrf.mxu0 }
 0x435   :  { %v6548_v16 = vadd.f32 %v6547_v55, %v6546_v25 }
 0x436   :  { %v6549_v56 = vpop.f32.mrf.mxu0 }
 0x437   :  { %v5629_v57 = vadd.f32 %v6548_v16, %v5589_v15 }
 0x438   :  { %v6550_v58 = vpop.f32.mrf.mxu0 }
 0x4b0   :  { %v6568_v59 = vpop.f32.mrf.mxu1 }
 0x4b2   :  { %v6569_v63 = vpop.f32.mrf.mxu1 }
 0x4b3   :  { %v6570_v1 = vadd.f32 %v6569_v63, %v6568_v59 }
 0x4b4   :  { %v6571_v29 = vpop.f32.mrf.mxu1 }
 0x4b5   :  { %v5669_v2 = vadd.f32 %v6570_v1, %v5629_v57 }
 0x4b6   :  { %v6572_v0 = vpop.f32.mrf.mxu1 }
 0x4d3   :  { %v5708_v4 = vpop.f32.mrf.mxu0 }
 0x4d4   :  { %v5709_v5 = vadd.f32 %v5708_v4, %v5669_v2 }
 0x4d5   :  { %v6601_v8 = vpop.f32.mrf.mxu0 }
 0x4d6   :  { %v5715_v9 = vmul.f32 0.5, %v5709_v5  ;;  %v5714_v11 = vadd.f32 1.0, %v5709_v5 }
 0x4d7   :  { %v5711_v10 = vpop.f32.mrf.mxu0 }
 0x4d8   :  { %v5716_v45 = vmul.f32 %v5715_v9, %v5709_v5 }
 0x4d9   :  { %v6602_v46 = vpop.f32.mrf.mxu0 }
 0x4da   :  { %v5717_v61 = vadd.f32 %v5716_v45, %v5714_v11 }
 0x4dc   :  { %v5721_v7 = vsel %vm5720_vm2, %v5717_v61, 0.0 }
 0x4dd   :  { %5722 = vadd.xlane.f32.xlu0 %v5721_v7 }
 0x566   :  { %v5723_v13 = vpop.xlane.xlu0 %5722 }
 0x567   :  { %7604 = vrcp.f32 %v5723_v13 }
 0x574   :  { %v7605_v14 = vpop.eup %7604 }
 0x575   :  { %v5725_v19 = vmul.f32 %v7605_v14, %v5721_v7 }
 0x577   :  { %5726 = vst [vmem:[#allocation14] sm:$0xff] %v5725_v19 }
 0x578   :  { %7759 = shalt.err (!%p7756_p11)
}
 0x579   :  { %5736 = dma.vmem_to_hbm [thread:$0]  %s5734_s6, 128, %s8059_s7, [#allocation4]  }
 0x57a   :  { %7776 = dma.done.wait [#allocation4], 128  }
 0x57b   :  { %7777 = vsyncadd [#allocation4], 4294967168 }
 0x57c   :  { %5740 = vsyncpa [#allocation3], 1 }
 0x57d   :  { %5741 = vsyncpa [#allocation6], 1 }
 0x57e   :  { %5742 = vsyncpa [#allocation9], 1 }
 0x57f   :  { %5743 = vsyncpa [#allocation12], 1 }
 0x580   :  { %5744 = vsyncpa [#allocation4], 1 }

</bundles_post_ra>
